<compile_context>
chip_gen: v7x
topology: tpu7x:2x2x1
jax: 0.10.0
libtpu: 0.0.40
codegen_flags: <defaults>
</compile_context>

<pallas_src>
import functools
import math

import jax
import jax.numpy as jnp
from jax.experimental import pallas as pl
from jax.experimental.pallas import tpu as pltpu

_LN_EPS = 1e-5


def _gelu(x):
    # TODO(synk): PyTorch nn.GELU() default is erf-exact; tanh approximation used so the
    # lowering is guaranteed (max abs deviation ~1e-3 at these magnitudes).
    c = math.sqrt(2.0 / math.pi)
    return 0.5 * x * (1.0 + jnp.tanh(c * (x + 0.044715 * x * x * x)))


def _layernorm(x, w, b):
    mu = jnp.mean(x, axis=-1, keepdims=True)
    var = jnp.mean((x - mu) * (x - mu), axis=-1, keepdims=True)
    return (x - mu) * jax.lax.rsqrt(var + _LN_EPS) * w + b


def _gmb_kernel(x_ref,                      # (1, TN, C)    f32/bf16 token tile
                rows_ref,                   # (1, 3, H*M)   f32  per-batch [scale*k | kmax | kmin]
                wf_ref,                     # (1, H*M, C)   bf16 per-batch block-diag V folded w/ proj
                n1w_ref, n1b_ref,           # (1, C)        f32
                qw_ref,                     # (C, H)        bf16
                eone_ref,                   # (H, H*M)      bf16 one-hot head expansion
                eonet_ref,                  # (H*M, H)      bf16 its transpose (per-head sums)
                pb_ref,                     # (1, C)        f32  proj bias
                n3w_ref, n3b_ref,           # (1, C)        f32
                f1w_ref, f1b_ref,           # (C, 4C) bf16, (1, 4C) f32
                f2w_ref, f2b_ref,           # (4C, C) bf16, (1, C) f32
                o_ref):                     # (1, TN, C)    f32
    bf16, f32 = jnp.bfloat16, jnp.float32

    x = x_ref[0].astype(f32)                                                    # (TN, C)

    # ---------------- norm1 + q ----------------
    xn = _layernorm(x, n1w_ref[...], n1b_ref[...])
    q = jnp.dot(xn.astype(bf16), qw_ref[...], preferred_element_type=f32)       # (TN, H)
    # head expansion (bf16 one-hot, exact copy of bf16(q)): q_big[n, h*M+m] = q[n, h]
    q_big = jnp.dot(q.astype(bf16), eone_ref[...], preferred_element_type=f32)  # (TN, HM)

    # -------- channel-reduction attention: logits & stabilizer on the VPU --------
    rows = rows_ref[0]                                                           # (3, HM) f32
    logits = q_big * rows[0:1, :]                                                # scale*q*k
    mh_big = jnp.maximum(q_big * rows[1:2, :], q_big * rows[2:3, :])             # exact per-(n,h) max
    e = jnp.exp(logits - mh_big)                                                 # f32, EUP
    s = jnp.dot(e.astype(bf16), eonet_ref[...], preferred_element_type=f32)      # (TN, H) head sums
    r = pl.reciprocal(s, approx=True)
    r_big = jnp.dot(r.astype(bf16), eone_ref[...], preferred_element_type=f32)   # (TN, HM)
    p = e * r_big                                                                # probabilities
    attn = jnp.dot(p.astype(bf16), wf_ref[0], preferred_element_type=f32) + pb_ref[...]
    x1 = x + attn                                                                # residual 1

    # ---------------- MLP (1x1 convs) ----------------
    xn3 = _layernorm(x1, n3w_ref[...], n3b_ref[...])
    h1 = _gelu(jnp.dot(xn3.astype(bf16), f1w_ref[...],
                       preferred_element_type=f32) + f1b_ref[...])               # (TN, 4C)
    h2 = jnp.dot(h1.astype(bf16), f2w_ref[...],
                 preferred_element_type=f32) + f2b_ref[...]                      # (TN, C)

    o_ref[0] = x1 + h2                                                           # residual 2


# ---------------- generation-aware config helpers ----------------
def _device_kind():
    try:
        return jax.devices()[0].device_kind.lower()
    except Exception:
        return ""


@functools.lru_cache(maxsize=1)
def _tpu_generation_info():
    """Returns (vmem_capacity_bytes, is_v5e). Narrow capability probe; never raises."""
    kind = _device_kind()
    vmem = None
    try:
        info = pltpu.get_tpu_info()
        for attr in ("vmem_capacity_bytes", "vmem_bytes", "vmem_size_bytes"):
            v = getattr(info, attr, None)
            if v:
                vmem = int(v)
                break
    except Exception:
        vmem = None
    if vmem is None:
        vmem = (64 if "v7" in kind else 128) * 1024 * 1024
    is_v5e = ("v5 lite" in kind) or ("v5e" in kind) or ("v5lite" in kind)
    return vmem, is_v5e


def _round_up(a, m):
    return -(-a // m) * m


def _choose_token_tile(n, small_vmem):
    """Token tile: <=256 on small-VMEM chips (v7x), <=512 elsewhere; never a huge full-N block."""
    tn_max = 256 if small_vmem else 512
    if n <= tn_max:
        return _round_up(n, 8)
    best_tn, best_pad = tn_max, _round_up(n, tn_max) - n
    tn = tn_max - 128
    while tn >= 128 and best_pad * 8 > n:        # only shrink tile if padding waste > 12.5%
        pad = _round_up(n, tn) - n
        if pad < best_pad:
            best_tn, best_pad = tn, pad
        tn -= 128
    return best_tn


def global_meta_block_forward(x, h, w, params, num_heads, pool_ratio):
    B, N, C = x.shape
    H = num_heads
    assert N == h * w and C % H == 0 and h % pool_ratio == 0 and w % pool_ratio == 0
    hd = C // H
    pr = pool_ratio
    hp, wp = h // pr, w // pr
    M = hp * wp
    HM = H * M
    hidden = params["fc1_w"].shape[0]
    scale = hd ** (-0.5)

    f32, bf16 = jnp.float32, jnp.bfloat16
    x = x.astype(f32)

    # ---- hoisted pooled k/v pre-pass (M tokens/batch; plain JAX, cheap & mem-bound) ----
    xn = _layernorm(x, params["norm1_w"], params["norm1_b"])                 # (B, N, C)
    pooled = xn.reshape(B, hp, pr, wp, pr, C).mean(axis=(2, 4)).reshape(B, M, C)
    x_ = pooled @ params["sr_w"].T + params["sr_b"]
    x_ = _gelu(_layernorm(x_, params["attn_norm_w"], params["attn_norm_b"]))
    k = x_ @ params["k_w"].T                                                 # (B, M, H)
    v = x_ @ params["v_w"].T                                                 # (B, M, C)

    # Per-batch broadcast rows so the kernel forms logits/stabilizer with VPU multiplies:
    #   rows[:, 0, h*M+m] = scale*k[:, m, h]; rows[:, 1/2, h*M+m] = per-head scaled-k max/min.
    ks = scale * k
    k_row = ks.transpose(0, 2, 1).reshape(B, HM)
    kmax_row = jnp.repeat(ks.max(axis=1), M, axis=-1)
    kmin_row = jnp.repeat(ks.min(axis=1), M, axis=-1)
    rows = jnp.stack([k_row, kmax_row, kmin_row], axis=1).astype(f32)        # (B, 3, HM)

    # Fold output projection into the head-block-diagonal value matrix:
    #   wf[b, h*M+m, c] = sum_d v[b,m,h*hd+d] * proj_w.T[h*hd+d, c]
    projT = params["proj_w"].T.reshape(H, hd, C)
    wf = jnp.einsum('bmhd,hdc->bhmc', v.reshape(B, M, H, hd), projT).reshape(B, HM, C)

    eone = jnp.repeat(jnp.eye(H, dtype=f32), M, axis=1)                      # (H, HM)

    vmem_cap, is_v5e = _tpu_generation_info()
    small_vmem = vmem_cap <= 64 * 1024 * 1024

    row = lambda a: a.reshape(1, -1).astype(f32)
    per_batch = [rows, wf.astype(bf16)]
    weights = [
        row(params["norm1_w"]), row(params["norm1_b"]),
        params["q_w"].T.astype(bf16),                    # (C, H)
        eone.astype(bf16), eone.T.astype(bf16),          # 0/1 exact in bf16 -> native MXU passes
        row(params["proj_b"]),
        row(params["norm3_w"]), row(params["norm3_b"]),
        params["fc1_w"].T.astype(bf16), row(params["fc1_b"]),
        params["fc2_w"].T.astype(bf16), row(params["fc2_b"]),
    ]

    # Token tiling: generation-aware tile; pad N up to a tile multiple (padded rows are
    # garbage-in/garbage-out -- they never feed real tokens -- and are sliced off below).
    TN = _choose_token_tile(N, small_vmem)
    N_pad = _round_up(N, TN)
    x_in = x.astype(bf16) if is_v5e else x      # v5e is HBM-bound at small C: halve x traffic
    if N_pad != N:
        x_in = jnp.pad(x_in, ((0, 0), (0, N_pad - N), (0, 0)))
    grid = (B, N_pad // TN)

    flops = int(2 * B * N_pad * (C * H + 2 * H * HM + HM * H + HM * C + 2 * C * hidden)
                + 16 * B * N_pad * max(C, HM))
    transcendentals = int(B * N_pad * (HM + hidden + 8))
    bytes_accessed = int(x_in.size * x_in.dtype.itemsize
                         + sum(int(a.size) * a.dtype.itemsize for a in (*per_batch, *weights))
                         + B * N_pad * C * 4)

    def weight_spec(a):
        nd = a.ndim
        return pl.BlockSpec(a.shape, lambda b, n, _nd=nd: (0,) * _nd)

    def batch_spec(a):
        return pl.BlockSpec((1,) + a.shape[1:], lambda b, n: (b, 0, 0))

    in_specs = ([pl.BlockSpec((1, TN, C), lambda b, n: (b, n, 0))]
                + [batch_spec(a) for a in per_batch]
                + [weight_spec(a) for a in weights])
    out_specs = pl.BlockSpec((1, TN, C), lambda b, n: (b, n, 0))

    out = pl.pallas_call(
        _gmb_kernel,
        out_shape=jax.ShapeDtypeStruct((B, N_pad, C), f32),
        grid=grid,
        in_specs=in_specs,
        out_specs=out_specs,
        compiler_params=pltpu.CompilerParams(
            dimension_semantics=("parallel", "parallel"),
            vmem_limit_bytes=(40 if small_vmem else 64) * 1024 * 1024,
        ),
        cost_estimate=pl.CostEstimate(flops=flops,
                                      transcendentals=transcendentals,
                                      bytes_accessed=bytes_accessed),
    )(x_in, *per_batch, *weights)

    return out[:, :N, :] if N_pad != N else out


# ---------------- pure-JAX reference (f32, for verification) ----------------
def reference_forward(x, h, w, params, num_heads, pool_ratio):
    B, N, C = x.shape
    hd = C // num_heads
    scale = hd ** (-0.5)
    pr = pool_ratio

    def ln(y, wt, bs):
        mu = jnp.mean(y, -1, keepdims=True)
        var = jnp.mean((y - mu) ** 2, -1, keepdims=True)
        return (y - mu) / jnp.sqrt(var + _LN_EPS) * wt + bs

    xn = ln(x, params["norm1_w"], params["norm1_b"])
    q = jnp.einsum('bnc,hc->bnh', xn, params["q_w"])
    x_img = xn.reshape(B, h, w, C)
    pooled = x_img.reshape(B, h // pr, pr, w // pr, pr, C).mean(axis=(2, 4)).reshape(B, -1, C)
    x_ = jnp.einsum('bmc,dc->bmd', pooled, params["sr_w"]) + params["sr_b"]
    x_ = _gelu(ln(x_, params["attn_norm_w"], params["attn_norm_b"]))
    k = jnp.einsum('bmc,hc->bmh', x_, params["k_w"])
    v = jnp.einsum('bmc,dc->bmd', x_, params["v_w"]).reshape(B, -1, num_heads, hd)
    logits = jnp.einsum('bnh,bmh->bhnm', q, k) * scale
    attn = jax.nn.softmax(logits, axis=-1)
    out = jnp.einsum('bhnm,bmhd->bnhd', attn, v).reshape(B, N, C)
    out = jnp.einsum('bnc,dc->bnd', out, params["proj_w"]) + params["proj_b"]
    x1 = x + out
    xn3 = ln(x1, params["norm3_w"], params["norm3_b"])
    h1 = _gelu(jnp.einsum('bnc,hc->bnh', xn3, params["fc1_w"]) + params["fc1_b"])
    h2 = jnp.einsum('bnh,ch->bnc', h1, params["fc2_w"]) + params["fc2_b"]
    return x1 + h2


def init_params(key, C, num_heads, hidden):
    ks = jax.random.split(key, 8)
    lin = lambda k, shape: 0.02 * jax.random.normal(k, shape, jnp.float32)   # trunc_normal_(std=0.02)
    conv = lambda k, shape: math.sqrt(2.0 / shape[0]) * jax.random.normal(k, shape, jnp.float32)
    return dict(
        norm1_w=jnp.ones((C,), jnp.float32), norm1_b=jnp.zeros((C,), jnp.float32),
        q_w=lin(ks[0], (num_heads, C)),
        k_w=lin(ks[1], (num_heads, C)),
        v_w=lin(ks[2], (C, C)),
        sr_w=conv(ks[3], (C, C)), sr_b=jnp.zeros((C,), jnp.float32),
        attn_norm_w=jnp.ones((C,), jnp.float32), attn_norm_b=jnp.zeros((C,), jnp.float32),
        proj_w=lin(ks[4], (C, C)), proj_b=jnp.zeros((C,), jnp.float32),
        norm3_w=jnp.ones((C,), jnp.float32), norm3_b=jnp.zeros((C,), jnp.float32),
        fc1_w=conv(ks[5], (hidden, C)), fc1_b=jnp.zeros((hidden,), jnp.float32),
        fc2_w=conv(ks[6], (C, hidden)), fc2_b=jnp.zeros((C,), jnp.float32),
    )


if __name__ == "__main__":
    B, C, h, w = 2, 32, 16, 16
    num_heads = 8
    pool_ratio = 4
    mlp_ratio = 4.0
    N = h * w
    hidden = int(C * mlp_ratio)

    key = jax.random.PRNGKey(0)
    kx, kp = jax.random.split(key)
    x = jax.random.normal(kx, (B, N, C), jnp.float32)
    params = init_params(kp, C, num_heads, hidden)

    fwd = jax.jit(lambda xx, pp: global_meta_block_forward(xx, h, w, pp, num_heads, pool_ratio))
    out = jax.block_until_ready(fwd(x, params))
    assert out.shape == (B, N, C)

    ref = reference_forward(x, h, w, params, num_heads, pool_ratio)
    err = float(jnp.max(jnp.abs(out - ref)))
    # bf16 MXU operands on the attention-apply / fc1 / fc2 matmuls dominate the tolerance
    # (an all-f32-operand variant of this kernel agrees with the reference to ~5e-3).
    assert err < 1e-1, f"max abs err {err}"
    print("KERNEL_OK")
</pallas_src>

<mosaic_0001>
module attributes {stable_mosaic.version = 11 : i64} {
  func.func @_gmb_kernel(%arg0: i32, %arg1: i32, %arg2: memref<1x256x32xf32, #tpu.memory_space<vmem>>, %arg3: memref<1x3x128xf32, #tpu.memory_space<vmem>>, %arg4: memref<1x128x32xbf16, #tpu.memory_space<vmem>>, %arg5: memref<1x32xf32, #tpu.memory_space<vmem>>, %arg6: memref<1x32xf32, #tpu.memory_space<vmem>>, %arg7: memref<32x8xbf16, #tpu.memory_space<vmem>>, %arg8: memref<8x128xbf16, #tpu.memory_space<vmem>>, %arg9: memref<128x8xbf16, #tpu.memory_space<vmem>>, %arg10: memref<1x32xf32, #tpu.memory_space<vmem>>, %arg11: memref<1x32xf32, #tpu.memory_space<vmem>>, %arg12: memref<1x32xf32, #tpu.memory_space<vmem>>, %arg13: memref<32x128xbf16, #tpu.memory_space<vmem>>, %arg14: memref<1x128xf32, #tpu.memory_space<vmem>>, %arg15: memref<128x32xbf16, #tpu.memory_space<vmem>>, %arg16: memref<1x32xf32, #tpu.memory_space<vmem>>, %arg17: memref<1x256x32xf32, #tpu.memory_space<vmem>>) attributes {dimension_semantics = [#tpu.dimension_semantics<parallel>, #tpu.dimension_semantics<parallel>], iteration_bounds = array<i64: 2, 1>, scalar_prefetch = 0 : i64, scratch_operands = 0 : i64, tpu.core_type = #tpu.core_type<tc>, window_params = [{transform_indices = @transform_0, window_bounds = array<i64: 1, 256, 32>}, {transform_indices = @transform_1, window_bounds = array<i64: 1, 3, 128>}, {transform_indices = @transform_2, window_bounds = array<i64: 1, 128, 32>}, {pipeline_mode = #tpu.pipeline_mode<synchronous>, transform_indices = @transform_3, window_bounds = array<i64: 1, 32>}, {pipeline_mode = #tpu.pipeline_mode<synchronous>, transform_indices = @transform_4, window_bounds = array<i64: 1, 32>}, {pipeline_mode = #tpu.pipeline_mode<synchronous>, transform_indices = @transform_5, window_bounds = array<i64: 32, 8>}, {pipeline_mode = #tpu.pipeline_mode<synchronous>, transform_indices = @transform_6, window_bounds = array<i64: 8, 128>}, {pipeline_mode = #tpu.pipeline_mode<synchronous>, transform_indices = @transform_7, window_bounds = array<i64: 128, 8>}, {pipeline_mode = #tpu.pipeline_mode<synchronous>, transform_indices = @transform_8, window_bounds = array<i64: 1, 32>}, {pipeline_mode = #tpu.pipeline_mode<synchronous>, transform_indices = @transform_9, window_bounds = array<i64: 1, 32>}, {pipeline_mode = #tpu.pipeline_mode<synchronous>, transform_indices = @transform_10, window_bounds = array<i64: 1, 32>}, {pipeline_mode = #tpu.pipeline_mode<synchronous>, transform_indices = @transform_11, window_bounds = array<i64: 32, 128>}, {pipeline_mode = #tpu.pipeline_mode<synchronous>, transform_indices = @transform_12, window_bounds = array<i64: 1, 128>}, {pipeline_mode = #tpu.pipeline_mode<synchronous>, transform_indices = @transform_13, window_bounds = array<i64: 128, 32>}, {pipeline_mode = #tpu.pipeline_mode<synchronous>, transform_indices = @transform_14, window_bounds = array<i64: 1, 32>}, {transform_indices = @transform_15, window_bounds = array<i64: 1, 256, 32>}]} {
    %c0 = arith.constant 0 : index
    %c0_0 = arith.constant 0 : index
    %c0_1 = arith.constant 0 : index
    %0 = vector.load %arg2[%c0, %c0_0, %c0_1] : memref<1x256x32xf32, #tpu.memory_space<vmem>>, vector<1x256x32xf32>
    %1 = vector.shape_cast %0 : vector<1x256x32xf32> to vector<256x32xf32>
    %c0_2 = arith.constant 0 : index
    %c0_3 = arith.constant 0 : index
    %2 = vector.load %arg5[%c0_2, %c0_3] : memref<1x32xf32, #tpu.memory_space<vmem>>, vector<1x32xf32>
    %c0_4 = arith.constant 0 : index
    %c0_5 = arith.constant 0 : index
    %3 = vector.load %arg6[%c0_4, %c0_5] : memref<1x32xf32, #tpu.memory_space<vmem>>, vector<1x32xf32>
    %cst = arith.constant dense<0.000000e+00> : vector<256xf32>
    %4 = vector.multi_reduction <add>, %1, %cst [1] : vector<256x32xf32> to vector<256xf32>
    %5 = vector.shape_cast %4 : vector<256xf32> to vector<256x1xf32>
    %cst_6 = arith.constant 3.200000e+01 : f32
    %6 = vector.broadcast %cst_6 : f32 to vector<256x1xf32>
    %7 = arith.divf %5, %6 : vector<256x1xf32>
    %8 = vector.broadcast %7 : vector<256x1xf32> to vector<256x32xf32>
    %9 = arith.subf %1, %8 : vector<256x32xf32>
    %10 = vector.broadcast %7 : vector<256x1xf32> to vector<256x32xf32>
    %11 = arith.subf %1, %10 : vector<256x32xf32>
    %12 = arith.mulf %9, %11 : vector<256x32xf32>
    %cst_7 = arith.constant dense<0.000000e+00> : vector<256xf32>
    %13 = vector.multi_reduction <add>, %12, %cst_7 [1] : vector<256x32xf32> to vector<256xf32>
    %14 = vector.shape_cast %13 : vector<256xf32> to vector<256x1xf32>
    %cst_8 = arith.constant 3.200000e+01 : f32
    %15 = vector.broadcast %cst_8 : f32 to vector<256x1xf32>
    %16 = arith.divf %14, %15 : vector<256x1xf32>
    %17 = vector.broadcast %7 : vector<256x1xf32> to vector<256x32xf32>
    %18 = arith.subf %1, %17 : vector<256x32xf32>
    %cst_9 = arith.constant 9.99999974E-6 : f32
    %19 = vector.broadcast %cst_9 : f32 to vector<256x1xf32>
    %20 = arith.addf %16, %19 : vector<256x1xf32>
    %21 = math.rsqrt %20 : vector<256x1xf32>
    %22 = vector.broadcast %21 : vector<256x1xf32> to vector<256x32xf32>
    %23 = arith.mulf %18, %22 : vector<256x32xf32>
    %24 = vector.broadcast %2 : vector<1x32xf32> to vector<256x32xf32>
    %25 = arith.mulf %23, %24 : vector<256x32xf32>
    %26 = vector.broadcast %3 : vector<1x32xf32> to vector<256x32xf32>
    %27 = arith.addf %25, %26 : vector<256x32xf32>
    %28 = arith.truncf %27 : vector<256x32xf32> to vector<256x32xbf16>
    %c0_10 = arith.constant 0 : index
    %c0_11 = arith.constant 0 : index
    %29 = vector.load %arg7[%c0_10, %c0_11] : memref<32x8xbf16, #tpu.memory_space<vmem>>, vector<32x8xbf16>
    %cst_12 = arith.constant dense<0.000000e+00> : vector<256x8xf32>
    %30 = tpu.matmul %28, %29, %cst_12 {dimension_numbers = #tpu.dot_dimension_numbers<[1], [0], [0], [1], [0, 0, 1, 1], [], []>} : vector<256x32xbf16>, vector<32x8xbf16>, vector<256x8xf32> -> vector<256x8xf32>
    %31 = arith.truncf %30 : vector<256x8xf32> to vector<256x8xbf16>
    %c0_13 = arith.constant 0 : index
    %c0_14 = arith.constant 0 : index
    %32 = vector.load %arg8[%c0_13, %c0_14] : memref<8x128xbf16, #tpu.memory_space<vmem>>, vector<8x128xbf16>
    %cst_15 = arith.constant dense<0.000000e+00> : vector<256x128xf32>
    %33 = tpu.matmul %31, %32, %cst_15 {dimension_numbers = #tpu.dot_dimension_numbers<[1], [0], [0], [1], [0, 0, 1, 1], [], []>} : vector<256x8xbf16>, vector<8x128xbf16>, vector<256x128xf32> -> vector<256x128xf32>
    %c0_16 = arith.constant 0 : index
    %c0_17 = arith.constant 0 : index
    %c0_18 = arith.constant 0 : index
    %34 = vector.load %arg3[%c0_16, %c0_17, %c0_18] : memref<1x3x128xf32, #tpu.memory_space<vmem>>, vector<1x3x128xf32>
    %35 = vector.shape_cast %34 : vector<1x3x128xf32> to vector<3x128xf32>
    %36 = vector.extract_strided_slice %35 {offsets = [0, 0], sizes = [1, 128], strides = [1, 1]} : vector<3x128xf32> to vector<1x128xf32>
    %37 = vector.broadcast %36 : vector<1x128xf32> to vector<256x128xf32>
    %38 = arith.mulf %33, %37 : vector<256x128xf32>
    %39 = vector.extract_strided_slice %35 {offsets = [1, 0], sizes = [1, 128], strides = [1, 1]} : vector<3x128xf32> to vector<1x128xf32>
    %40 = vector.broadcast %39 : vector<1x128xf32> to vector<256x128xf32>
    %41 = arith.mulf %33, %40 : vector<256x128xf32>
    %42 = vector.extract_strided_slice %35 {offsets = [2, 0], sizes = [1, 128], strides = [1, 1]} : vector<3x128xf32> to vector<1x128xf32>
    %43 = vector.broadcast %42 : vector<1x128xf32> to vector<256x128xf32>
    %44 = arith.mulf %33, %43 : vector<256x128xf32>
    %45 = arith.maximumf %41, %44 : vector<256x128xf32>
    %46 = arith.subf %38, %45 : vector<256x128xf32>
    %47 = math.exp %46 : vector<256x128xf32>
    %48 = arith.truncf %47 : vector<256x128xf32> to vector<256x128xbf16>
    %c0_19 = arith.constant 0 : index
    %c0_20 = arith.constant 0 : index
    %49 = vector.load %arg9[%c0_19, %c0_20] : memref<128x8xbf16, #tpu.memory_space<vmem>>, vector<128x8xbf16>
    %cst_21 = arith.constant dense<0.000000e+00> : vector<256x8xf32>
    %50 = tpu.matmul %48, %49, %cst_21 {dimension_numbers = #tpu.dot_dimension_numbers<[1], [0], [0], [1], [0, 0, 1, 1], [], []>} : vector<256x128xbf16>, vector<128x8xbf16>, vector<256x8xf32> -> vector<256x8xf32>
    %51 = tpu.reciprocal %50 {approx = true} : vector<256x8xf32> -> vector<256x8xf32>
    %52 = arith.truncf %51 : vector<256x8xf32> to vector<256x8xbf16>
    %c0_22 = arith.constant 0 : index
    %c0_23 = arith.constant 0 : index
    %53 = vector.load %arg8[%c0_22, %c0_23] : memref<8x128xbf16, #tpu.memory_space<vmem>>, vector<8x128xbf16>
    %cst_24 = arith.constant dense<0.000000e+00> : vector<256x128xf32>
    %54 = tpu.matmul %52, %53, %cst_24 {dimension_numbers = #tpu.dot_dimension_numbers<[1], [0], [0], [1], [0, 0, 1, 1], [], []>} : vector<256x8xbf16>, vector<8x128xbf16>, vector<256x128xf32> -> vector<256x128xf32>
    %55 = arith.mulf %47, %54 : vector<256x128xf32>
    %56 = arith.truncf %55 : vector<256x128xf32> to vector<256x128xbf16>
    %c0_25 = arith.constant 0 : index
    %c0_26 = arith.constant 0 : index
    %c0_27 = arith.constant 0 : index
    %57 = vector.load %arg4[%c0_25, %c0_26, %c0_27] : memref<1x128x32xbf16, #tpu.memory_space<vmem>>, vector<1x128x32xbf16>
    %58 = vector.shape_cast %57 : vector<1x128x32xbf16> to vector<128x32xbf16>
    %cst_28 = arith.constant dense<0.000000e+00> : vector<256x32xf32>
    %59 = tpu.matmul %56, %58, %cst_28 {dimension_numbers = #tpu.dot_dimension_numbers<[1], [0], [0], [1], [0, 0, 1, 1], [], []>} : vector<256x128xbf16>, vector<128x32xbf16>, vector<256x32xf32> -> vector<256x32xf32>
    %c0_29 = arith.constant 0 : index
    %c0_30 = arith.constant 0 : index
    %60 = vector.load %arg10[%c0_29, %c0_30] : memref<1x32xf32, #tpu.memory_space<vmem>>, vector<1x32xf32>
    %61 = vector.broadcast %60 : vector<1x32xf32> to vector<256x32xf32>
    %62 = arith.addf %59, %61 : vector<256x32xf32>
    %63 = arith.addf %1, %62 : vector<256x32xf32>
    %c0_31 = arith.constant 0 : index
    %c0_32 = arith.constant 0 : index
    %64 = vector.load %arg11[%c0_31, %c0_32] : memref<1x32xf32, #tpu.memory_space<vmem>>, vector<1x32xf32>
    %c0_33 = arith.constant 0 : index
    %c0_34 = arith.constant 0 : index
    %65 = vector.load %arg12[%c0_33, %c0_34] : memref<1x32xf32, #tpu.memory_space<vmem>>, vector<1x32xf32>
    %cst_35 = arith.constant dense<0.000000e+00> : vector<256xf32>
    %66 = vector.multi_reduction <add>, %63, %cst_35 [1] : vector<256x32xf32> to vector<256xf32>
    %67 = vector.shape_cast %66 : vector<256xf32> to vector<256x1xf32>
    %cst_36 = arith.constant 3.200000e+01 : f32
    %68 = vector.broadcast %cst_36 : f32 to vector<256x1xf32>
    %69 = arith.divf %67, %68 : vector<256x1xf32>
    %70 = vector.broadcast %69 : vector<256x1xf32> to vector<256x32xf32>
    %71 = arith.subf %63, %70 : vector<256x32xf32>
    %72 = vector.broadcast %69 : vector<256x1xf32> to vector<256x32xf32>
    %73 = arith.subf %63, %72 : vector<256x32xf32>
    %74 = arith.mulf %71, %73 : vector<256x32xf32>
    %cst_37 = arith.constant dense<0.000000e+00> : vector<256xf32>
    %75 = vector.multi_reduction <add>, %74, %cst_37 [1] : vector<256x32xf32> to vector<256xf32>
    %76 = vector.shape_cast %75 : vector<256xf32> to vector<256x1xf32>
    %cst_38 = arith.constant 3.200000e+01 : f32
    %77 = vector.broadcast %cst_38 : f32 to vector<256x1xf32>
    %78 = arith.divf %76, %77 : vector<256x1xf32>
    %79 = vector.broadcast %69 : vector<256x1xf32> to vector<256x32xf32>
    %80 = arith.subf %63, %79 : vector<256x32xf32>
    %cst_39 = arith.constant 9.99999974E-6 : f32
    %81 = vector.broadcast %cst_39 : f32 to vector<256x1xf32>
    %82 = arith.addf %78, %81 : vector<256x1xf32>
    %83 = math.rsqrt %82 : vector<256x1xf32>
    %84 = vector.broadcast %83 : vector<256x1xf32> to vector<256x32xf32>
    %85 = arith.mulf %80, %84 : vector<256x32xf32>
    %86 = vector.broadcast %64 : vector<1x32xf32> to vector<256x32xf32>
    %87 = arith.mulf %85, %86 : vector<256x32xf32>
    %88 = vector.broadcast %65 : vector<1x32xf32> to vector<256x32xf32>
    %89 = arith.addf %87, %88 : vector<256x32xf32>
    %90 = arith.truncf %89 : vector<256x32xf32> to vector<256x32xbf16>
    %c0_40 = arith.constant 0 : index
    %c0_41 = arith.constant 0 : index
    %91 = vector.load %arg13[%c0_40, %c0_41] : memref<32x128xbf16, #tpu.memory_space<vmem>>, vector<32x128xbf16>
    %cst_42 = arith.constant dense<0.000000e+00> : vector<256x128xf32>
    %92 = tpu.matmul %90, %91, %cst_42 {dimension_numbers = #tpu.dot_dimension_numbers<[1], [0], [0], [1], [0, 0, 1, 1], [], []>} : vector<256x32xbf16>, vector<32x128xbf16>, vector<256x128xf32> -> vector<256x128xf32>
    %c0_43 = arith.constant 0 : index
    %c0_44 = arith.constant 0 : index
    %93 = vector.load %arg14[%c0_43, %c0_44] : memref<1x128xf32, #tpu.memory_space<vmem>>, vector<1x128xf32>
    %94 = vector.broadcast %93 : vector<1x128xf32> to vector<256x128xf32>
    %95 = arith.addf %92, %94 : vector<256x128xf32>
    %cst_45 = arith.constant 5.000000e-01 : f32
    %96 = vector.broadcast %cst_45 : f32 to vector<256x128xf32>
    %97 = arith.mulf %96, %95 : vector<256x128xf32>
    %cst_46 = arith.constant 4.471500e-02 : f32
    %98 = vector.broadcast %cst_46 : f32 to vector<256x128xf32>
    %99 = arith.mulf %98, %95 : vector<256x128xf32>
    %100 = arith.mulf %99, %95 : vector<256x128xf32>
    %101 = arith.mulf %100, %95 : vector<256x128xf32>
    %102 = arith.addf %95, %101 : vector<256x128xf32>
    %cst_47 = arith.constant 0.797884583 : f32
    %103 = vector.broadcast %cst_47 : f32 to vector<256x128xf32>
    %104 = arith.mulf %103, %102 : vector<256x128xf32>
    %105 = math.tanh %104 : vector<256x128xf32>
    %cst_48 = arith.constant 1.000000e+00 : f32
    %106 = vector.broadcast %cst_48 : f32 to vector<256x128xf32>
    %107 = arith.addf %106, %105 : vector<256x128xf32>
    %108 = arith.mulf %97, %107 : vector<256x128xf32>
    %109 = arith.truncf %108 : vector<256x128xf32> to vector<256x128xbf16>
    %c0_49 = arith.constant 0 : index
    %c0_50 = arith.constant 0 : index
    %110 = vector.load %arg15[%c0_49, %c0_50] : memref<128x32xbf16, #tpu.memory_space<vmem>>, vector<128x32xbf16>
    %cst_51 = arith.constant dense<0.000000e+00> : vector<256x32xf32>
    %111 = tpu.matmul %109, %110, %cst_51 {dimension_numbers = #tpu.dot_dimension_numbers<[1], [0], [0], [1], [0, 0, 1, 1], [], []>} : vector<256x128xbf16>, vector<128x32xbf16>, vector<256x32xf32> -> vector<256x32xf32>
    %c0_52 = arith.constant 0 : index
    %c0_53 = arith.constant 0 : index
    %112 = vector.load %arg16[%c0_52, %c0_53] : memref<1x32xf32, #tpu.memory_space<vmem>>, vector<1x32xf32>
    %113 = vector.broadcast %112 : vector<1x32xf32> to vector<256x32xf32>
    %114 = arith.addf %111, %113 : vector<256x32xf32>
    %115 = arith.addf %63, %114 : vector<256x32xf32>
    %c0_54 = arith.constant 0 : index
    %c0_55 = arith.constant 0 : index
    %c0_56 = arith.constant 0 : index
    %116 = vector.load %arg17[%c0_54, %c0_55, %c0_56] : memref<1x256x32xf32, #tpu.memory_space<vmem>>, vector<1x256x32xf32>
    %117 = vector.shape_cast %116 : vector<1x256x32xf32> to vector<256x32xf32>
    %118 = vector.shape_cast %115 : vector<256x32xf32> to vector<1x256x32xf32>
    tpu.vector_store %arg17[%c0_54, %c0_55, %c0_56], %118 {strides = array<i32>} : memref<1x256x32xf32, #tpu.memory_space<vmem>>, vector<1x256x32xf32>,
    return
  }
  func.func @transform_0(%arg0: i32, %arg1: i32) -> (i32, i32, i32) {
    %c0_i32 = arith.constant 0 : i32
    %c0_i32_0 = arith.constant 0 : i32
    return %arg0, %arg1, %c0_i32 : i32, i32, i32
  }
  func.func @transform_1(%arg0: i32, %arg1: i32) -> (i32, i32, i32) {
    %c0_i32 = arith.constant 0 : i32
    %c0_i32_0 = arith.constant 0 : i32
    %c0_i32_1 = arith.constant 0 : i32
    return %arg0, %c0_i32, %c0_i32_0 : i32, i32, i32
  }
  func.func @transform_2(%arg0: i32, %arg1: i32) -> (i32, i32, i32) {
    %c0_i32 = arith.constant 0 : i32
    %c0_i32_0 = arith.constant 0 : i32
    %c0_i32_1 = arith.constant 0 : i32
    return %arg0, %c0_i32, %c0_i32_0 : i32, i32, i32
  }
  func.func @transform_3(%arg0: i32, %arg1: i32) -> (i32, i32) {
    %c0_i32 = arith.constant 0 : i32
    %c0_i32_0 = arith.constant 0 : i32
    %c0_i32_1 = arith.constant 0 : i32
    return %c0_i32, %c0_i32_0 : i32, i32
  }
  func.func @transform_4(%arg0: i32, %arg1: i32) -> (i32, i32) {
    %c0_i32 = arith.constant 0 : i32
    %c0_i32_0 = arith.constant 0 : i32
    %c0_i32_1 = arith.constant 0 : i32
    return %c0_i32, %c0_i32_0 : i32, i32
  }
  func.func @transform_5(%arg0: i32, %arg1: i32) -> (i32, i32) {
    %c0_i32 = arith.constant 0 : i32
    %c0_i32_0 = arith.constant 0 : i32
    %c0_i32_1 = arith.constant 0 : i32
    return %c0_i32, %c0_i32_0 : i32, i32
  }
  func.func @transform_6(%arg0: i32, %arg1: i32) -> (i32, i32) {
    %c0_i32 = arith.constant 0 : i32
    %c0_i32_0 = arith.constant 0 : i32
    %c0_i32_1 = arith.constant 0 : i32
    return %c0_i32, %c0_i32_0 : i32, i32
  }
  func.func @transform_7(%arg0: i32, %arg1: i32) -> (i32, i32) {
    %c0_i32 = arith.constant 0 : i32
    %c0_i32_0 = arith.constant 0 : i32
    %c0_i32_1 = arith.constant 0 : i32
    return %c0_i32, %c0_i32_0 : i32, i32
  }
  func.func @transform_8(%arg0: i32, %arg1: i32) -> (i32, i32) {
    %c0_i32 = arith.constant 0 : i32
    %c0_i32_0 = arith.constant 0 : i32
    %c0_i32_1 = arith.constant 0 : i32
    return %c0_i32, %c0_i32_0 : i32, i32
  }
  func.func @transform_9(%arg0: i32, %arg1: i32) -> (i32, i32) {
    %c0_i32 = arith.constant 0 : i32
    %c0_i32_0 = arith.constant 0 : i32
    %c0_i32_1 = arith.constant 0 : i32
    return %c0_i32, %c0_i32_0 : i32, i32
  }
  func.func @transform_10(%arg0: i32, %arg1: i32) -> (i32, i32) {
    %c0_i32 = arith.constant 0 : i32
    %c0_i32_0 = arith.constant 0 : i32
    %c0_i32_1 = arith.constant 0 : i32
    return %c0_i32, %c0_i32_0 : i32, i32
  }
  func.func @transform_11(%arg0: i32, %arg1: i32) -> (i32, i32) {
    %c0_i32 = arith.constant 0 : i32
    %c0_i32_0 = arith.constant 0 : i32
    %c0_i32_1 = arith.constant 0 : i32
    return %c0_i32, %c0_i32_0 : i32, i32
  }
  func.func @transform_12(%arg0: i32, %arg1: i32) -> (i32, i32) {
    %c0_i32 = arith.constant 0 : i32
    %c0_i32_0 = arith.constant 0 : i32
    %c0_i32_1 = arith.constant 0 : i32
    return %c0_i32, %c0_i32_0 : i32, i32
  }
  func.func @transform_13(%arg0: i32, %arg1: i32) -> (i32, i32) {
    %c0_i32 = arith.constant 0 : i32
    %c0_i32_0 = arith.constant 0 : i32
    %c0_i32_1 = arith.constant 0 : i32
    return %c0_i32, %c0_i32_0 : i32, i32
  }
  func.func @transform_14(%arg0: i32, %arg1: i32) -> (i32, i32) {
    %c0_i32 = arith.constant 0 : i32
    %c0_i32_0 = arith.constant 0 : i32
    %c0_i32_1 = arith.constant 0 : i32
    return %c0_i32, %c0_i32_0 : i32, i32
  }
  func.func @transform_15(%arg0: i32, %arg1: i32) -> (i32, i32, i32) {
    %c0_i32 = arith.constant 0 : i32
    %c0_i32_0 = arith.constant 0 : i32
    return %arg0, %arg1, %c0_i32 : i32, i32, i32
  }
}

</mosaic_0001>

<bundles_post_ra>
// kernel: _lambda_.1
= control target key start
LH: loop header
LB: loop body
LE: loop exit
PB: predicated region body
PF: predicated region fallthrough
CT: control target
= control target key end

     0   :  { %s8445_s0 = inlined_call_operand.hbm [shape: f32[2,256,32], index: 0, kind: input, shape index: {}]   ;;  %s8446_s1 = inlined_call_operand.hbm [shape: f32[2,3,128], index: 1, kind: input, shape index: {}]   ;;  %s8447_s2 = inlined_call_operand.hbm [shape: bf16[2,128,32], index: 2, kind: input, shape index: {}]   ;;  %s8448_s3 = inlined_call_operand.hbm [shape: f32[1,32], index: 3, kind: input, shape index: {}]   ;;  %s8449_s4 = inlined_call_operand.hbm [shape: f32[1,32], index: 4, kind: input, shape index: {}]   ;;  %s8450_s5 = inlined_call_operand.hbm [shape: bf16[32,8], index: 5, kind: input, shape index: {}]   ;;  %s8451_s6 = inlined_call_operand.hbm [shape: bf16[8,128], index: 6, kind: input, shape index: {}]   ;;  %s8452_s7 = inlined_call_operand.hbm [shape: bf16[128,8], index: 7, kind: input, shape index: {}]   ;;  %s8453_s8 = inlined_call_operand.hbm [shape: f32[1,32], index: 8, kind: input, shape index: {}]   ;;  %s8454_s9 = inlined_call_operand.hbm [shape: f32[1,32], index: 9, kind: input, shape index: {}]   ;;  %s8455_s10 = inlined_call_operand.hbm [shape: f32[1,32], index: 10, kind: input, shape index: {}]   ;;  %s8456_s11 = inlined_call_operand.hbm [shape: bf16[32,128], index: 11, kind: input, shape index: {}]   ;;  %s8457_s12 = inlined_call_operand.hbm [shape: f32[1,128], index: 12, kind: input, shape index: {}]   ;;  %s8458_s13 = inlined_call_operand.hbm [shape: bf16[128,32], index: 13, kind: input, shape index: {}]   ;;  %s8459_s14 = inlined_call_operand.hbm [shape: f32[1,32], index: 14, kind: input, shape index: {}]   ;;  %s8460_s15 = inlined_call_operand.hbm [shape: f32[2,256,32], index: 15, kind: output, shape index: {}]  }
   0x1   :  { %8502 = sst [smem:[#allocation57_spill]] %s8445_s0 }
   0x2   :  { %8503 = sst [smem:[#allocation58_spill]] %s8446_s1 }
   0x3   :  { %8504 = sst [smem:[#allocation59_spill]] %s8447_s2 }
   0x4   :  { %8505 = sst [smem:[#allocation60_spill]] %s8448_s3 }
   0x5   :  { %8506 = sst [smem:[#allocation61_spill]] %s8449_s4 }
   0x6   :  { %8507 = sst [smem:[#allocation62_spill]] %s8450_s5 }
   0x7   :  { %8508 = sst [smem:[#allocation63_spill]] %s8451_s6 }
   0x8   :  { %8509 = sst [smem:[#allocation64_spill]] %s8452_s7 }
   0x9   :  { %8510 = sst [smem:[#allocation65_spill]] %s8453_s8 }
   0xa   :  { %8511 = sst [smem:[#allocation66_spill]] %s8454_s9 }
   0xb   :  { %8512 = sst [smem:[#allocation67_spill]] %s8455_s10 }
   0xc   :  { %8513 = sst [smem:[#allocation68_spill]] %s8456_s11 }
   0xd   :  { %8514 = sst [smem:[#allocation69_spill]] %s8457_s12 }
   0xe   :  { %8515 = sst [smem:[#allocation70_spill]] %s8458_s13 }
   0xf   :  { %8516 = sst [smem:[#allocation71_spill]] %s8459_s14 }
  0x10   :  { %8517 = sst [smem:[#allocation72_spill]] %s8460_s15 }
  0x11   :  { %20 = vsyncpa [#allocation3], 0 }
  0x12   :  { %22 = vsyncpa [#allocation3 + $0x1], 0 }
  0x13   :  { %23 = vsyncpa [#allocation6], 0 }
  0x14   :  { %25 = vsyncpa [#allocation6 + $0x1], 0 }
  0x15   :  { %26 = vsyncpa [#allocation9], 0 }
  0x16   :  { %27 = vsyncpa [#allocation12], 0 }
  0x17   :  { %28 = vsyncpa [#allocation15], 0 }
  0x18   :  { %29 = vsyncpa [#allocation18], 0 }
  0x19   :  { %30 = vsyncpa [#allocation21], 0 }
  0x1a   :  { %31 = vsyncpa [#allocation24], 0 }
  0x1b   :  { %32 = vsyncpa [#allocation4], 0 }
  0x1c   :  { %34 = vsyncpa [#allocation4 + $0x1], 0  ;;  %s6213_s18 = smov 0   ;;  %s6215_s19 = smov 0  }
  0x1d   :  { %s6217_s20 = smov 0   ;;  %s6219_s21 = smov 0  }
  0x1e   :  { %s6221_s22 = smov 0   ;;  %s6223_s23 = smov 0  }
  0x1f LB: > { %8518 = sst [smem:[#allocation36_spill]] %s6101_s21  ;;  %s6244_s24 = sadd.s32 4294967295, %s6109_s23   ;;  %s6109_s23 = sphi %s6223_s23, %s40_s23   ;;  %s6105_s22 = sphi %s6221_s22, %s8614_s22   ;;  %s6101_s21 = sphi %s6219_s21, %s8613_s21   ;;  %s6097_s20 = sphi %s6217_s20, %s8612_s20   ;;  %s6093_s19 = sphi %s6215_s19, %s8611_s19   ;;  %s6089_s18 = sphi %s6213_s18, %s8610_s18  }
  0x20   : > { %p4417_p0 = scmp.ge.s32.totalorder %s6109_s23, 1  ;;  %p8465_p1 = scmp.eq.s32.totalorder %s6244_s24, 0 }
  0x21   : > { %p417_p2 = scmp.lt.s32.totalorder %s6109_s23, 3  ;;  %s6111_s26 = smov [#allocation8]  }
  0x22   : > { %s430_s27 = sshll.u32 %s6111_s26, 4  ;;  %s6112_s28 = smov [#allocation11]   ;;  %s431_s27 = int_to_ptr.vmem [resolvable:$true] %s430_s27 }
  0x23   : > { %p6249_p3 = pnand %p4417_p0, %p417_p2  ;;  %s451_s29 = sshll.u32 %s6112_s28, 4  ;;  %s6262_s29 = int_to_ptr.vmem [resolvable:$true] %s451_s29 }
  0x24   : > { %s6113_s16 = smov [#allocation14]   ;;  %s8522_s3 = sld [smem:[#allocation60_spill]] }
  0x25   : > { %s8519_s25 = scalar_select %p6249_p3, 1, 0 }
  0x26   : > { %p5050_p5 = pneg %p6249_p3  ;;  %s6264_s17 = sshll.u32 %s6113_s16, 4  ;;  %s476_s17 = int_to_ptr.vmem [resolvable:$true] %s6264_s17 }
  0x27   : > { %8520 = sst [smem:[#allocation37_spill]] %s8519_s25 }
  0x28   : > { %p6258_p6 = pnand %p5050_p5, %p8465_p1 }
  0x2a   : > { %s8521_s30 = scalar_select %p6258_p6, 1, 0 }
  0x2b   : > { %s5573_s26 = scalar_lea.hbm %s8522_s3, 16  ;;  %p6274_p8 = pneg %p6258_p6 }
  0x2c   : > { %p5574_p7 = scmp.ne.s32.totalorder %s8522_s3, %s5573_s26  ;;  %p5580_p11 = scmp.lt.u32.totalorder %s5573_s26, %s8522_s3 }
  0x2d   : > { %s8523_s28 = scalar_select %p6274_p8, 1, 0 }
  0x2e   : > { %p5576_p9 = pnand %p6274_p8, %p5574_p7 }
  0x30   : > { %p5577_p10 = pneg %p5576_p9 }
  0x32   : > { %p5582_p12 = pnand %p5580_p11, %p5577_p10 }
  0x34   : > { %5585 = shalt.err (!%p5582_p12)
}
  0x35   : > { %s5586_s15 = scalar_lea.vmem %s431_s27, 16  ;;  %s5593_s2 = scalar_lea.vmem %s431_s27, 32 }
  0x36   : > { %p5587_p13 = scmp.ne.s32.totalorder %s431_s27, %s5586_s15  ;;  %p5594_p5 = scmp.lt.s32.totalorder %s431_s27, %s431_s27 }
  0x37   : > { %p5595_p4 = scmp.lt.s32.totalorder %s5593_s2, %s5586_s15 }
  0x38   : > { %p5589_p0 = pnand %p5587_p13, %p6274_p8 }
  0x39   : > { %p5596_p1 = por %p5595_p4, %p5594_p5 }
  0x3a   : > { %p5590_p2 = pneg %p5589_p0 }
  0x3c   : > { %p5597_p3 = pnand %p5596_p1, %p5590_p2 }
  0x3e   : > { %5600 = shalt.err (!%p5597_p3)
}
  0x3f   : > { %5053 = dma.hbm_to_vmem [thread:$0]  (!%p6258_p6), %s8522_s3, 16, %s431_s27, [#allocation9]  }
  0x40   : > { %s8524_s5 = sld [smem:[#allocation62_spill]] }
  0x46   : > { %s5601_s16 = scalar_lea.hbm %s8524_s5, 256 }
  0x47   : > { %p5602_p7 = scmp.ne.s32.totalorder %s8524_s5, %s5601_s16  ;;  %p5608_p1 = scmp.lt.u32.totalorder %s5601_s16, %s8524_s5 }
  0x49   : > { %p5604_p9 = pnand %p5602_p7, %p6274_p8 }
  0x4b   : > { %p5605_p4 = pneg %p5604_p9 }
  0x4d   : > { %p5610_p3 = pnand %p5608_p1, %p5605_p4 }
  0x4f   : > { %5613 = shalt.err (!%p5610_p3)
}
  0x50   : > { %s5614_s27 = scalar_lea.vmem %s6262_s29, 256  ;;  %p5622_p13 = scmp.lt.s32.totalorder %s6262_s29, %s6262_s29 }
  0x51   : > { %p5615_p10 = scmp.ne.s32.totalorder %s6262_s29, %s5614_s27  ;;  %p5623_p0 = scmp.lt.s32.totalorder %s5614_s27, %s5614_s27 }
  0x53   : > { %p5617_p11 = pnand %p5615_p10, %p6274_p8  ;;  %p5624_p2 = por %p5623_p0, %p5622_p13 }
  0x55   : > { %p5618_p12 = pneg %p5617_p11 }
  0x57   : > { %p5625_p5 = pnand %p5624_p2, %p5618_p12 }
  0x59   : > { %5628 = shalt.err (!%p5625_p5)
}
  0x5a   : > { %s8470_s12 = smov 64   ;;  %s8471_s14 = smov 4  }
  0x5b   : > { %5059 = dma.hbm_to_vmem [thread:$0]  (!%p6258_p6), %s8524_s5, 256, %s6262_s29, [#allocation12], %s8470_s12, %s8470_s12, %s8471_s14  }
  0x5c   : > { %s8525_s7 = sld [smem:[#allocation64_spill]] }
  0x62   : > { %s5629_s16 = scalar_lea.hbm %s8525_s7, 1024 }
  0x63   : > { %p5630_p7 = scmp.ne.s32.totalorder %s8525_s7, %s5629_s16  ;;  %p5636_p1 = scmp.lt.u32.totalorder %s5629_s16, %s8525_s7 }
  0x65   : > { %p5632_p9 = pnand %p5630_p7, %p6274_p8 }
  0x67   : > { %p5633_p4 = pneg %p5632_p9 }
  0x69   : > { %p5638_p3 = pnand %p5636_p1, %p5633_p4 }
  0x6b   : > { %5641 = shalt.err (!%p5638_p3)
}
  0x6c   : > { %s5642_s21 = scalar_lea.vmem %s476_s17, 1024  ;;  %p5650_p13 = scmp.lt.s32.totalorder %s476_s17, %s476_s17 }
  0x6d   : > { %p5643_p10 = scmp.ne.s32.totalorder %s476_s17, %s5642_s21  ;;  %p5651_p0 = scmp.lt.s32.totalorder %s5642_s21, %s5642_s21 }
  0x6f   : > { %p5645_p11 = pnand %p5643_p10, %p6274_p8  ;;  %p5652_p2 = por %p5651_p0, %p5650_p13 }
  0x71   : > { %p5646_p12 = pneg %p5645_p11 }
  0x73   : > { %p5653_p5 = pnand %p5652_p2, %p5646_p12 }
  0x75   : > { %5656 = shalt.err (!%p5653_p5)
}
  0x76   : > { %5065 = dma.hbm_to_vmem [thread:$0]  (!%p6258_p6), %s8525_s7, 1024, %s476_s17, [#allocation15], %s8470_s12, %s8470_s12, %s8471_s14  }
  0x77   : > { %s6116_s25 = smov [#allocation17]   ;;  %s6117_s26 = smov [#allocation20]  }
  0x78   : > { %s500_s0 = sshll.u32 %s6116_s25, 4  ;;  %s521_s16 = sshll.u32 %s6117_s26, 4  ;;  %s501_s0 = int_to_ptr.vmem [resolvable:$true] %s500_s0  ;;  %s522_s16 = int_to_ptr.vmem [resolvable:$true] %s521_s16 }
  0x79   : > { %s8526_s9 = sld [smem:[#allocation66_spill]] }
  0x7f   : > { %s5657_s27 = scalar_lea.hbm %s8526_s9, 16 }
  0x80   : > { %p5658_p7 = scmp.ne.s32.totalorder %s8526_s9, %s5657_s27  ;;  %p5664_p1 = scmp.lt.u32.totalorder %s5657_s27, %s8526_s9 }
  0x82   : > { %p5660_p9 = pnand %p5658_p7, %p6274_p8 }
  0x84   : > { %p5661_p4 = pneg %p5660_p9 }
  0x86   : > { %p5666_p3 = pnand %p5664_p1, %p5661_p4 }
  0x88   : > { %5669 = shalt.err (!%p5666_p3)
}
  0x89   : > { %s5670_s17 = scalar_lea.vmem %s501_s0, 16  ;;  %s5677_s29 = scalar_lea.vmem %s501_s0, 32 }
  0x8a   : > { %p5671_p10 = scmp.ne.s32.totalorder %s501_s0, %s5670_s17  ;;  %p5678_p13 = scmp.lt.s32.totalorder %s501_s0, %s501_s0 }
  0x8b   : > { %p5679_p0 = scmp.lt.s32.totalorder %s5677_s29, %s5670_s17 }
  0x8c   : > { %p5673_p11 = pnand %p5671_p10, %p6274_p8 }
  0x8d   : > { %p5680_p2 = por %p5679_p0, %p5678_p13 }
  0x8e   : > { %p5674_p12 = pneg %p5673_p11 }
  0x90   : > { %p5681_p5 = pnand %p5680_p2, %p5674_p12 }
  0x92   : > { %5684 = shalt.err (!%p5681_p5)
}
  0x93   : > { %5071 = dma.hbm_to_vmem [thread:$0]  (!%p6258_p6), %s8526_s9, 16, %s501_s0, [#allocation18]  }
  0x94   : > { %s8527_s11 = sld [smem:[#allocation68_spill]] }
  0x9a   : > { %s5685_s15 = scalar_lea.hbm %s8527_s11, 256 }
  0x9b   : > { %p5686_p7 = scmp.ne.s32.totalorder %s8527_s11, %s5685_s15  ;;  %p5692_p1 = scmp.lt.u32.totalorder %s5685_s15, %s8527_s11 }
  0x9d   : > { %p5688_p9 = pnand %p5686_p7, %p6274_p8 }
  0x9f   : > { %p5689_p4 = pneg %p5688_p9 }
  0xa1   : > { %p5694_p3 = pnand %p5692_p1, %p5689_p4 }
  0xa3   : > { %5697 = shalt.err (!%p5694_p3)
}
  0xa4   : > { %s5698_s17 = scalar_lea.vmem %s522_s16, 256  ;;  %p5706_p13 = scmp.lt.s32.totalorder %s522_s16, %s522_s16 }
  0xa5   : > { %p5699_p10 = scmp.ne.s32.totalorder %s522_s16, %s5698_s17  ;;  %p5707_p0 = scmp.lt.s32.totalorder %s5698_s17, %s5698_s17 }
  0xa7   : > { %p5701_p11 = pnand %p5699_p10, %p6274_p8  ;;  %p5708_p2 = por %p5707_p0, %p5706_p13 }
  0xa9   : > { %p5702_p12 = pneg %p5701_p11 }
  0xab   : > { %p5709_p5 = pnand %p5708_p2, %p5702_p12 }
  0xad   : > { %5712 = shalt.err (!%p5709_p5)
}
  0xae   : > { %5077 = dma.hbm_to_vmem [thread:$0]  (!%p6258_p6), %s8527_s11, 256, %s522_s16, [#allocation21], %s8470_s12, %s8470_s12, %s8471_s14  }
  0xaf   : > { %s6118_s5 = smov [#allocation23]   ;;  %s8528_s13 = sld [smem:[#allocation70_spill]] }
  0xb0   : > { %s545_s25 = sshll.u32 %s6118_s5, 4  ;;  %s546_s25 = int_to_ptr.vmem [resolvable:$true] %s545_s25 }
  0xb5   : > { %s5713_s15 = scalar_lea.hbm %s8528_s13, 1024 }
  0xb6   : > { %p5714_p7 = scmp.ne.s32.totalorder %s8528_s13, %s5713_s15  ;;  %p5720_p1 = scmp.lt.u32.totalorder %s5713_s15, %s8528_s13 }
  0xb8   : > { %p5716_p9 = pnand %p5714_p7, %p6274_p8 }
  0xba   : > { %p5717_p4 = pneg %p5716_p9 }
  0xbc   : > { %p5722_p3 = pnand %p5720_p1, %p5717_p4 }
  0xbe   : > { %5725 = shalt.err (!%p5722_p3)
}
  0xbf   : > { %s5726_s16 = scalar_lea.vmem %s546_s25, 1024  ;;  %p5734_p13 = scmp.lt.s32.totalorder %s546_s25, %s546_s25 }
  0xc0   : > { %p5727_p10 = scmp.ne.s32.totalorder %s546_s25, %s5726_s16  ;;  %p5735_p0 = scmp.lt.s32.totalorder %s5726_s16, %s5726_s16 }
  0xc2   : > { %p5729_p11 = pnand %p5727_p10, %p6274_p8  ;;  %p5736_p2 = por %p5735_p0, %p5734_p13 }
  0xc4   : > { %p5730_p12 = pneg %p5729_p11 }
  0xc6   : > { %p5737_p5 = pnand %p5736_p2, %p5730_p12 }
  0xc8   : > { %5740 = shalt.err (!%p5737_p5)
}
  0xc9   : > { %5083 = dma.hbm_to_vmem [thread:$0]  (!%p6258_p6), %s8528_s13, 1024, %s546_s25, [#allocation24], %s8470_s12, %s8470_s12, %s8471_s14  }
  0xca   : > { %s4416_s29 = sadd.s32 4294967294, %s6109_s23   ;;  %s52_s5 = sadd.s32 1, %s6105_s22 }
  0xcb   : > { %p54_p7 = scmp.ge.s32.totalorder %s52_s5, 2  ;;  %s61_s10 = sadd.s32 1, %s6097_s20 }
  0xcc   : > { %p68_p9 = scmp.ne.s32.totalorder %s6097_s20, %s6093_s19  ;;  %p69_p4 = scmp.eq.s32.totalorder %s6109_s23, 0 }
  0xcd   : > { %s8616_s5 = smov (%p54_p7, %s52_s5), 0  ;;  %p74_p3 = scmp.ne.s32.totalorder %s6093_s19, %s6089_s18 }
  0xce   : > { %8529 = sst [smem:[#allocation38_spill]] %s8616_s5  ;;  %p6406_p1 = por %p69_p4, %p68_p9 }
  0xcf   : > { %s56_s25 = ssub.s32 %s6105_s22, %s8616_s5  ;;  %p404_p10 = scmp.eq.s32.totalorder %s6244_s24, 1 }
  0xd0   : > { %p59_p11 = scmp.eq.s32.totalorder %s56_s25, 0  ;;  %p8531_p12 = scmp.eq.s32.totalorder %s6244_s24, 0 }
  0xd1   : > { %p6421_p0 = por %p404_p10, %p68_p9  ;;  %p410_p2 = scmp.eq.s32.totalorder %s4416_s29, 1 }
  0xd2   : > { %p6417_p13 = por %p8531_p12, %p74_p3  ;;  %p5113_p7 = scmp.lt.s32.totalorder %s6109_s23, 2 }
  0xd3   : > { %s8533_s2 = scalar_select %p6421_p0, 1, 0 }
  0xd4   : > { %s8532_s15 = scalar_select %p6417_p13, 1, 0 }
  0xd5   : > { %s6426_s27 = scalar_select %p59_p11, %s6097_s20, %s61_s10  }
  0xd6   : > { %p6428_p5 = por %p410_p2, %p74_p3  ;;  %s6434_s3 = sand.u32 1, %s6097_s20  }
  0xd7   : > { %s593_s16 = sand.u32 1, %s6109_s23   ;;  %p6439_p4 = pnand %p5113_p7, %p6406_p1 }
  0xd8   : > { %s8534_s21 = scalar_select %p6428_p5, 1, 0 }
  0xd9   : > { %s8535_s17 = scalar_select %p6439_p4, 1, 0 }
  0xda   : > { %s4434_s0 = sshll.u32 %s6434_s3, 2  ;;  %s4435_s29 = sshll.u32 %s6105_s22, 6 }
  0xdb   : > { %s8536_s1 = sld [smem:[#allocation58_spill]]  ;;  %s597_s14 = scalar_lea.vmem [#allocation5], %s4434_s0 }
  0xdc   : > { %s604_s7 = sshll.u32 %s597_s14, 4  ;;  %s6453_s9 = scalar_lea.sflag [#allocation6], %s593_s16  ;;  %s6450_s7 = int_to_ptr.vmem [resolvable:$true] %s604_s7 }
  0xdd   : > { %p6459_p1 = pneg %p6439_p4 }
  0xdf   : > { %s8537_s13 = scalar_select %p6459_p1, 1, 0 }
  0xe1   : > { %s6448_s12 = scalar_lea.hbm %s8536_s1, %s4435_s29  ;;  %s5746_s14 = scalar_lea.hbm %s8536_s1, 128 }
  0xe2   : > { %s5741_s11 = scalar_lea.hbm %s6448_s12, 64  ;;  %p5747_p11 = scmp.lt.u32.totalorder %s6448_s12, %s8536_s1 }
  0xe3   : > { %p5742_p9 = scmp.ne.s32.totalorder %s6448_s12, %s5741_s11  ;;  %p5748_p12 = scmp.lt.u32.totalorder %s5746_s14, %s5741_s11 }
  0xe4   : > { %p5750_p7 = scmp.lt.u32.totalorder %s5741_s11, %s6448_s12 }
  0xe5   : > { %p5744_p3 = pnand %p6459_p1, %p5742_p9  ;;  %p5749_p2 = por %p5748_p12, %p5747_p11 }
  0xe7   : > { %p5745_p10 = pneg %p5744_p3  ;;  %p5751_p5 = por %p5750_p7, %p5749_p2 }
  0xe9   : > { %p5752_p0 = pnand %p5751_p5, %p5745_p10 }
  0xeb   : > { %5755 = shalt.err (!%p5752_p0)
}
  0xec   : > { %s5756_s16 = scalar_lea.vmem %s6450_s7, 64  ;;  %s6119_s29 = smov [#allocation5]  }
  0xed   : > { %p5757_p9 = scmp.ne.s32.totalorder %s6450_s7, %s5756_s16  ;;  %s5761_s10 = sshll.u32 %s6119_s29, 4  ;;  %s5762_s10 = int_to_ptr.vmem [resolvable:$false] %s5761_s10 }
  0xee   : > { %s5763_s0 = scalar_lea.vmem %s5762_s10, 128  ;;  %p5764_p6 = scmp.lt.s32.totalorder %s6450_s7, %s5762_s10 }
  0xef   : > { %p5759_p3 = pnand %p5757_p9, %p6459_p1  ;;  %p5765_p8 = scmp.lt.s32.totalorder %s5763_s0, %s5756_s16 }
  0xf1   : > { %p5760_p13 = pneg %p5759_p3  ;;  %p5766_p11 = por %p5765_p8, %p5764_p6 }
  0xf3   : > { %p5767_p12 = pnand %p5766_p11, %p5760_p13 }
  0xf5   : > { %5770 = shalt.err (!%p5767_p12)
}
  0xf6   : > { %5093 = dma.hbm_to_vmem [thread:$0]  (!%p6439_p4), %s6448_s12, 64, %s6450_s7, %s6453_s9  }
  0xf7   : > { %s6120_s11 = smov [#allocation10]   ;;  %s6121_s25 = smov [#allocation13]  }
  0xf8   : > { %s441_s14 = sshll.u32 %s6120_s11, 4  ;;  %s465_s26 = sshll.u32 %s6121_s25, 4  ;;  %s442_s14 = int_to_ptr.vmem [resolvable:$true] %s441_s14  ;;  %s6483_s26 = int_to_ptr.vmem [resolvable:$true] %s465_s26 }
  0xf9   : > { %s8538_s4 = sld [smem:[#allocation61_spill]]  ;;  %p8539_p8 = scmp.ne.s32.totalorder %s8523_s28, 0 }
  0xff   : > { %s5771_s16 = scalar_lea.hbm %s8538_s4, 16 }
 0x100   : > { %p5772_p6 = scmp.ne.s32.totalorder %s8538_s4, %s5771_s16  ;;  %p5778_p5 = scmp.lt.u32.totalorder %s5771_s16, %s8538_s4 }
 0x102   : > { %p5774_p13 = pnand %p5772_p6, %p8539_p8 }
 0x104   : > { %p5775_p0 = pneg %p5774_p13 }
 0x106   : > { %p5780_p10 = pnand %p5778_p5, %p5775_p0 }
 0x108   : > { %5783 = shalt.err (!%p5780_p10)
}
 0x109   : > { %s5784_s12 = scalar_lea.vmem %s442_s14, 16  ;;  %s5791_s11 = scalar_lea.vmem %s442_s14, 32 }
 0x10a   : > { %p5785_p2 = scmp.ne.s32.totalorder %s442_s14, %s5784_s12  ;;  %p5792_p3 = scmp.lt.s32.totalorder %s442_s14, %s442_s14 }
 0x10b   : > { %p5793_p11 = scmp.lt.s32.totalorder %s5791_s11, %s5784_s12 }
 0x10c   : > { %p5787_p7 = pnand %p5785_p2, %p8539_p8 }
 0x10d   : > { %p5794_p12 = por %p5793_p11, %p5792_p3 }
 0x10e   : > { %p5788_p9 = pneg %p5787_p7 }
 0x110   : > { %p5795_p4 = pnand %p5794_p12, %p5788_p9 }
 0x112   : > { %5798 = shalt.err (!%p5795_p4)
}
 0x113   : > { %p8540_p6 = scmp.ne.s32.totalorder %s8521_s30, 0  ;;  %s8541_s6 = sld [smem:[#allocation63_spill]] }
 0x115   : > { %5056 = dma.hbm_to_vmem [thread:$0]  (!%p8540_p6), %s8538_s4, 16, %s442_s14, [#allocation9]  }
 0x119   : > { %s5799_s10 = scalar_lea.hbm %s8541_s6, 64 }
 0x11a   : > { %p5800_p13 = scmp.ne.s32.totalorder %s8541_s6, %s5799_s10  ;;  %p5806_p4 = scmp.lt.u32.totalorder %s5799_s10, %s8541_s6 }
 0x11c   : > { %p5802_p0 = pnand %p5800_p13, %p8539_p8 }
 0x11e   : > { %p5803_p5 = pneg %p5802_p0 }
 0x120   : > { %p5808_p10 = pnand %p5806_p4, %p5803_p5 }
 0x122   : > { %5811 = shalt.err (!%p5808_p10)
}
 0x123   : > { %s5812_s14 = scalar_lea.vmem %s6483_s26, 64  ;;  %p5820_p3 = scmp.lt.s32.totalorder %s6483_s26, %s6483_s26 }
 0x124   : > { %p5813_p2 = scmp.ne.s32.totalorder %s6483_s26, %s5812_s14  ;;  %p5821_p11 = scmp.lt.s32.totalorder %s5812_s14, %s5812_s14 }
 0x126   : > { %p5815_p7 = pnand %p5813_p2, %p8539_p8  ;;  %p5822_p12 = por %p5821_p11, %p5820_p3 }
 0x128   : > { %p5816_p9 = pneg %p5815_p7 }
 0x12a   : > { %p5823_p13 = pnand %p5822_p12, %p5816_p9 }
 0x12c   : > { %5826 = shalt.err (!%p5823_p13)
}
 0x12d   : > { %5062 = dma.hbm_to_vmem [thread:$0]  (!%p8540_p6), %s8541_s6, 64, %s6483_s26, [#allocation12]  }
 0x12e   : > { %s6122_s25 = smov [#allocation16]   ;;  %s6123_s29 = smov [#allocation19]  }
 0x12f   : > { %s489_s5 = sshll.u32 %s6122_s25, 4  ;;  %s511_s10 = sshll.u32 %s6123_s29, 4  ;;  %s490_s5 = int_to_ptr.vmem [resolvable:$true] %s489_s5  ;;  %s6526_s10 = int_to_ptr.vmem [resolvable:$true] %s511_s10 }
 0x130   : > { %s8542_s8 = sld [smem:[#allocation65_spill]] }
 0x136   : > { %s5827_s7 = scalar_lea.hbm %s8542_s8, 16 }
 0x137   : > { %p5828_p0 = scmp.ne.s32.totalorder %s8542_s8, %s5827_s7  ;;  %p5834_p10 = scmp.lt.u32.totalorder %s5827_s7, %s8542_s8 }
 0x139   : > { %p5830_p5 = pnand %p5828_p0, %p8539_p8 }
 0x13b   : > { %p5831_p4 = pneg %p5830_p5 }
 0x13d   : > { %p5836_p2 = pnand %p5834_p10, %p5831_p4 }
 0x13f   : > { %5839 = shalt.err (!%p5836_p2)
}
 0x140   : > { %s5840_s1 = scalar_lea.vmem %s490_s5, 16  ;;  %s5847_s25 = scalar_lea.vmem %s490_s5, 32 }
 0x141   : > { %p5841_p7 = scmp.ne.s32.totalorder %s490_s5, %s5840_s1  ;;  %p5848_p11 = scmp.lt.s32.totalorder %s490_s5, %s490_s5 }
 0x142   : > { %p5849_p12 = scmp.lt.s32.totalorder %s5847_s25, %s5840_s1 }
 0x143   : > { %p5843_p9 = pnand %p5841_p7, %p8539_p8 }
 0x144   : > { %p5850_p13 = por %p5849_p12, %p5848_p11 }
 0x145   : > { %p5844_p3 = pneg %p5843_p9 }
 0x147   : > { %p5851_p1 = pnand %p5850_p13, %p5844_p3 }
 0x149   : > { %5854 = shalt.err (!%p5851_p1)
}
 0x14a   : > { %5068 = dma.hbm_to_vmem [thread:$0]  (!%p8540_p6), %s8542_s8, 16, %s490_s5, [#allocation15]  }
 0x14b   : > { %s8543_s12 = sld [smem:[#allocation67_spill]] }
 0x151   : > { %s5855_s14 = scalar_lea.hbm %s8543_s12, 16 }
 0x152   : > { %p5856_p0 = scmp.ne.s32.totalorder %s8543_s12, %s5855_s14  ;;  %p5862_p1 = scmp.lt.u32.totalorder %s5855_s14, %s8543_s12 }
 0x154   : > { %p5858_p5 = pnand %p5856_p0, %p8539_p8 }
 0x156   : > { %p5859_p4 = pneg %p5858_p5 }
 0x158   : > { %p5864_p10 = pnand %p5862_p1, %p5859_p4 }
 0x15a   : > { %5867 = shalt.err (!%p5864_p10)
}
 0x15b   : > { %s5868_s5 = scalar_lea.vmem %s6526_s10, 16  ;;  %s5875_s29 = scalar_lea.vmem %s6526_s10, 32 }
 0x15c   : > { %p5869_p2 = scmp.ne.s32.totalorder %s6526_s10, %s5868_s5  ;;  %p5876_p3 = scmp.lt.s32.totalorder %s6526_s10, %s6526_s10 }
 0x15d   : > { %p5877_p11 = scmp.lt.s32.totalorder %s5875_s29, %s5868_s5 }
 0x15e   : > { %p5871_p7 = pnand %p5869_p2, %p8539_p8 }
 0x15f   : > { %p5878_p12 = por %p5877_p11, %p5876_p3 }
 0x160   : > { %p5872_p9 = pneg %p5871_p7 }
 0x162   : > { %p5879_p13 = pnand %p5878_p12, %p5872_p9 }
 0x164   : > { %5882 = shalt.err (!%p5879_p13)
}
 0x165   : > { %5074 = dma.hbm_to_vmem [thread:$0]  (!%p8540_p6), %s8543_s12, 16, %s6526_s10, [#allocation18]  }
 0x166   : > { %s6124_s7 = smov [#allocation22]   ;;  %s6125_s11 = smov [#allocation25]  }
 0x167   : > { %s535_s14 = sshll.u32 %s6124_s7, 4  ;;  %s559_s26 = sshll.u32 %s6125_s11, 4  ;;  %s536_s14 = int_to_ptr.vmem [resolvable:$true] %s535_s14  ;;  %s6570_s26 = int_to_ptr.vmem [resolvable:$true] %s559_s26 }
 0x168   : > { %s8544_s5 = sld [smem:[#allocation69_spill]] }
 0x16e   : > { %s5883_s29 = scalar_lea.hbm %s8544_s5, 16 }
 0x16f   : > { %p5884_p0 = scmp.ne.s32.totalorder %s8544_s5, %s5883_s29  ;;  %p5890_p1 = scmp.lt.u32.totalorder %s5883_s29, %s8544_s5 }
 0x171   : > { %p5886_p5 = pnand %p5884_p0, %p8539_p8 }
 0x173   : > { %p5887_p4 = pneg %p5886_p5 }
 0x175   : > { %p5892_p10 = pnand %p5890_p1, %p5887_p4 }
 0x177   : > { %5895 = shalt.err (!%p5892_p10)
}
 0x178   : > { %s5896_s0 = scalar_lea.vmem %s536_s14, 16  ;;  %s5903_s7 = scalar_lea.vmem %s536_s14, 32 }
 0x179   : > { %p5897_p2 = scmp.ne.s32.totalorder %s536_s14, %s5896_s0  ;;  %p5904_p3 = scmp.lt.s32.totalorder %s536_s14, %s536_s14 }
 0x17a   : > { %p5905_p11 = scmp.lt.s32.totalorder %s5903_s7, %s5896_s0 }
 0x17b   : > { %p5899_p7 = pnand %p5897_p2, %p8539_p8 }
 0x17c   : > { %p5906_p12 = por %p5905_p11, %p5904_p3 }
 0x17d   : > { %p5900_p9 = pneg %p5899_p7 }
 0x17f   : > { %p5907_p13 = pnand %p5906_p12, %p5900_p9 }
 0x181   : > { %5910 = shalt.err (!%p5907_p13)
}
 0x182   : > { %5080 = dma.hbm_to_vmem [thread:$0]  (!%p8540_p6), %s8544_s5, 16, %s536_s14, [#allocation21]  }
 0x183   : > { %s8545_s25 = sld [smem:[#allocation71_spill]] }
 0x189   : > { %s5911_s29 = scalar_lea.hbm %s8545_s25, 16 }
 0x18a   : > { %p5912_p0 = scmp.ne.s32.totalorder %s8545_s25, %s5911_s29  ;;  %p5918_p1 = scmp.lt.u32.totalorder %s5911_s29, %s8545_s25 }
 0x18c   : > { %p5914_p5 = pnand %p5912_p0, %p8539_p8 }
 0x18e   : > { %p5915_p4 = pneg %p5914_p5 }
 0x190   : > { %p5920_p10 = pnand %p5918_p1, %p5915_p4 }
 0x192   : > { %5923 = shalt.err (!%p5920_p10)
}
 0x193   : > { %s5924_s14 = scalar_lea.vmem %s6570_s26, 16  ;;  %s5931_s4 = scalar_lea.vmem %s6570_s26, 32 }
 0x194   : > { %p5925_p2 = scmp.ne.s32.totalorder %s6570_s26, %s5924_s14  ;;  %p5932_p3 = scmp.lt.s32.totalorder %s6570_s26, %s6570_s26 }
 0x195   : > { %p5933_p11 = scmp.lt.s32.totalorder %s5931_s4, %s5924_s14 }
 0x196   : > { %p5927_p7 = pnand %p5925_p2, %p8539_p8 }
 0x197   : > { %p5934_p12 = por %p5933_p11, %p5932_p3 }
 0x198   : > { %p5928_p9 = pneg %p5927_p7 }
 0x19a   : > { %p5935_p13 = pnand %p5934_p12, %p5928_p9 }
 0x19c   : > { %5938 = shalt.err (!%p5935_p13)
}
 0x19d   : > { %5086 = dma.hbm_to_vmem [thread:$0]  (!%p8540_p6), %s8545_s25, 16, %s6570_s26, [#allocation24]  }
 0x19e   : > { %s4431_s28 = sshll.u32 %s6434_s3, 8  ;;  %s4560_s1 = sshll.u32 %s6105_s22, 12 }
 0x19f   : > { %s8546_s10 = sld [smem:[#allocation57_spill]]  ;;  %s574_s30 = scalar_lea.vmem [#allocation2], %s4431_s28 }
 0x1a0   : > { %s583_s7 = sshll.u32 %s574_s30, 4  ;;  %s571_s14 = scalar_lea.sflag [#allocation3], %s6434_s3  ;;  %s6621_s7 = int_to_ptr.vmem [resolvable:$true] %s583_s7 }
 0x1a1   : > { %p8547_p0 = scmp.ne.s32.totalorder %s8537_s13, 0 }
 0x1a5   : > { %s6619_s0 = scalar_lea.hbm %s8546_s10, %s4560_s1  ;;  %s5944_s11 = scalar_lea.hbm %s8546_s10, 8192 }
 0x1a6   : > { %s5939_s4 = scalar_lea.hbm %s6619_s0, 4096  ;;  %p5945_p4 = scmp.lt.u32.totalorder %s6619_s0, %s8546_s10 }
 0x1a7   : > { %p5940_p8 = scmp.ne.s32.totalorder %s6619_s0, %s5939_s4  ;;  %p5946_p1 = scmp.lt.u32.totalorder %s5944_s11, %s5939_s4 }
 0x1a8   : > { %p5948_p2 = scmp.lt.u32.totalorder %s5939_s4, %s6619_s0 }
 0x1a9   : > { %p5942_p6 = pnand %p5940_p8, %p8547_p0  ;;  %p5947_p10 = por %p5946_p1, %p5945_p4 }
 0x1ab   : > { %p5943_p5 = pneg %p5942_p6  ;;  %p5949_p7 = por %p5948_p2, %p5947_p10 }
 0x1ad   : > { %p5950_p9 = pnand %p5949_p7, %p5943_p5 }
 0x1af   : > { %5953 = shalt.err (!%p5950_p9)
}
 0x1b0   : > { %s5954_s28 = scalar_lea.vmem %s6621_s7, 4096  ;;  %s6126_s16 = smov [#allocation2]  }
 0x1b1   : > { %p5955_p3 = scmp.ne.s32.totalorder %s6621_s7, %s5954_s28  ;;  %s5959_s30 = sshll.u32 %s6126_s16, 4  ;;  %s5960_s30 = int_to_ptr.vmem [resolvable:$false] %s5959_s30 }
 0x1b2   : > { %s5961_s26 = scalar_lea.vmem %s5960_s30, 8192  ;;  %p5962_p13 = scmp.lt.s32.totalorder %s6621_s7, %s5960_s30 }
 0x1b3   : > { %p5957_p11 = pnand %p5955_p3, %p8547_p0  ;;  %p5963_p8 = scmp.lt.s32.totalorder %s5961_s26, %s5954_s28 }
 0x1b5   : > { %p5958_p12 = pneg %p5957_p11  ;;  %p5964_p6 = por %p5963_p8, %p5962_p13 }
 0x1b7   : > { %p5965_p4 = pnand %p5964_p6, %p5958_p12 }
 0x1b9   : > { %5968 = shalt.err (!%p5965_p4)
}
 0x1ba   : > { %s6127_s4 = smov 128   ;;  %s6128_s6 = smov 8  }
 0x1bb   : > { %p8548_p5 = scmp.ne.s32.totalorder %s8535_s17, 0  ;;  %s4561_s11 = sshll.u32 %s6105_s22, 10 }
 0x1bc   : > { %s8549_s1 = sshll.u32 %s6434_s3, 6  ;;  %s8550_s26 = sld [smem:[#allocation59_spill]] }
 0x1bd   : > { %5090 = dma.hbm_to_vmem [thread:$0]  (!%p8548_p5), %s6619_s0, 4096, %s6621_s7, %s571_s14, %s6127_s4, %s6127_s4, %s6128_s6  }
 0x1be   : > { %s615_s29 = scalar_lea.vmem [#allocation7], %s8549_s1 }
 0x1bf   : > { %s622_s16 = sshll.u32 %s615_s29, 4  ;;  %s6655_s16 = int_to_ptr.vmem [resolvable:$true] %s622_s16 }
 0x1c2   : > { %s6653_s5 = scalar_lea.hbm %s8550_s26, %s4561_s11  ;;  %s5974_s7 = scalar_lea.hbm %s8550_s26, 2048 }
 0x1c3   : > { %s5969_s8 = scalar_lea.hbm %s6653_s5, 1024  ;;  %p5975_p7 = scmp.lt.u32.totalorder %s6653_s5, %s8550_s26 }
 0x1c4   : > { %p5970_p1 = scmp.ne.s32.totalorder %s6653_s5, %s5969_s8  ;;  %p5976_p9 = scmp.lt.u32.totalorder %s5974_s7, %s5969_s8 }
 0x1c5   : > { %p5978_p11 = scmp.lt.u32.totalorder %s5969_s8, %s6653_s5 }
 0x1c6   : > { %p5972_p10 = pnand %p5970_p1, %p8547_p0  ;;  %p5977_p3 = por %p5976_p9, %p5975_p7 }
 0x1c8   : > { %p5973_p2 = pneg %p5972_p10  ;;  %p5979_p12 = por %p5978_p11, %p5977_p3 }
 0x1ca   : > { %p5980_p13 = pnand %p5979_p12, %p5973_p2 }
 0x1cc   : > { %5983 = shalt.err (!%p5980_p13)
}
 0x1cd   : > { %s5984_s6 = scalar_lea.vmem %s6655_s16, 1024  ;;  %s6129_s11 = smov [#allocation7]  }
 0x1ce   : > { %p5985_p8 = scmp.ne.s32.totalorder %s6655_s16, %s5984_s6  ;;  %s5989_s1 = sshll.u32 %s6129_s11, 4  ;;  %s5990_s1 = int_to_ptr.vmem [resolvable:$false] %s5989_s1 }
 0x1cf   : > { %s5991_s29 = scalar_lea.vmem %s5990_s1, 2048  ;;  %p5992_p1 = scmp.lt.s32.totalorder %s6655_s16, %s5990_s1 }
 0x1d0   : > { %p5987_p6 = pnand %p5985_p8, %p8547_p0  ;;  %p5993_p10 = scmp.lt.s32.totalorder %s5991_s29, %s5984_s6 }
 0x1d2   : > { %p5988_p4 = pneg %p5987_p6  ;;  %p5994_p7 = por %p5993_p10, %p5992_p1 }
 0x1d4   : > { %p5995_p9 = pnand %p5994_p7, %p5988_p4 }
 0x1d6   : > { %5998 = shalt.err (!%p5995_p9)
}
 0x1d7   : > { %s8551_s8 = smov 4   ;;  %s8552_s28 = smov 64  }
 0x1d8   : > { %5096 = dma.hbm_to_vmem [thread:$0]  (!%p8548_p5), %s6653_s5, 1024, %s6655_s16, %s6453_s9, %s8552_s28, %s8552_s28, %s8551_s8  }
 0x1d9   : > { %s8553_s13 = sld [smem:[#allocation37_spill]] }
 0x1df   : > { %p8554_p0 = scmp.ne.s32.totalorder %s8553_s13, 0 }
 0x1e1   : > { %634 = sbr.rel (%p8554_p0) target bundleno = 2834 (0xb12), region = 80 }
 0x1e8   : > { %s6685_s30 = sand.u32 1, %s6093_s19   ;;  %p8555_p2 = scmp.ne.s32.totalorder %s8532_s15, 0 }
 0x1e9   : > { %s4440_s0 = sshll.u32 %s6685_s30, 8  ;;  %s637_s3 = scalar_lea.sflag [#allocation3], %s6685_s30 }
 0x1ea   : > { %s6691_s17 = scalar_lea.vmem [#allocation2], %s4440_s0 }
 0x1eb   : > { %6052 = dma.done.wait (%p8555_p2), %s637_s3, 4096  }
 0x1ec   : > { %6054 = vsyncadd (%p8555_p2), %s637_s3, 4294963200  ;;  %s645_s9 = sand.u32 1, %s6244_s24   ;;  %s4441_s5 = sshll.u32 %s6685_s30, 2 }
 0x1ed   : > { %s646_s16 = scalar_lea.sflag [#allocation6], %s645_s9  ;;  %s6699_s7 = scalar_lea.vmem [#allocation5], %s4441_s5 }
 0x1ee   : > { %6056 = dma.done.wait (%p8555_p2), %s646_s16, 1088  }
 0x1ef   : > { %6058 = vsyncadd (%p8555_p2), %s646_s16, 4294966208  ;;  %s4442_s14 = sshll.u32 %s6685_s30, 6  ;;  %p8556_p5 = scmp.eq.s32.totalorder %s6244_s24, 0 }
 0x1f0   : > { %s6706_s4 = scalar_lea.vmem [#allocation7], %s4442_s14 }
 0x1f1   : > { %6060 = dma.done.wait (%p8556_p5), [#allocation9], 32   ;;  %p8557_p3 = pmov %p8556_p5 }
 0x1f3   : > { %6062 = vsyncadd (%p8557_p3), [#allocation9], 4294967264  ;;  %p8558_p11 = pmov %p8557_p3 }
 0x1f4   : > { %p8559_p12 = pmov %p8557_p3 }
 0x1f5   : > { %6064 = dma.done.wait (%p8558_p11), [#allocation12], 320  }
 0x1f6   : > { %6066 = vsyncadd (%p8559_p12), [#allocation12], 4294966976  ;;  %p8560_p13 = pmov %p8557_p3 }
 0x1f7   : > { %p8561_p8 = pmov %p8557_p3 }
 0x1f8   : > { %6068 = dma.done.wait (%p8560_p13), [#allocation15], 1040  }
 0x1f9   : > { %6070 = vsyncadd (%p8561_p8), [#allocation15], 4294966256  ;;  %p8562_p6 = pmov %p8557_p3 }
 0x1fa   : > { %p8563_p4 = pmov %p8557_p3 }
 0x1fb   : > { %6072 = dma.done.wait (%p8562_p6), [#allocation18], 32  }
 0x1fc   : > { %6074 = vsyncadd (%p8563_p4), [#allocation18], 4294967264  ;;  %p8564_p1 = pmov %p8557_p3 }
 0x1fe   : > { %6076 = dma.done.wait (%p8564_p1), [#allocation21], 272   ;;  %p8565_p10 = pmov %p8564_p1 }
 0x1ff   : > { %p8566_p7 = pmov %p8564_p1 }
 0x200   : > { %6078 = vsyncadd (%p8565_p10), [#allocation21], 4294967024 }
 0x201   : > { %6080 = dma.done.wait (%p8566_p7), [#allocation24], 1040   ;;  %p8567_p9 = pmov %p8564_p1 }
 0x202   : > { %vm800_vm0 = vcmask 261120   ;;  %v6733_v0 = vld [vmem:[%s6691_s17] sm:$0xff]  ;;  %v6736_v1 = vld [vmem:[%s6691_s17 + $0x10] sm:$0xff]  ;;  %v6739_v2 = vld [vmem:[%s6691_s17 + $0x8] sm:$0xff]  ;;  %vm1601_vm1 = vcmask 1043456   ;;  %vm1552_vm2 = vcmask 64512  }
 0x203   : > { %6082 = vsyncadd (%p8567_p9), [#allocation24], 4294966256  ;;  %v801_v3 = vsel %vm800_vm0, %v6733_v0, 0.0  ;;  %v807_v4 = vsel %vm800_vm0, %v6736_v1, 0.0  ;;  %v6746_v5 = vld [vmem:[%s6691_s17 + $0x18] sm:$0xff]  ;;  %v804_v6 = vsel %vm800_vm0, %v6739_v2, 0.0 }
 0x204   : > { %802 = vadd.xlane.f32.xlu0 %v801_v3  ;;  %808 = vadd.xlane.f32.xlu1 %v807_v4  ;;  %v810_v7 = vsel %vm800_vm0, %v6746_v5, 0.0  ;;  %v6753_v8 = vld [vmem:[%s6691_s17 + $0x20] sm:$0xff]  ;;  %v6756_v9 = vld [vmem:[%s6691_s17 + $0x28] sm:$0xff]  ;;  %v6759_v10 = vld [vmem:[%s6691_s17 + $0x30] sm:$0xff]  ;;  %s8265_s24 = scalar_lea.vmem [#allocation26], %s4440_s0  ;;  %s8597_s15 = sld [smem:[#allocation36_spill]] }
 0x205   : > { %v6762_v11 = vld [vmem:[%s6691_s17 + $0x38] sm:$0xff]  ;;  %v6765_v12 = vld [vmem:[%s6691_s17 + $0x40] sm:$0xff]  ;;  %v6768_v13 = vld [vmem:[%s6691_s17 + $0x48] sm:$0xff]  ;;  %v813_v15 = vsel %vm800_vm0, %v6753_v8, 0.0  ;;  %v816_v16 = vsel %vm800_vm0, %v6756_v9, 0.0  ;;  %v819_v22 = vsel %vm800_vm0, %v6759_v10, 0.0 }
 0x206   : > { %v6771_v14 = vld [vmem:[%s6691_s17 + $0x50] sm:$0xff]  ;;  %v6778_v17 = vld [vmem:[%s6691_s17 + $0x58] sm:$0xff]  ;;  %v6781_v18 = vld [vmem:[%s6691_s17 + $0x60] sm:$0xff]  ;;  %v822_v23 = vsel %vm800_vm0, %v6762_v11, 0.0  ;;  %v825_v24 = vsel %vm800_vm0, %v6765_v12, 0.0  ;;  %v828_v25 = vsel %vm800_vm0, %v6768_v13, 0.0 }
 0x207   : > { %v6784_v19 = vld [vmem:[%s6691_s17 + $0x68] sm:$0xff]  ;;  %v6787_v20 = vld [vmem:[%s6691_s17 + $0x70] sm:$0xff]  ;;  %v6790_v21 = vld [vmem:[%s6691_s17 + $0x78] sm:$0xff]  ;;  %v831_v26 = vsel %vm800_vm0, %v6771_v14, 0.0  ;;  %v834_v27 = vsel %vm800_vm0, %v6778_v17, 0.0  ;;  %v837_v28 = vsel %vm800_vm0, %v6781_v18, 0.0 }
 0x208   : > { %805 = vadd.xlane.f32.xlu0 %v804_v6  ;;  %811 = vadd.xlane.f32.xlu1 %v810_v7  ;;  %v840_v29 = vsel %vm800_vm0, %v6784_v19, 0.0  ;;  %v843_v30 = vsel %vm800_vm0, %v6787_v20, 0.0  ;;  %v846_v31 = vsel %vm800_vm0, %v6790_v21, 0.0  ;;  %v6813_v32 = vld [vmem:[%s6691_s17 + $0x80] sm:$0xff]  ;;  %v6816_v33 = vld [vmem:[%s6691_s17 + $0x88] sm:$0xff]  ;;  %v6823_v36 = vld [vmem:[%s6691_s17 + $0x90] sm:$0xff] }
 0x209   : > { %v849_v34 = vsel %vm800_vm0, %v6813_v32, 0.0  ;;  %v852_v35 = vsel %vm800_vm0, %v6816_v33, 0.0  ;;  %v6826_v37 = vld [vmem:[%s6691_s17 + $0x98] sm:$0xff]  ;;  %v855_v38 = vsel %vm800_vm0, %v6823_v36, 0.0  ;;  %v6833_v40 = vld [vmem:[%s6691_s17 + $0xa0] sm:$0xff]  ;;  %v6836_v41 = vld [vmem:[%s6691_s17 + $0xa8] sm:$0xff] }
 0x20a   : > { %v858_v39 = vsel %vm800_vm0, %v6826_v37, 0.0  ;;  %v861_v42 = vsel %vm800_vm0, %v6833_v40, 0.0  ;;  %v864_v43 = vsel %vm800_vm0, %v6836_v41, 0.0  ;;  %v6843_v44 = vld [vmem:[%s6691_s17 + $0xb0] sm:$0xff]  ;;  %v6846_v45 = vld [vmem:[%s6691_s17 + $0xb8] sm:$0xff]  ;;  %v6853_v48 = vld [vmem:[%s6691_s17 + $0xc0] sm:$0xff] }
 0x20b   : > { %v867_v46 = vsel %vm800_vm0, %v6843_v44, 0.0  ;;  %v870_v47 = vsel %vm800_vm0, %v6846_v45, 0.0  ;;  %v6856_v49 = vld [vmem:[%s6691_s17 + $0xc8] sm:$0xff]  ;;  %v873_v50 = vsel %vm800_vm0, %v6853_v48, 0.0  ;;  %v6863_v52 = vld [vmem:[%s6691_s17 + $0xd0] sm:$0xff]  ;;  %v6866_v53 = vld [vmem:[%s6691_s17 + $0xd8] sm:$0xff] }
 0x20c   : > { %814 = vadd.xlane.f32.xlu0 %v813_v15  ;;  %817 = vadd.xlane.f32.xlu1 %v816_v16  ;;  %v876_v51 = vsel %vm800_vm0, %v6856_v49, 0.0  ;;  %v879_v54 = vsel %vm800_vm0, %v6863_v52, 0.0  ;;  %v882_v55 = vsel %vm800_vm0, %v6866_v53, 0.0  ;;  %v6873_v56 = vld [vmem:[%s6691_s17 + $0xe0] sm:$0xff]  ;;  %v6876_v57 = vld [vmem:[%s6691_s17 + $0xe8] sm:$0xff]  ;;  %v6883_v60 = vld [vmem:[%s6691_s17 + $0xf0] sm:$0xff] }
 0x20d   : > { %v885_v58 = vsel %vm800_vm0, %v6873_v56, 0.0  ;;  %v888_v59 = vsel %vm800_vm0, %v6876_v57, 0.0  ;;  %v6886_v61 = vld [vmem:[%s6691_s17 + $0xf8] sm:$0xff]  ;;  %v891_v62 = vsel %vm800_vm0, %v6883_v60, 0.0  ;;  %s4562_s6 = sshll.u32 %s8597_s15, 12  ;;  %s4171_s11 = sshll.u32 %s8265_s24, 4  ;;  %s8389_s11 = int_to_ptr.vmem [resolvable:$true] %s4171_s11 }
 0x20e   : > { %v894_v63 = vsel %vm800_vm0, %v6886_v61, 0.0  ;;  %s8604_s8 = sld [smem:[#allocation72_spill]]  ;;  %s4156_s13 = scalar_lea.sflag [#allocation4], %s6685_s30 }
 0x20f   : > { %s5999_s0 = scalar_lea.vmem %s8389_s11, 4096  ;;  %p8606_p2 = scmp.ne.s32.totalorder %s8533_s2, 0 }
 0x210   : > { %820 = vadd.xlane.f32.xlu0 %v819_v22  ;;  %823 = vadd.xlane.f32.xlu1 %v822_v23  ;;  %p6000_p0 = scmp.ne.s32.totalorder %s8389_s11, %s5999_s0  ;;  %s6130_s3 = smov [#allocation26]  }
 0x212   : > { %p6001_p5 = pnand %p6000_p0, %p8606_p2 }
 0x214   : > { %826 = vadd.xlane.f32.xlu0 %v825_v24  ;;  %829 = vadd.xlane.f32.xlu1 %v828_v25  ;;  %s8387_s28 = scalar_lea.hbm %s8604_s8, %s4562_s6  ;;  %p6002_p3 = pneg %p6001_p5 }
 0x218   : > { %832 = vadd.xlane.f32.xlu0 %v831_v26  ;;  %835 = vadd.xlane.f32.xlu1 %v834_v27 }
 0x21c   : > { %838 = vadd.xlane.f32.xlu0 %v837_v28  ;;  %841 = vadd.xlane.f32.xlu1 %v840_v29 }
 0x220   : > { %844 = vadd.xlane.f32.xlu0 %v843_v30  ;;  %847 = vadd.xlane.f32.xlu1 %v846_v31 }
 0x224   : > { %850 = vadd.xlane.f32.xlu0 %v849_v34  ;;  %853 = vadd.xlane.f32.xlu1 %v852_v35 }
 0x228   : > { %856 = vadd.xlane.f32.xlu0 %v855_v38  ;;  %859 = vadd.xlane.f32.xlu1 %v858_v39 }
 0x22c   : > { %862 = vadd.xlane.f32.xlu0 %v861_v42  ;;  %865 = vadd.xlane.f32.xlu1 %v864_v43 }
 0x230   : > { %868 = vadd.xlane.f32.xlu0 %v867_v46  ;;  %871 = vadd.xlane.f32.xlu1 %v870_v47 }
 0x234   : > { %874 = vadd.xlane.f32.xlu0 %v873_v50  ;;  %877 = vadd.xlane.f32.xlu1 %v876_v51 }
 0x238   : > { %880 = vadd.xlane.f32.xlu0 %v879_v54  ;;  %883 = vadd.xlane.f32.xlu1 %v882_v55 }
 0x23c   : > { %886 = vadd.xlane.f32.xlu0 %v885_v58  ;;  %889 = vadd.xlane.f32.xlu1 %v888_v59 }
 0x240   : > { %892 = vadd.xlane.f32.xlu0 %v891_v62  ;;  %895 = vadd.xlane.f32.xlu1 %v894_v63 }
 0x291   : > { %v803_v3 = vpop.xlane.xlu0 %802  ;;  %v809_v4 = vpop.xlane.xlu1 %808 }
 0x292   : > { %v898_v6 = vmul.f32 0.03125, %v803_v3  ;;  %v900_v7 = vmul.f32 0.03125, %v809_v4 }
 0x294   : > { %v6893_v15 = vsub.f32 %v6733_v0, %v898_v6  ;;  %v6896_v16 = vsub.f32 %v6736_v1, %v900_v7 }
 0x295   : > { %v806_v22 = vpop.xlane.xlu0 %805  ;;  %v812_v23 = vpop.xlane.xlu1 %811 }
 0x296   : > { %v899_v24 = vmul.f32 0.03125, %v806_v22  ;;  %v901_v25 = vmul.f32 0.03125, %v812_v23  ;;  %v962_v26 = vmul.f32 %v6893_v15, %v6893_v15  ;;  %v964_v27 = vmul.f32 %v6896_v16, %v6896_v16 }
 0x298   : > { %v6903_v28 = vsub.f32 %v6739_v2, %v899_v24  ;;  %v6906_v29 = vsub.f32 %v6746_v5, %v901_v25  ;;  %v994_v0 = vsel %vm800_vm0, %v962_v26, 0.0  ;;  %v1000_v31 = vsel %vm800_vm0, %v964_v27, 0.0 }
 0x299   : > { %995 = vadd.xlane.f32.xlu0 %v994_v0  ;;  %v815_v1 = vpop.xlane.xlu0 %814  ;;  %v818_v30 = vpop.xlane.xlu1 %817 }
 0x29a   : > { %v902_v34 = vmul.f32 0.03125, %v815_v1  ;;  %v903_v35 = vmul.f32 0.03125, %v818_v30  ;;  %v963_v38 = vmul.f32 %v6903_v28, %v6903_v28  ;;  %v965_v39 = vmul.f32 %v6906_v29, %v6906_v29 }
 0x29c   : > { %v6915_v2 = vsub.f32 %v6753_v8, %v902_v34  ;;  %v6918_v5 = vsub.f32 %v6756_v9, %v903_v35  ;;  %v997_v42 = vsel %vm800_vm0, %v963_v38, 0.0  ;;  %v1003_v47 = vsel %vm800_vm0, %v965_v39, 0.0 }
 0x29d   : > { %1001 = vadd.xlane.f32.xlu0 %v1000_v31  ;;  %998 = vadd.xlane.f32.xlu1 %v997_v42  ;;  %v821_v43 = vpop.xlane.xlu0 %820  ;;  %v824_v46 = vpop.xlane.xlu1 %823 }
 0x29e   : > { %v904_v50 = vmul.f32 0.03125, %v821_v43  ;;  %v905_v51 = vmul.f32 0.03125, %v824_v46  ;;  %v966_v54 = vmul.f32 %v6915_v2, %v6915_v2  ;;  %v967_v8 = vmul.f32 %v6918_v5, %v6918_v5 }
 0x2a0   : > { %v6927_v55 = vsub.f32 %v6759_v10, %v904_v50  ;;  %v6930_v9 = vsub.f32 %v6762_v11, %v905_v51  ;;  %v1006_v58 = vsel %vm800_vm0, %v966_v54, 0.0  ;;  %v1009_v63 = vsel %vm800_vm0, %v967_v8, 0.0 }
 0x2a1   : > { %1004 = vadd.xlane.f32.xlu1 %v1003_v47  ;;  %1007 = vadd.xlane.f32.xlu0 %v1006_v58  ;;  %v827_v59 = vpop.xlane.xlu0 %826  ;;  %v830_v62 = vpop.xlane.xlu1 %829 }
 0x2a2   : > { %v906_v3 = vmul.f32 0.03125, %v827_v59  ;;  %v907_v4 = vmul.f32 0.03125, %v830_v62  ;;  %v968_v6 = vmul.f32 %v6927_v55, %v6927_v55  ;;  %v969_v10 = vmul.f32 %v6930_v9, %v6930_v9 }
 0x2a4   : > { %v6939_v7 = vsub.f32 %v6765_v12, %v906_v3  ;;  %v6942_v11 = vsub.f32 %v6768_v13, %v907_v4  ;;  %v1012_v22 = vsel %vm800_vm0, %v968_v6, 0.0  ;;  %v1015_v25 = vsel %vm800_vm0, %v969_v10, 0.0 }
 0x2a5   : > { %1010 = vadd.xlane.f32.xlu1 %v1009_v63  ;;  %1013 = vadd.xlane.f32.xlu0 %v1012_v22  ;;  %v833_v23 = vpop.xlane.xlu0 %832  ;;  %v836_v24 = vpop.xlane.xlu1 %835 }
 0x2a6   : > { %v908_v26 = vmul.f32 0.03125, %v833_v23  ;;  %v909_v27 = vmul.f32 0.03125, %v836_v24  ;;  %v970_v0 = vmul.f32 %v6939_v7, %v6939_v7  ;;  %v971_v12 = vmul.f32 %v6942_v11, %v6942_v11 }
 0x2a8   : > { %v6951_v1 = vsub.f32 %v6771_v14, %v908_v26  ;;  %v6954_v13 = vsub.f32 %v6778_v17, %v909_v27  ;;  %v1018_v30 = vsel %vm800_vm0, %v970_v0, 0.0  ;;  %v1021_v35 = vsel %vm800_vm0, %v971_v12, 0.0 }
 0x2a9   : > { %1016 = vadd.xlane.f32.xlu1 %v1015_v25  ;;  %1019 = vadd.xlane.f32.xlu0 %v1018_v30  ;;  %v839_v31 = vpop.xlane.xlu0 %838  ;;  %v842_v34 = vpop.xlane.xlu1 %841 }
 0x2aa   : > { %v910_v38 = vmul.f32 0.03125, %v839_v31  ;;  %v911_v39 = vmul.f32 0.03125, %v842_v34  ;;  %v972_v42 = vmul.f32 %v6951_v1, %v6951_v1  ;;  %v973_v14 = vmul.f32 %v6954_v13, %v6954_v13 }
 0x2ac   : > { %v6963_v43 = vsub.f32 %v6781_v18, %v910_v38  ;;  %v6966_v17 = vsub.f32 %v6784_v19, %v911_v39  ;;  %v1024_v46 = vsel %vm800_vm0, %v972_v42, 0.0  ;;  %v1027_v51 = vsel %vm800_vm0, %v973_v14, 0.0 }
 0x2ad   : > { %1022 = vadd.xlane.f32.xlu1 %v1021_v35  ;;  %1025 = vadd.xlane.f32.xlu0 %v1024_v46  ;;  %v845_v47 = vpop.xlane.xlu0 %844  ;;  %v848_v50 = vpop.xlane.xlu1 %847 }
 0x2ae   : > { %v912_v54 = vmul.f32 0.03125, %v845_v47  ;;  %v913_v8 = vmul.f32 0.03125, %v848_v50  ;;  %v974_v58 = vmul.f32 %v6963_v43, %v6963_v43  ;;  %v975_v18 = vmul.f32 %v6966_v17, %v6966_v17 }
 0x2b0   : > { %v6975_v59 = vsub.f32 %v6787_v20, %v912_v54  ;;  %v6978_v19 = vsub.f32 %v6790_v21, %v913_v8  ;;  %v1030_v62 = vsel %vm800_vm0, %v974_v58, 0.0  ;;  %v1033_v4 = vsel %vm800_vm0, %v975_v18, 0.0  ;;  %v5193_v58 = vld [vmem:[#allocation11] sm:$0xff]  }
 0x2b1   : > { %1028 = vadd.xlane.f32.xlu1 %v1027_v51  ;;  %1031 = vadd.xlane.f32.xlu0 %v1030_v62  ;;  %v851_v63 = vpop.xlane.xlu0 %850  ;;  %v854_v3 = vpop.xlane.xlu1 %853 }
 0x2b2   : > { %v914_v6 = vmul.f32 0.03125, %v851_v63  ;;  %v915_v10 = vmul.f32 0.03125, %v854_v3  ;;  %v976_v22 = vmul.f32 %v6975_v59, %v6975_v59  ;;  %v977_v20 = vmul.f32 %v6978_v19, %v6978_v19  ;;  %4705 = vmatprep.subr.bf16.mxu0 %v5193_v58 }
 0x2b3   : > { %4706 = vmatpush3.bf16.msra.mxu0 %v5193_v58 }
 0x2b4   : > { %v6987_v23 = vsub.f32 %v6813_v32, %v914_v6  ;;  %v6990_v21 = vsub.f32 %v6816_v33, %v915_v10  ;;  %v1036_v24 = vsel %vm800_vm0, %v976_v22, 0.0  ;;  %v1039_v27 = vsel %vm800_vm0, %v977_v20, 0.0  ;;  %v5194_v20 = vld [vmem:[#allocation11 + $0x8] sm:$0xff]  }
 0x2b5   : > { %1034 = vadd.xlane.f32.xlu1 %v1033_v4  ;;  %1037 = vadd.xlane.f32.xlu0 %v1036_v24  ;;  %v857_v25 = vpop.xlane.xlu0 %856  ;;  %v860_v26 = vpop.xlane.xlu1 %859 }
 0x2b6   : > { %v916_v0 = vmul.f32 0.03125, %v857_v25  ;;  %v917_v12 = vmul.f32 0.03125, %v860_v26  ;;  %v978_v30 = vmul.f32 %v6987_v23, %v6987_v23  ;;  %v979_v32 = vmul.f32 %v6990_v21, %v6990_v21  ;;  %4707 = vmatprep.subr.bf16.mxu0 %v5194_v20 }
 0x2b7   : > { %4708 = vmatpush3.bf16.msra.mxu0 %v5194_v20 }
 0x2b8   : > { %v6999_v31 = vsub.f32 %v6823_v36, %v916_v0  ;;  %v7002_v33 = vsub.f32 %v6826_v37, %v917_v12  ;;  %v1042_v34 = vsel %vm800_vm0, %v978_v30, 0.0  ;;  %v1045_v39 = vsel %vm800_vm0, %v979_v32, 0.0 }
 0x2b9   : > { %1040 = vadd.xlane.f32.xlu1 %v1039_v27  ;;  %1043 = vadd.xlane.f32.xlu0 %v1042_v34  ;;  %v863_v35 = vpop.xlane.xlu0 %862  ;;  %v866_v38 = vpop.xlane.xlu1 %865 }
 0x2ba   : > { %v918_v42 = vmul.f32 0.03125, %v863_v35  ;;  %v919_v14 = vmul.f32 0.03125, %v866_v38  ;;  %v980_v46 = vmul.f32 %v6999_v31, %v6999_v31  ;;  %v981_v36 = vmul.f32 %v7002_v33, %v7002_v33 }
 0x2bc   : > { %v7011_v47 = vsub.f32 %v6833_v40, %v918_v42  ;;  %v7014_v37 = vsub.f32 %v6836_v41, %v919_v14  ;;  %v1048_v50 = vsel %vm800_vm0, %v980_v46, 0.0  ;;  %v1051_v8 = vsel %vm800_vm0, %v981_v36, 0.0 }
 0x2bd   : > { %1046 = vadd.xlane.f32.xlu1 %v1045_v39  ;;  %1049 = vadd.xlane.f32.xlu0 %v1048_v50  ;;  %v869_v51 = vpop.xlane.xlu0 %868  ;;  %v872_v54 = vpop.xlane.xlu1 %871 }
 0x2be   : > { %v920_v18 = vmul.f32 0.03125, %v869_v51  ;;  %v921_v62 = vmul.f32 0.03125, %v872_v54  ;;  %v982_v63 = vmul.f32 %v7011_v47, %v7011_v47  ;;  %v983_v40 = vmul.f32 %v7014_v37, %v7014_v37 }
 0x2c0   : > { %v7023_v41 = vsub.f32 %v6843_v44, %v920_v18  ;;  %v7026_v3 = vsub.f32 %v6846_v45, %v921_v62  ;;  %v1054_v4 = vsel %vm800_vm0, %v982_v63, 0.0  ;;  %v1057_v22 = vsel %vm800_vm0, %v983_v40, 0.0 }
 0x2c1   : > { %1052 = vadd.xlane.f32.xlu1 %v1051_v8  ;;  %1055 = vadd.xlane.f32.xlu0 %v1054_v4  ;;  %v875_v6 = vpop.xlane.xlu0 %874  ;;  %v878_v10 = vpop.xlane.xlu1 %877 }
 0x2c2   : > { %v922_v24 = vmul.f32 0.03125, %v875_v6  ;;  %v923_v25 = vmul.f32 0.03125, %v878_v10  ;;  %v984_v26 = vmul.f32 %v7023_v41, %v7023_v41  ;;  %v985_v44 = vmul.f32 %v7026_v3, %v7026_v3 }
 0x2c4   : > { %v7035_v45 = vsub.f32 %v6853_v48, %v922_v24  ;;  %v7038_v27 = vsub.f32 %v6856_v49, %v923_v25  ;;  %v1060_v0 = vsel %vm800_vm0, %v984_v26, 0.0  ;;  %v1063_v32 = vsel %vm800_vm0, %v985_v44, 0.0 }
 0x2c5   : > { %1058 = vadd.xlane.f32.xlu1 %v1057_v22  ;;  %1061 = vadd.xlane.f32.xlu0 %v1060_v0  ;;  %v881_v12 = vpop.xlane.xlu0 %880  ;;  %v884_v30 = vpop.xlane.xlu1 %883 }
 0x2c6   : > { %v924_v34 = vmul.f32 0.03125, %v881_v12  ;;  %v925_v35 = vmul.f32 0.03125, %v884_v30  ;;  %v986_v38 = vmul.f32 %v7035_v45, %v7035_v45  ;;  %v987_v48 = vmul.f32 %v7038_v27, %v7038_v27 }
 0x2c8   : > { %v7047_v49 = vsub.f32 %v6863_v52, %v924_v34  ;;  %v7050_v39 = vsub.f32 %v6866_v53, %v925_v35  ;;  %v1066_v42 = vsel %vm800_vm0, %v986_v38, 0.0  ;;  %v1069_v36 = vsel %vm800_vm0, %v987_v48, 0.0 }
 0x2c9   : > { %1064 = vadd.xlane.f32.xlu1 %v1063_v32  ;;  %1067 = vadd.xlane.f32.xlu0 %v1066_v42  ;;  %v887_v14 = vpop.xlane.xlu0 %886  ;;  %v890_v46 = vpop.xlane.xlu1 %889 }
 0x2ca   : > { %v926_v50 = vmul.f32 0.03125, %v887_v14  ;;  %v927_v51 = vmul.f32 0.03125, %v890_v46  ;;  %v988_v54 = vmul.f32 %v7047_v49, %v7047_v49  ;;  %v989_v52 = vmul.f32 %v7050_v39, %v7050_v39 }
 0x2cc   : > { %v7059_v8 = vsub.f32 %v6873_v56, %v926_v50  ;;  %v7062_v53 = vsub.f32 %v6876_v57, %v927_v51  ;;  %v1072_v58 = vsel %vm800_vm0, %v988_v54, 0.0  ;;  %v1075_v63 = vsel %vm800_vm0, %v989_v52, 0.0 }
 0x2cd   : > { %1070 = vadd.xlane.f32.xlu1 %v1069_v36  ;;  %1073 = vadd.xlane.f32.xlu0 %v1072_v58  ;;  %v893_v18 = vpop.xlane.xlu0 %892  ;;  %v896_v62 = vpop.xlane.xlu1 %895 }
 0x2ce   : > { %v928_v40 = vmul.f32 0.03125, %v893_v18  ;;  %v929_v4 = vmul.f32 0.03125, %v896_v62  ;;  %v990_v6 = vmul.f32 %v7059_v8, %v7059_v8  ;;  %v991_v56 = vmul.f32 %v7062_v53, %v7062_v53 }
 0x2d0   : > { %v7071_v10 = vsub.f32 %v6883_v60, %v928_v40  ;;  %v7074_v57 = vsub.f32 %v6886_v61, %v929_v4  ;;  %v1078_v22 = vsel %vm800_vm0, %v990_v6, 0.0  ;;  %v1081_v20 = vsel %vm800_vm0, %v991_v56, 0.0  ;;  %v7084_v61 = vld [vmem:[#allocation13] sm:$0xf] }
 0x2d1   : > { %1076 = vadd.xlane.f32.xlu1 %v1075_v63  ;;  %1079 = vadd.xlane.f32.xlu0 %v1078_v22  ;;  %v7090_v44 = vsel %vm1601_vm1, %v7084_v61, 0 }
 0x2d2   : > { %v992_v24 = vmul.f32 %v7071_v10, %v7071_v10  ;;  %v993_v25 = vmul.f32 %v7074_v57, %v7074_v57  ;;  %4991 = vmatprep.subr.msk.bf16.mxu0 %vm1601_vm1, %v7084_v61  ;;  %4992 = vmatprep.subr.msk.bf16.mxu1 %vm1601_vm1, %v7084_v61 }
 0x2d3   : > { %4990 = vmatpush3.bf16.msra.mxu1 %v7090_v44 }
 0x2d4   : > { %v1084_v26 = vsel %vm800_vm0, %v992_v24, 0.0  ;;  %v1087_v60 = vsel %vm800_vm0, %v993_v25, 0.0  ;;  %v7096_v25 = vld [vmem:[#allocation8] ss:$0 sm:$0xff] }
 0x2d5   : > { %1082 = vadd.xlane.f32.xlu1 %v1081_v20  ;;  %1085 = vadd.xlane.f32.xlu0 %v1084_v26 }
 0x2d9   : > { %1088 = vadd.xlane.f32.xlu1 %v1087_v60 }
 0x326   : > { %v996_v0 = vpop.xlane.xlu0 %995 }
 0x327   : > { %v1090_v12 = vmul.f32 0.03125, %v996_v0 }
 0x329   : > { %v1122_v30 = vadd.f32 1e-05, %v1090_v12 }
 0x32a   : > { %v999_v32 = vpop.xlane.xlu1 %998  ;;  %v1002_v34 = vpop.xlane.xlu0 %1001 }
 0x32b   : > { %5221 = vrsqrt.f32 %v1122_v30  ;;  %v1091_v35 = vmul.f32 0.03125, %v999_v32  ;;  %v1092_v38 = vmul.f32 0.03125, %v1002_v34 }
 0x32d   : > { %v1123_v48 = vadd.f32 1e-05, %v1091_v35  ;;  %v1124_v42 = vadd.f32 1e-05, %v1092_v38 }
 0x32e   : > { %v1005_v14 = vpop.xlane.xlu1 %1004  ;;  %v1008_v46 = vpop.xlane.xlu0 %1007 }
 0x32f   : > { %5223 = vrsqrt.f32 %v1123_v48  ;;  %v1093_v36 = vmul.f32 0.03125, %v1005_v14  ;;  %v1094_v50 = vmul.f32 0.03125, %v1008_v46 }
 0x330   : > { %5225 = vrsqrt.f32 %v1124_v42  ;;  %v7101_v42 = vld [vmem:[#allocation10] ss:$0 sm:$0xff] }
 0x331   : > { %v1125_v51 = vadd.f32 1e-05, %v1093_v36  ;;  %v1126_v54 = vadd.f32 1e-05, %v1094_v50 }
 0x332   : > { %v1011_v52 = vpop.xlane.xlu1 %1010  ;;  %v1014_v58 = vpop.xlane.xlu0 %1013 }
 0x333   : > { %5227 = vrsqrt.f32 %v1125_v51  ;;  %v1095_v18 = vmul.f32 0.03125, %v1011_v52  ;;  %v1096_v62 = vmul.f32 0.03125, %v1014_v58 }
 0x334   : > { %5229 = vrsqrt.f32 %v1126_v54 }
 0x335   : > { %v5222_v63 = vpop.eup %5221  ;;  %v1127_v40 = vadd.f32 1e-05, %v1095_v18  ;;  %v1128_v4 = vadd.f32 1e-05, %v1096_v62 }
 0x336   : > { %v1017_v6 = vpop.xlane.xlu1 %1016  ;;  %v1020_v56 = vpop.xlane.xlu0 %1019  ;;  %v1186_v22 = vmul.f32 %v5222_v63, %v6893_v15 }
 0x337   : > { %5231 = vrsqrt.f32 %v1127_v40  ;;  %v1097_v20 = vmul.f32 0.03125, %v1017_v6  ;;  %v1098_v24 = vmul.f32 0.03125, %v1020_v56 }
 0x338   : > { %5233 = vrsqrt.f32 %v1128_v4  ;;  %v1224_v35 = vmul.f32 %v7096_v25, %v1186_v22 }
 0x339   : > { %v5224_v26 = vpop.eup %5223  ;;  %v1129_v60 = vadd.f32 1e-05, %v1097_v20  ;;  %v1130_v0 = vadd.f32 1e-05, %v1098_v24 }
 0x33a   : > { %v5226_v12 = vpop.eup %5225  ;;  %v1023_v30 = vpop.xlane.xlu1 %1022  ;;  %v1187_v34 = vmul.f32 %v5224_v26, %v6903_v28  ;;  %v1262_v58 = vadd.f32 %v7101_v42, %v1224_v35 }
 0x33b   : > { %v1026_v32 = vpop.xlane.xlu0 %1025  ;;  %v1188_v38 = vmul.f32 %v5226_v12, %v6896_v16  ;;  %5235 = vrsqrt.f32 %v1129_v60  ;;  %v1099_v15 = vmul.f32 0.03125, %v1023_v30 }
 0x33c   : > { %v1100_v48 = vmul.f32 0.03125, %v1026_v32  ;;  %5237 = vrsqrt.f32 %v1130_v0  ;;  %v1225_v14 = vmul.f32 %v7096_v25, %v1187_v34 }
 0x33d   : > { %v5228_v46 = vpop.eup %5227  ;;  %v1131_v36 = vadd.f32 1e-05, %v1099_v15  ;;  %v1226_v18 = vmul.f32 %v7096_v25, %v1188_v38 }
 0x33e   : > { %v1132_v50 = vadd.f32 1e-05, %v1100_v48  ;;  %v5230_v51 = vpop.eup %5229  ;;  %v1189_v54 = vmul.f32 %v5228_v46, %v6906_v29  ;;  %v1029_v52 = vpop.xlane.xlu1 %1028  ;;  %v1263_v16 = vadd.f32 %v7101_v42, %v1225_v14 }
 0x33f   : > { %v1032_v28 = vpop.xlane.xlu0 %1031  ;;  %v1190_v62 = vmul.f32 %v5230_v51, %v6915_v2  ;;  %5239 = vrsqrt.f32 %v1131_v36  ;;  %v1101_v63 = vmul.f32 0.03125, %v1029_v52  ;;  %v1264_v0 = vadd.f32 %v7101_v42, %v1226_v18 }
 0x340   : > { %v1102_v40 = vmul.f32 0.03125, %v1032_v28  ;;  %5241 = vrsqrt.f32 %v1132_v50  ;;  %v1294_v4 = vpack.c.bf16 %v1263_v16, %v1262_v58  ;;  %v1227_v6 = vmul.f32 %v7096_v25, %v1189_v54 }
 0x341   : > { %v5232_v56 = vpop.eup %5231  ;;  %v1133_v22 = vadd.f32 1e-05, %v1101_v63  ;;  %v1228_v12 = vmul.f32 %v7096_v25, %v1190_v62 }
 0x342   : > { %v1134_v29 = vadd.f32 1e-05, %v1102_v40  ;;  %v5234_v20 = vpop.eup %5233  ;;  %v1191_v24 = vmul.f32 %v5232_v56, %v6918_v5  ;;  %v1035_v26 = vpop.xlane.xlu1 %1034  ;;  %4709 = vmatprep.mubr.msk.bf16.mxu0 %vm800_vm0, %v1294_v4  ;;  %v1265_v2 = vadd.f32 %v7101_v42, %v1227_v6 }
 0x343   : > { %v1038_v60 = vpop.xlane.xlu0 %1037  ;;  %v1192_v30 = vmul.f32 %v5234_v20, %v6927_v55  ;;  %5243 = vrsqrt.f32 %v1133_v22  ;;  %v1103_v32 = vmul.f32 0.03125, %v1035_v26  ;;  %v1266_v51 = vadd.f32 %v7101_v42, %v1228_v12 }
 0x344   : > { %v1104_v34 = vmul.f32 0.03125, %v1038_v60  ;;  %5245 = vrsqrt.f32 %v1134_v29  ;;  %v1295_v35 = vpack.c.bf16 %v1265_v2, %v1264_v0  ;;  %v1229_v38 = vmul.f32 %v7096_v25, %v1191_v24 }
 0x345   : > { %v5236_v5 = vpop.eup %5235  ;;  %v1135_v15 = vadd.f32 1e-05, %v1103_v32  ;;  %v1230_v54 = vmul.f32 %v7096_v25, %v1192_v30 }
 0x346   : > { %v1136_v48 = vadd.f32 1e-05, %v1104_v34  ;;  %v5238_v14 = vpop.eup %5237  ;;  %v1193_v46 = vmul.f32 %v5236_v5, %v6930_v9  ;;  %v1041_v36 = vpop.xlane.xlu1 %1040  ;;  %4710 = vmatmul.mubr.msk.bf16.vlgmr.msra.gmra.mrb[0].mxu0 %vm800_vm0, %v1295_v35  ;;  %v1267_v55 = vadd.f32 %v7101_v42, %v1229_v38 }
 0x347   : > { %v1044_v50 = vpop.xlane.xlu0 %1043  ;;  %v1194_v52 = vmul.f32 %v5238_v14, %v6939_v7  ;;  %5247 = vrsqrt.f32 %v1135_v15  ;;  %v1105_v28 = vmul.f32 0.03125, %v1041_v36  ;;  %4742 = vmatpush3.bf16.msra.mxu0 %v7090_v44  ;;  %v1268_v56 = vadd.f32 %v7101_v42, %v1230_v54 }
 0x348   : > { %v1106_v58 = vmul.f32 0.03125, %v1044_v50  ;;  %5249 = vrsqrt.f32 %v1136_v48  ;;  %v1296_v16 = vpack.c.bf16 %v1267_v55, %v1266_v51  ;;  %v1231_v9 = vmul.f32 %v7096_v25, %v1193_v46  ;;  %4993 = vmatprep.subr.msk.bf16.mxu0 %vm1601_vm1, %v7084_v61 }
 0x349   : > { %v5240_v18 = vpop.eup %5239  ;;  %v1137_v62 = vadd.f32 1e-05, %v1105_v28  ;;  %v1232_v29 = vmul.f32 %v7096_v25, %v1194_v52 }
 0x34a   : > { %v1138_v63 = vadd.f32 1e-05, %v1106_v58  ;;  %v5242_v40 = vpop.eup %5241  ;;  %v1195_v4 = vmul.f32 %v5240_v18, %v6942_v11  ;;  %v1047_v6 = vpop.xlane.xlu1 %1046  ;;  %4713 = vmatprep.mubr.msk.bf16.mxu0 %vm800_vm0, %v1296_v16  ;;  %v1269_v22 = vadd.f32 %v7101_v42, %v1231_v9 }
 0x34b   : > { %v1050_v7 = vpop.xlane.xlu0 %1049  ;;  %v1196_v20 = vmul.f32 %v5242_v40, %v6951_v1  ;;  %5251 = vrsqrt.f32 %v1137_v62  ;;  %v1107_v61 = vmul.f32 0.03125, %v1047_v6  ;;  %v1270_v35 = vadd.f32 %v7101_v42, %v1232_v29 }
 0x34c   : > { %v1108_v24 = vmul.f32 0.03125, %v1050_v7  ;;  %5253 = vrsqrt.f32 %v1138_v63  ;;  %v1297_v26 = vpack.c.bf16 %v1269_v22, %v1268_v56  ;;  %v1233_v60 = vmul.f32 %v7096_v25, %v1195_v4 }
 0x34d   : > { %v5244_v11 = vpop.eup %5243  ;;  %v1139_v0 = vadd.f32 1e-05, %v1107_v61  ;;  %v1234_v38 = vmul.f32 %v7096_v25, %v1196_v20 }
 0x34e   : > { %v1140_v2 = vadd.f32 1e-05, %v1108_v24  ;;  %v5246_v12 = vpop.eup %5245  ;;  %v1197_v30 = vmul.f32 %v5244_v11, %v6954_v13  ;;  %v1053_v32 = vpop.xlane.xlu1 %1052  ;;  %4714 = vmatmul.mubr.msk.bf16.gmra.mrb[4].mxu0 %vm800_vm0, %v1297_v26  ;;  %v1271_v1 = vadd.f32 %v7101_v42, %v1233_v60 }
 0x34f   : > { %v1056_v34 = vpop.xlane.xlu0 %1055  ;;  %v1198_v5 = vmul.f32 %v5246_v12, %v6963_v43  ;;  %5255 = vrsqrt.f32 %v1139_v0  ;;  %v1109_v15 = vmul.f32 0.03125, %v1053_v32  ;;  %v1272_v28 = vadd.f32 %v7101_v42, %v1234_v38 }
 0x350   : > { %v1110_v48 = vmul.f32 0.03125, %v1056_v34  ;;  %5257 = vrsqrt.f32 %v1140_v2  ;;  %v1298_v14 = vpack.c.bf16 %v1271_v1, %v1270_v35  ;;  %v1235_v46 = vmul.f32 %v7096_v25, %v1197_v30 }
 0x351   : > { %v5248_v13 = vpop.eup %5247  ;;  %v1141_v36 = vadd.f32 1e-05, %v1109_v15  ;;  %v1236_v58 = vmul.f32 %v7096_v25, %v1198_v5 }
 0x352   : > { %v1142_v50 = vadd.f32 1e-05, %v1110_v48  ;;  %v5250_v51 = vpop.eup %5249  ;;  %v1199_v55 = vmul.f32 %v5248_v13, %v6966_v17  ;;  %v1059_v54 = vpop.xlane.xlu1 %1058  ;;  %4717 = vmatprep.mubr.msk.bf16.mxu0 %vm800_vm0, %v1298_v14  ;;  %v1273_v43 = vadd.f32 %v7101_v42, %v1235_v46 }
 0x353   : > { %v1062_v52 = vpop.xlane.xlu0 %1061  ;;  %v1200_v16 = vmul.f32 %v5250_v51, %v6975_v59  ;;  %5259 = vrsqrt.f32 %v1141_v36  ;;  %v1111_v9 = vmul.f32 0.03125, %v1059_v54  ;;  %v1274_v29 = vadd.f32 %v7101_v42, %v1236_v58 }
 0x354   : > { %v1112_v18 = vmul.f32 0.03125, %v1062_v52  ;;  %5261 = vrsqrt.f32 %v1142_v50  ;;  %v1299_v62 = vpack.c.bf16 %v1273_v43, %v1272_v28  ;;  %v1237_v63 = vmul.f32 %v7096_v25, %v1199_v55 }
 0x355   : > { %v5252_v17 = vpop.eup %5251  ;;  %v1143_v40 = vadd.f32 1e-05, %v1111_v9  ;;  %v1238_v20 = vmul.f32 %v7096_v25, %v1200_v16 }
 0x356   : > { %v1144_v4 = vadd.f32 1e-05, %v1112_v18  ;;  %v5254_v6 = vpop.eup %5253  ;;  %v1201_v7 = vmul.f32 %v5252_v17, %v6978_v19  ;;  %v1065_v56 = vpop.xlane.xlu1 %1064  ;;  %4718 = vmatmul.mubr.msk.bf16.gmra.mrb[8].mxu0 %vm800_vm0, %v1299_v62  ;;  %v1275_v59 = vadd.f32 %v7101_v42, %v1237_v63 }
 0x357   : > { %v1068_v22 = vpop.xlane.xlu0 %1067  ;;  %v1202_v61 = vmul.f32 %v5254_v6, %v6987_v23  ;;  %5263 = vrsqrt.f32 %v1143_v40  ;;  %v1113_v24 = vmul.f32 0.03125, %v1065_v56  ;;  %v1276_v35 = vadd.f32 %v7101_v42, %v1238_v20 }
 0x358   : > { %v1114_v26 = vmul.f32 0.03125, %v1068_v22  ;;  %5265 = vrsqrt.f32 %v1144_v4  ;;  %v1300_v60 = vpack.c.bf16 %v1275_v59, %v1274_v29  ;;  %v1239_v11 = vmul.f32 %v7096_v25, %v1201_v7 }
 0x359   : > { %v5256_v19 = vpop.eup %5255  ;;  %v1145_v0 = vadd.f32 1e-05, %v1113_v24  ;;  %v1240_v1 = vmul.f32 %v7096_v25, %v1202_v61 }
 0x35a   : > { %v1146_v2 = vadd.f32 1e-05, %v1114_v26  ;;  %v5258_v12 = vpop.eup %5257  ;;  %v1203_v30 = vmul.f32 %v5256_v19, %v6990_v21  ;;  %v1071_v32 = vpop.xlane.xlu1 %1070  ;;  %4721 = vmatprep.mubr.msk.bf16.mxu0 %vm800_vm0, %v1300_v60  ;;  %v1277_v23 = vadd.f32 %v7101_v42, %v1239_v11 }
 0x35b   : > { %v1074_v34 = vpop.xlane.xlu0 %1073  ;;  %v1204_v38 = vmul.f32 %v5258_v12, %v6999_v31  ;;  %5267 = vrsqrt.f32 %v1145_v0  ;;  %v1115_v5 = vmul.f32 0.03125, %v1071_v32  ;;  %v1278_v54 = vadd.f32 %v7101_v42, %v1240_v1 }
 0x35c   : > { %v1116_v15 = vmul.f32 0.03125, %v1074_v34  ;;  %5269 = vrsqrt.f32 %v1146_v2  ;;  %v1301_v48 = vpack.c.bf16 %v1277_v23, %v1276_v35  ;;  %v1241_v14 = vmul.f32 %v7096_v25, %v1203_v30 }
 0x35d   : > { %v5260_v21 = vpop.eup %5259  ;;  %v1147_v46 = vadd.f32 1e-05, %v1115_v5  ;;  %v1242_v52 = vmul.f32 %v7096_v25, %v1204_v38 }
 0x35e   : > { %v1148_v13 = vadd.f32 1e-05, %v1116_v15  ;;  %v5262_v36 = vpop.eup %5261  ;;  %v1205_v50 = vmul.f32 %v5260_v21, %v7002_v33  ;;  %v1077_v51 = vpop.xlane.xlu1 %1076  ;;  %4722 = vmatmul.mubr.msk.bf16.gmra.mrb[12].mxu0 %vm800_vm0, %v1301_v48  ;;  %v1279_v31 = vadd.f32 %v7101_v42, %v1241_v14 }
 0x35f   : > { %v1080_v55 = vpop.xlane.xlu0 %1079  ;;  %v1206_v28 = vmul.f32 %v5262_v36, %v7011_v47  ;;  %5271 = vrsqrt.f32 %v1147_v46  ;;  %v1117_v43 = vmul.f32 0.03125, %v1077_v51  ;;  %v1280_v6 = vadd.f32 %v7101_v42, %v1242_v52 }
 0x360   : > { %v1118_v58 = vmul.f32 0.03125, %v1080_v55  ;;  %5273 = vrsqrt.f32 %v1148_v13  ;;  %v1302_v16 = vpack.c.bf16 %v1279_v31, %v1278_v54  ;;  %v1243_v9 = vmul.f32 %v7096_v25, %v1205_v50 }
 0x361   : > { %v5264_v33 = vpop.eup %5263  ;;  %v1149_v18 = vadd.f32 1e-05, %v1117_v43  ;;  %v1244_v7 = vmul.f32 %v7096_v25, %v1206_v28 }
 0x362   : > { %v1150_v62 = vadd.f32 1e-05, %v1118_v58  ;;  %v5266_v63 = vpop.eup %5265  ;;  %v1207_v17 = vmul.f32 %v5264_v33, %v7014_v37  ;;  %v1083_v40 = vpop.xlane.xlu1 %1082  ;;  %4725 = vmatprep.mubr.msk.bf16.mxu0 %vm800_vm0, %v1302_v16  ;;  %v1281_v47 = vadd.f32 %v7101_v42, %v1243_v9 }
 0x363   : > { %v1086_v4 = vpop.xlane.xlu0 %1085  ;;  %v1208_v56 = vmul.f32 %v5266_v63, %v7023_v41  ;;  %5275 = vrsqrt.f32 %v1149_v18  ;;  %v1119_v22 = vmul.f32 0.03125, %v1083_v40  ;;  %v1282_v19 = vadd.f32 %v7101_v42, %v1244_v7 }
 0x364   : > { %v1120_v29 = vmul.f32 0.03125, %v1086_v4  ;;  %5277 = vrsqrt.f32 %v1150_v62  ;;  %v1303_v59 = vpack.c.bf16 %v1281_v47, %v1280_v6  ;;  %v1245_v20 = vmul.f32 %v7096_v25, %v1207_v17 }
 0x365   : > { %v5268_v37 = vpop.eup %5267  ;;  %v1151_v61 = vadd.f32 1e-05, %v1119_v22  ;;  %v1246_v0 = vmul.f32 %v7096_v25, %v1208_v56 }
 0x366   : > { %v1152_v24 = vadd.f32 1e-05, %v1120_v29  ;;  %v5270_v26 = vpop.eup %5269  ;;  %v1209_v60 = vmul.f32 %v5268_v37, %v7026_v3  ;;  %v1089_v11 = vpop.xlane.xlu1 %1088  ;;  %4726 = vmatmul.mubr.msk.bf16.gmra.mrb[16].mxu0 %vm800_vm0, %v1303_v59  ;;  %v1283_v41 = vadd.f32 %v7101_v42, %v1245_v20 }
 0x367   : > { %v1210_v2 = vmul.f32 %v5270_v26, %v7035_v45  ;;  %5279 = vrsqrt.f32 %v1151_v61  ;;  %v1121_v12 = vmul.f32 0.03125, %v1089_v11  ;;  %v1284_v1 = vadd.f32 %v7101_v42, %v1246_v0 }
 0x368   : > { %5281 = vrsqrt.f32 %v1152_v24  ;;  %v1304_v30 = vpack.c.bf16 %v1283_v41, %v1282_v19  ;;  %v1247_v32 = vmul.f32 %v7096_v25, %v1209_v60 }
 0x369   : > { %v5272_v34 = vpop.eup %5271  ;;  %v1153_v35 = vadd.f32 1e-05, %v1121_v12  ;;  %v1248_v5 = vmul.f32 %v7096_v25, %v1210_v2 }
 0x36a   : > { %v5274_v3 = vpop.eup %5273  ;;  %v1211_v23 = vmul.f32 %v5272_v34, %v7038_v27  ;;  %4729 = vmatprep.mubr.msk.bf16.mxu0 %vm800_vm0, %v1304_v30  ;;  %v1285_v38 = vadd.f32 %v7101_v42, %v1247_v32 }
 0x36b   : > { %v1212_v45 = vmul.f32 %v5274_v3, %v7047_v49  ;;  %5283 = vrsqrt.f32 %v1153_v35  ;;  %v1286_v27 = vadd.f32 %v7101_v42, %v1248_v5 }
 0x36c   : > { %v1305_v15 = vpack.c.bf16 %v1285_v38, %v1284_v1  ;;  %v1249_v48 = vmul.f32 %v7096_v25, %v1211_v23  ;;  %v5196_v38 = vld [vmem:[#allocation14 + $0x8] sm:$0xff]  }
 0x36d   : > { %v5276_v14 = vpop.eup %5275  ;;  %v1250_v36 = vmul.f32 %v7096_v25, %v1212_v45 }
 0x36e   : > { %v5278_v21 = vpop.eup %5277  ;;  %v1213_v46 = vmul.f32 %v5276_v14, %v7050_v39  ;;  %4730 = vmatmul.mubr.msk.bf16.gmra.mrb[20].mxu0 %vm800_vm0, %v1305_v15  ;;  %v1287_v13 = vadd.f32 %v7101_v42, %v1249_v48 }
 0x36f   : > { %v1214_v50 = vmul.f32 %v5278_v21, %v7059_v8  ;;  %v1288_v39 = vadd.f32 %v7101_v42, %v1250_v36 }
 0x370   : > { %v1306_v51 = vpack.c.bf16 %v1287_v13, %v1286_v27  ;;  %v1251_v49 = vmul.f32 %v7096_v25, %v1213_v46 }
 0x371   : > { %v5280_v55 = vpop.eup %5279  ;;  %v1252_v28 = vmul.f32 %v7096_v25, %v1214_v50 }
 0x372   : > { %v5282_v54 = vpop.eup %5281  ;;  %v1215_v31 = vmul.f32 %v5280_v55, %v7062_v53  ;;  %4733 = vmatprep.mubr.msk.bf16.mxu0 %vm800_vm0, %v1306_v51  ;;  %v1289_v52 = vadd.f32 %v7101_v42, %v1251_v49 }
 0x373   : > { %v1216_v43 = vmul.f32 %v5282_v54, %v7071_v10  ;;  %v1290_v53 = vadd.f32 %v7101_v42, %v1252_v28  ;;  %v5197_v28 = vld [vmem:[#allocation14 + $0x10] sm:$0xff]  }
 0x374   : > { %v1307_v58 = vpack.c.bf16 %v1289_v52, %v1288_v39  ;;  %v1253_v8 = vmul.f32 %v7096_v25, %v1215_v31 }
 0x375   : > { %v5284_v16 = vpop.eup %5283  ;;  %v1254_v18 = vmul.f32 %v7096_v25, %v1216_v43  ;;  %v5198_v43 = vld [vmem:[#allocation14 + $0x18] sm:$0xff]  }
 0x376   : > { %v1217_v9 = vmul.f32 %v5284_v16, %v7074_v57  ;;  %4734 = vmatmul.mubr.msk.bf16.gmra.mrb[24].mxu0 %vm800_vm0, %v1307_v58  ;;  %v1291_v33 = vadd.f32 %v7101_v42, %v1253_v8  ;;  %v5195_v57 = vld [vmem:[#allocation14] sm:$0xff]   ;;  %v5200_v8 = vld [vmem:[#allocation14 + $0x28] sm:$0xff]   ;;  %v5201_v16 = vld [vmem:[#allocation14 + $0x30] sm:$0xff]  }
 0x377   : > { %v1292_v10 = vadd.f32 %v7101_v42, %v1254_v18  ;;  %4775 = vmatprep.subr.bf16.mxu1 %v5195_v57  ;;  %v5199_v58 = vld [vmem:[#allocation14 + $0x20] sm:$0xff]  }
 0x378   : > { %v1308_v62 = vpack.c.bf16 %v1291_v33, %v1290_v53  ;;  %v1255_v63 = vmul.f32 %v7096_v25, %v1217_v9  ;;  %v5202_v9 = vld [vmem:[#allocation14 + $0x38] sm:$0xff]   ;;  %v1767_v53 = vlaneseq }
 0x37a   : > { %4737 = vmatprep.mubr.msk.bf16.mxu0 %vm800_vm0, %v1308_v62  ;;  %v1293_v17 = vadd.f32 %v7101_v42, %v1255_v63  ;;  %v1768_v33 = vshrl.u32 %v1767_v53, 7  ;;  %v1766_v63 = vld [vmem:[%s6699_s7] sm:$0x7] }
 0x37c   : > { %v1309_v40 = vpack.c.bf16 %v1293_v17, %v1292_v10  ;;  %v1805_v18 = vsub.s32 1, %v1768_v33  ;;  %v1841_v62 = vsub.s32 2, %v1768_v33  ;;  %v1769_v10 = vsub.s32 0, %v1768_v33 }
 0x37e   : > { %4738 = vmatmul.mubr.msk.bf16.gmra.mrb[28].mxu0 %vm800_vm0, %v1309_v40  ;;  %v7232_v17 = vrot.slane %v1766_v63, %v1805_v18  ;;  %v7234_v40 = vrot.slane %v1766_v63, %v1841_v62 }
 0x419   : > { %v4711_v4 = vpop.f32.mrb[0].mxu0 }
 0x41a   : > { %v1408_v6 = vpop.f32.mrb[1].mxu0 }
 0x41b   : > { %v4712_v47 = vpop.f32.mrb[2].mxu0 }
 0x41c   : > { %v1536_v7 = vpack.c.bf16 %v4712_v47, %v4711_v4  ;;  %v1411_v56 = vpop.f32.mrb[3].mxu0 }
 0x41d   : > { %v1535_v22 = vpack.c.bf16 %v1411_v56, %v1408_v6 }
 0x41f   : > { %4743 = vmatprep.mubr.msk.bf16.mxu0 %vm1552_vm2, %v1535_v22 }
 0x420   : > { %4744 = vmatmul.mubr.msk.bf16.vlgmr.msra.gmra.mrb[32].mxu0 %vm1552_vm2, %v1536_v7 }
 0x421   : > { %v4715_v25 = vpop.f32.mrb[4].mxu0  ;;  %4824 = vmatpush3.bf16.msra.mxu0 %v7090_v44 }
 0x422   : > { %v1424_v42 = vpop.f32.mrb[5].mxu0 }
 0x423   : > { %v4716_v29 = vpop.f32.mrb[6].mxu0 }
 0x424   : > { %v1538_v59 = vpack.c.bf16 %v4716_v29, %v4715_v25  ;;  %v1427_v20 = vpop.f32.mrb[7].mxu0 }
 0x425   : > { %v1537_v37 = vpack.c.bf16 %v1427_v20, %v1424_v42 }
 0x427   : > { %4747 = vmatprep.mubr.msk.bf16.mxu0 %vm1552_vm2, %v1537_v37 }
 0x428   : > { %4748 = vmatmul.mubr.msk.bf16.gmra.mrb[36].mxu0 %vm1552_vm2, %v1538_v59 }
 0x429   : > { %v4719_v61 = vpop.f32.mrb[8].mxu0 }
 0x42a   : > { %v1440_v24 = vpop.f32.mrb[9].mxu0 }
 0x42b   : > { %v4720_v26 = vpop.f32.mrb[10].mxu0 }
 0x42c   : > { %v1540_v60 = vpack.c.bf16 %v4720_v26, %v4719_v61  ;;  %v1443_v11 = vpop.f32.mrb[11].mxu0 }
 0x42d   : > { %v1539_v19 = vpack.c.bf16 %v1443_v11, %v1440_v24 }
 0x42f   : > { %4751 = vmatprep.mubr.msk.bf16.mxu0 %vm1552_vm2, %v1539_v19 }
 0x430   : > { %4752 = vmatmul.mubr.msk.bf16.gmra.mrb[40].mxu0 %vm1552_vm2, %v1540_v60 }
 0x431   : > { %v4723_v44 = vpop.f32.mrb[12].mxu0 }
 0x432   : > { %v1456_v41 = vpop.f32.mrb[13].mxu0 }
 0x433   : > { %v4724_v0 = vpop.f32.mrb[14].mxu0 }
 0x434   : > { %v1542_v2 = vpack.c.bf16 %v4724_v0, %v4723_v44  ;;  %v1459_v12 = vpop.f32.mrb[15].mxu0 }
 0x435   : > { %v1541_v30 = vpack.c.bf16 %v1459_v12, %v1456_v41 }
 0x437   : > { %4755 = vmatprep.mubr.msk.bf16.mxu0 %vm1552_vm2, %v1541_v30 }
 0x438   : > { %4756 = vmatmul.mubr.msk.bf16.gmra.mrb[44].mxu0 %vm1552_vm2, %v1542_v2 }
 0x439   : > { %v4727_v32 = vpop.f32.mrb[16].mxu0 }
 0x43a   : > { %v1472_v34 = vpop.f32.mrb[17].mxu0 }
 0x43b   : > { %v4728_v35 = vpop.f32.mrb[18].mxu0 }
 0x43c   : > { %v1544_v3 = vpack.c.bf16 %v4728_v35, %v4727_v32  ;;  %v1475_v23 = vpop.f32.mrb[19].mxu0 }
 0x43d   : > { %v1543_v1 = vpack.c.bf16 %v1475_v23, %v1472_v34 }
 0x43f   : > { %4759 = vmatprep.mubr.msk.bf16.mxu1 %vm1552_vm2, %v1543_v1 }
 0x440   : > { %4760 = vmatmul.mubr.msk.bf16.vlgmr.msra.gmra.mrb[0].mxu1 %vm1552_vm2, %v1544_v3 }
 0x441   : > { %v4731_v5 = vpop.f32.mrb[20].mxu0  ;;  %4776 = vmatpush3.bf16.msra.mxu1 %v5195_v57  ;;  %v7236_v57 = vrot.slane %v1766_v63, %v1769_v10 }
 0x442   : > { %v1488_v45 = vpop.f32.mrb[21].mxu0  ;;  %4777 = vmatprep.subr.bf16.mxu1 %v5196_v38 }
 0x443   : > { %v4732_v15 = vpop.f32.mrb[22].mxu0 }
 0x444   : > { %v1546_v48 = vpack.c.bf16 %v4732_v15, %v4731_v5  ;;  %v1491_v14 = vpop.f32.mrb[23].mxu0 }
 0x445   : > { %v1545_v21 = vpack.c.bf16 %v1491_v14, %v1488_v45  ;;  %4778 = vmatpush3.bf16.msra.mxu1 %v5196_v38 }
 0x446   : > { %4779 = vmatprep.subr.bf16.mxu1 %v5197_v28 }
 0x447   : > { %4763 = vmatprep.mubr.msk.bf16.mxu1 %vm1552_vm2, %v1545_v21 }
 0x448   : > { %4764 = vmatmul.mubr.msk.bf16.gmra.mrb[4].mxu1 %vm1552_vm2, %v1546_v48 }
 0x449   : > { %v4735_v46 = vpop.f32.mrb[24].mxu0  ;;  %4780 = vmatpush3.bf16.msra.mxu1 %v5197_v28 }
 0x44a   : > { %v1504_v27 = vpop.f32.mrb[25].mxu0  ;;  %4781 = vmatprep.subr.bf16.mxu1 %v5198_v43 }
 0x44b   : > { %v4736_v13 = vpop.f32.mrb[26].mxu0 }
 0x44c   : > { %v1548_v36 = vpack.c.bf16 %v4736_v13, %v4735_v46  ;;  %v1507_v50 = vpop.f32.mrb[27].mxu0 }
 0x44d   : > { %v1547_v51 = vpack.c.bf16 %v1507_v50, %v1504_v27  ;;  %4782 = vmatpush3.bf16.msra.mxu1 %v5198_v43 }
 0x44e   : > { %4783 = vmatprep.subr.bf16.mxu1 %v5199_v58 }
 0x44f   : > { %4767 = vmatprep.mubr.msk.bf16.mxu1 %vm1552_vm2, %v1547_v51 }
 0x450   : > { %4768 = vmatmul.mubr.msk.bf16.gmra.mrb[8].mxu1 %vm1552_vm2, %v1548_v36 }
 0x451   : > { %v4739_v49 = vpop.f32.mrb[28].mxu0  ;;  %4784 = vmatpush3.bf16.msra.mxu1 %v5199_v58 }
 0x452   : > { %v1520_v55 = vpop.f32.mrb[29].mxu0  ;;  %4785 = vmatprep.subr.bf16.mxu1 %v5200_v8 }
 0x453   : > { %v4740_v54 = vpop.f32.mrb[30].mxu0 }
 0x454   : > { %v1550_v31 = vpack.c.bf16 %v4740_v54, %v4739_v49  ;;  %v1523_v39 = vpop.f32.mrb[31].mxu0 }
 0x455   : > { %v1549_v52 = vpack.c.bf16 %v1523_v39, %v1520_v55  ;;  %4786 = vmatpush3.bf16.msra.mxu1 %v5200_v8 }
 0x456   : > { %4787 = vmatprep.subr.bf16.mxu1 %v5201_v16 }
 0x457   : > { %4771 = vmatprep.mubr.msk.bf16.mxu1 %vm1552_vm2, %v1549_v52 }
 0x458   : > { %4772 = vmatmul.mubr.msk.bf16.gmra.mrb[12].mxu1 %vm1552_vm2, %v1550_v31 }
 0x459   : > { %4788 = vmatpush3.bf16.msra.mxu1 %v5201_v16 }
 0x45a   : > { %4789 = vmatprep.subr.bf16.mxu1 %v5202_v9 }
 0x45d   : > { %4790 = vmatpush3.bf16.msra.mxu1 %v5202_v9 }
 0x4f3   : > { %v4745_v4 = vpop.f32.mrb[32].mxu0 }
 0x4f4   : > { %v1809_v6 = vmul.f32 %v4745_v4, %v7232_v17  ;;  %v1845_v47 = vmul.f32 %v4745_v4, %v7234_v40  ;;  %v1639_v7 = vpop.f32.mrb[33].mxu0  ;;  %v1773_v42 = vmul.f32 %v4745_v4, %v7236_v57 }
 0x4f5   : > { %v1807_v56 = vmul.f32 %v7232_v17, %v1639_v7  ;;  %v1843_v22 = vmul.f32 %v7234_v40, %v1639_v7  ;;  %v4746_v25 = vpop.f32.mrb[34].mxu0  ;;  %v1771_v61 = vmul.f32 %v7236_v57, %v1639_v7 }
 0x4f6   : > { %v1877_v29 = vmax.f32 %v1809_v6, %v1845_v47  ;;  %v1810_v59 = vmul.f32 %v4746_v25, %v7232_v17  ;;  %v1846_v20 = vmul.f32 %v4746_v25, %v7234_v40  ;;  %v1642_v37 = vpop.f32.mrb[35].mxu0  ;;  %v1774_v19 = vmul.f32 %v4746_v25, %v7236_v57 }
 0x4f7   : > { %v1875_v24 = vmax.f32 %v1807_v56, %v1843_v22  ;;  %v1808_v26 = vmul.f32 %v7232_v17, %v1642_v37  ;;  %v1844_v60 = vmul.f32 %v7234_v40, %v1642_v37  ;;  %v1772_v0 = vmul.f32 %v7236_v57, %v1642_v37 }
 0x4f8   : > { %v1909_v11 = vsub.f32 %v1773_v42, %v1877_v29  ;;  %v1878_v44 = vmax.f32 %v1810_v59, %v1846_v20 }
 0x4f9   : > { %v1907_v41 = vsub.f32 %v1771_v61, %v1875_v24  ;;  %v1876_v2 = vmax.f32 %v1808_v26, %v1844_v60 }
 0x4fa   : > { %v1943_v12 = vmul.f32 1.442695, %v1909_v11  ;;  %v1910_v30 = vsub.f32 %v1774_v19, %v1878_v44 }
 0x4fb   : > { %v1939_v32 = vmul.f32 1.442695, %v1907_v41  ;;  %v1908_v34 = vsub.f32 %v1772_v0, %v1876_v2  ;;  %v4749_v35 = vpop.f32.mrb[36].mxu0 }
 0x4fc   : > { %5285 = vpow2.f32 %v1943_v12  ;;  %v1945_v3 = vmul.f32 1.442695, %v1910_v30  ;;  %v1813_v23 = vmul.f32 %v4749_v35, %v7232_v17  ;;  %v1655_v1 = vpop.f32.mrb[37].mxu0  ;;  %v1849_v5 = vmul.f32 %v4749_v35, %v7234_v40 }
 0x4fd   : > { %5287 = vpow2.f32 %v1939_v32  ;;  %v1941_v38 = vmul.f32 1.442695, %v1908_v34  ;;  %v4750_v45 = vpop.f32.mrb[38].mxu0  ;;  %v1777_v15 = vmul.f32 %v4749_v35, %v7236_v57  ;;  %v1811_v48 = vmul.f32 %v7232_v17, %v1655_v1 }
 0x4fe   : > { %5289 = vpow2.f32 %v1945_v3  ;;  %v1847_v14 = vmul.f32 %v7234_v40, %v1655_v1  ;;  %v1658_v21 = vpop.f32.mrb[39].mxu0  ;;  %v1881_v46 = vmax.f32 %v1813_v23, %v1849_v5  ;;  %v1814_v27 = vmul.f32 %v4750_v45, %v7232_v17 }
 0x4ff   : > { %5291 = vpow2.f32 %v1941_v38  ;;  %v1850_v13 = vmul.f32 %v4750_v45, %v7234_v40  ;;  %v1775_v36 = vmul.f32 %v7236_v57, %v1655_v1  ;;  %v1812_v51 = vmul.f32 %v7232_v17, %v1658_v21 }
 0x500   : > { %v1879_v50 = vmax.f32 %v1811_v48, %v1847_v14  ;;  %v1848_v49 = vmul.f32 %v7234_v40, %v1658_v21  ;;  %v1913_v55 = vsub.f32 %v1777_v15, %v1881_v46  ;;  %v1778_v54 = vmul.f32 %v4750_v45, %v7236_v57 }
 0x501   : > { %v1882_v31 = vmax.f32 %v1814_v27, %v1850_v13  ;;  %v1776_v52 = vmul.f32 %v7236_v57, %v1658_v21 }
 0x502   : > { %v1911_v39 = vsub.f32 %v1775_v36, %v1879_v50  ;;  %v1880_v28 = vmax.f32 %v1812_v51, %v1848_v49  ;;  %v1951_v43 = vmul.f32 1.442695, %v1913_v55 }
 0x503   : > { %v1914_v58 = vsub.f32 %v1778_v54, %v1882_v31  ;;  %v4753_v8 = vpop.f32.mrb[40].mxu0 }
 0x504   : > { %v1947_v16 = vmul.f32 1.442695, %v1911_v39  ;;  %v1912_v9 = vsub.f32 %v1776_v52, %v1880_v28  ;;  %v1817_v53 = vmul.f32 %v4753_v8, %v7232_v17  ;;  %v1671_v33 = vpop.f32.mrb[41].mxu0  ;;  %5293 = vpow2.f32 %v1951_v43 }
 0x505   : > { %v1953_v18 = vmul.f32 1.442695, %v1914_v58  ;;  %v1853_v62 = vmul.f32 %v4753_v8, %v7234_v40  ;;  %v4754_v63 = vpop.f32.mrb[42].mxu0  ;;  %v1815_v6 = vmul.f32 %v7232_v17, %v1671_v33  ;;  %v1851_v47 = vmul.f32 %v7234_v40, %v1671_v33 }
 0x506   : > { %v7264_v10 = vpop.eup %5285  ;;  %5295 = vpow2.f32 %v1947_v16  ;;  %v1949_v4 = vmul.f32 1.442695, %v1912_v9  ;;  %v1674_v7 = vpop.f32.mrb[43].mxu0  ;;  %v1781_v22 = vmul.f32 %v4753_v8, %v7236_v57  ;;  %v1818_v42 = vmul.f32 %v4754_v63, %v7232_v17 }
 0x507   : > { %v7268_v56 = vpop.eup %5287  ;;  %5297 = vpow2.f32 %v1953_v18  ;;  %v1885_v25 = vmax.f32 %v1817_v53, %v1853_v62  ;;  %v1883_v59 = vmax.f32 %v1815_v6, %v1851_v47  ;;  %v1854_v20 = vmul.f32 %v4754_v63, %v7234_v40 }
 0x508   : > { %v7272_v29 = vpop.eup %5289  ;;  %5299 = vpow2.f32 %v1949_v4  ;;  %v1779_v24 = vmul.f32 %v7236_v57, %v1671_v33  ;;  %v1816_v26 = vmul.f32 %v7232_v17, %v1674_v7  ;;  %v1852_v60 = vmul.f32 %v7234_v40, %v1674_v7 }
 0x509   : > { %v7275_v37 = vpop.eup %5291  ;;  %v1917_v61 = vsub.f32 %v1781_v22, %v1885_v25  ;;  %v1782_v11 = vmul.f32 %v4754_v63, %v7236_v57  ;;  %v1886_v19 = vmax.f32 %v1818_v42, %v1854_v20  ;;  %v1780_v0 = vmul.f32 %v7236_v57, %v1674_v7 }
 0x50a   : > { %v2003_v44 = vpack.c.bf16 %v7275_v37, %v7268_v56  ;;  %v1915_v41 = vsub.f32 %v1779_v24, %v1883_v59  ;;  %v1884_v2 = vmax.f32 %v1816_v26, %v1852_v60  ;;  %v2004_v30 = vpack.c.bf16 %v7272_v29, %v7264_v10 }
 0x50b   : > { %v4757_v12 = vpop.f32.mrb[44].mxu0  ;;  %v1918_v32 = vsub.f32 %v1782_v11, %v1886_v19  ;;  %v1959_v3 = vmul.f32 1.442695, %v1917_v61 }
 0x50c   : > { %v1821_v34 = vmul.f32 %v4757_v12, %v7232_v17  ;;  %v1687_v35 = vpop.f32.mrb[45].mxu0  ;;  %4791 = vmatprep.mubr.bf16.mxu1 %v2003_v44  ;;  %v1916_v23 = vsub.f32 %v1780_v0, %v1884_v2  ;;  %v1857_v1 = vmul.f32 %v4757_v12, %v7234_v40  ;;  %v1955_v21 = vmul.f32 1.442695, %v1915_v41 }
 0x50d   : > { %v4758_v38 = vpop.f32.mrb[46].mxu0  ;;  %4792 = vmatmul.mubr.bf16.vlgmr.msra.gmra.mrb[16].mxu1 %v2004_v30  ;;  %v1961_v5 = vmul.f32 1.442695, %v1918_v32  ;;  %v1819_v45 = vmul.f32 %v7232_v17, %v1687_v35  ;;  %v1855_v15 = vmul.f32 %v7234_v40, %v1687_v35  ;;  %v1785_v50 = vmul.f32 %v4757_v12, %v7236_v57 }
 0x50e   : > { %v1690_v48 = vpop.f32.mrb[47].mxu0  ;;  %v7290_v14 = vpop.eup %5293  ;;  %v1957_v46 = vmul.f32 1.442695, %v1916_v23  ;;  %v1889_v27 = vmax.f32 %v1821_v34, %v1857_v1  ;;  %v1822_v13 = vmul.f32 %v4758_v38, %v7232_v17  ;;  %v1858_v49 = vmul.f32 %v4758_v38, %v7234_v40 }
 0x50f   : > { %5301 = vpow2.f32 %v1961_v5  ;;  %v1887_v51 = vmax.f32 %v1819_v45, %v1855_v15  ;;  %v1783_v54 = vmul.f32 %v7236_v57, %v1687_v35  ;;  %v1820_v31 = vmul.f32 %v7232_v17, %v1690_v48 }
 0x510   : > { %v7293_v36 = vpop.eup %5295  ;;  %5303 = vpow2.f32 %v1959_v3  ;;  %v1856_v39 = vmul.f32 %v7234_v40, %v1690_v48  ;;  %v1921_v28 = vsub.f32 %v1785_v50, %v1889_v27  ;;  %v1786_v43 = vmul.f32 %v4758_v38, %v7236_v57 }
 0x511   : > { %v7297_v55 = vpop.eup %5297  ;;  %5305 = vpow2.f32 %v1957_v46  ;;  %v1890_v58 = vmax.f32 %v1822_v13, %v1858_v49  ;;  %v1784_v8 = vmul.f32 %v7236_v57, %v1690_v48  ;;  %v1919_v33 = vsub.f32 %v1783_v54, %v1887_v51 }
 0x512   : > { %v7302_v52 = vpop.eup %5299  ;;  %5307 = vpow2.f32 %v1955_v21  ;;  %v1888_v16 = vmax.f32 %v1820_v31, %v1856_v39  ;;  %v2006_v4 = vpack.c.bf16 %v7297_v55, %v7290_v14  ;;  %v1967_v22 = vmul.f32 1.442695, %v1921_v28 }
 0x513   : > { %v4761_v9 = vpop.f32.mrb[0].mxu1  ;;  %v2005_v53 = vpack.c.bf16 %v7302_v52, %v7293_v36  ;;  %v1922_v18 = vsub.f32 %v1786_v43, %v1890_v58  ;;  %v1963_v11 = vmul.f32 1.442695, %v1919_v33 }
 0x514   : > { %v1825_v62 = vmul.f32 %v4761_v9, %v7232_v17  ;;  %v1703_v63 = vpop.f32.mrb[1].mxu1  ;;  %v1920_v6 = vsub.f32 %v1784_v8, %v1888_v16  ;;  %v1861_v47 = vmul.f32 %v4761_v9, %v7234_v40  ;;  %v1789_v24 = vmul.f32 %v4761_v9, %v7236_v57 }
 0x515   : > { %4795 = vmatprep.mubr.bf16.mxu1 %v2005_v53  ;;  %v4762_v7 = vpop.f32.mrb[2].mxu1  ;;  %v1969_v25 = vmul.f32 1.442695, %v1922_v18  ;;  %v1823_v42 = vmul.f32 %v7232_v17, %v1703_v63  ;;  %v1859_v59 = vmul.f32 %v7234_v40, %v1703_v63  ;;  %v1787_v19 = vmul.f32 %v7236_v57, %v1703_v63 }
 0x516   : > { %4796 = vmatmul.mubr.bf16.gmra.mrb[20].mxu1 %v2006_v4  ;;  %v1706_v20 = vpop.f32.mrb[3].mxu1  ;;  %v1965_v61 = vmul.f32 1.442695, %v1920_v6  ;;  %v1893_v26 = vmax.f32 %v1825_v62, %v1861_v47  ;;  %v1826_v60 = vmul.f32 %v4762_v7, %v7232_v17  ;;  %v1862_v41 = vmul.f32 %v4762_v7, %v7234_v40 }
 0x517   : > { %v1891_v44 = vmax.f32 %v1823_v42, %v1859_v59  ;;  %5309 = vpow2.f32 %v1969_v25  ;;  %v1824_v2 = vmul.f32 %v7232_v17, %v1706_v20  ;;  %v1860_v12 = vmul.f32 %v7234_v40, %v1706_v20 }
 0x518   : > { %v1925_v0 = vsub.f32 %v1789_v24, %v1893_v26  ;;  %5311 = vpow2.f32 %v1965_v61  ;;  %v1790_v34 = vmul.f32 %v4762_v7, %v7236_v57  ;;  %v1894_v35 = vmax.f32 %v1826_v60, %v1862_v41 }
 0x519   : > { %v7320_v30 = vpop.eup %5301  ;;  %v1923_v32 = vsub.f32 %v1787_v19, %v1891_v44  ;;  %5313 = vpow2.f32 %v1967_v22  ;;  %v1788_v23 = vmul.f32 %v7236_v57, %v1706_v20  ;;  %v1892_v1 = vmax.f32 %v1824_v2, %v1860_v12 }
 0x51a   : > { %v7323_v3 = vpop.eup %5303  ;;  %5315 = vpow2.f32 %v1963_v11  ;;  %v1975_v45 = vmul.f32 1.442695, %v1925_v0  ;;  %v1926_v15 = vsub.f32 %v1790_v34, %v1894_v35 }
 0x51b   : > { %v4765_v38 = vpop.f32.mrb[4].mxu1  ;;  %v7326_v5 = vpop.eup %5305  ;;  %v1971_v27 = vmul.f32 1.442695, %v1923_v32  ;;  %v1924_v13 = vsub.f32 %v1788_v23, %v1892_v1  ;;  %v2008_v49 = vpack.c.bf16 %v7320_v30, %v7323_v3 }
 0x51c   : > { %v1829_v48 = vmul.f32 %v4765_v38, %v7232_v17  ;;  %v1719_v21 = vpop.f32.mrb[5].mxu1  ;;  %v7329_v46 = vpop.eup %5307  ;;  %v1865_v50 = vmul.f32 %v4765_v38, %v7234_v40  ;;  %v1977_v54 = vmul.f32 1.442695, %v1926_v15  ;;  %v1793_v31 = vmul.f32 %v4765_v38, %v7236_v57 }
 0x51d   : > { %v4766_v51 = vpop.f32.mrb[6].mxu1  ;;  %v1827_v39 = vmul.f32 %v7232_v17, %v1719_v21  ;;  %v1863_v28 = vmul.f32 %v7234_v40, %v1719_v21  ;;  %v1973_v58 = vmul.f32 1.442695, %v1924_v13  ;;  %v1791_v16 = vmul.f32 %v7236_v57, %v1719_v21 }
 0x51e   : > { %v1722_v43 = vpop.f32.mrb[7].mxu1  ;;  %v1897_v8 = vmax.f32 %v1829_v48, %v1865_v50  ;;  %v2007_v9 = vpack.c.bf16 %v7326_v5, %v7329_v46  ;;  %5317 = vpow2.f32 %v1977_v54  ;;  %v1830_v33 = vmul.f32 %v4766_v51, %v7232_v17 }
 0x51f   : > { %v1895_v53 = vmax.f32 %v1827_v39, %v1863_v28  ;;  %v1866_v18 = vmul.f32 %v4766_v51, %v7234_v40  ;;  %5319 = vpow2.f32 %v1973_v58  ;;  %v1794_v62 = vmul.f32 %v4766_v51, %v7236_v57 }
 0x520   : > { %4799 = vmatprep.mubr.bf16.mxu1 %v2007_v9  ;;  %v1828_v63 = vmul.f32 %v7232_v17, %v1722_v43  ;;  %v1929_v4 = vsub.f32 %v1793_v31, %v1897_v8  ;;  %v1864_v7 = vmul.f32 %v7234_v40, %v1722_v43  ;;  %5321 = vpow2.f32 %v1975_v45 }
 0x521   : > { %v1927_v6 = vsub.f32 %v1791_v16, %v1895_v53  ;;  %v1898_v47 = vmax.f32 %v1830_v33, %v1866_v18  ;;  %4800 = vmatmul.mubr.bf16.gmra.mrb[24].mxu1 %v2008_v49  ;;  %v7345_v22 = vpop.eup %5309  ;;  %5323 = vpow2.f32 %v1971_v27  ;;  %v1792_v20 = vmul.f32 %v7236_v57, %v1722_v43 }
 0x522   : > { %v7347_v42 = vpop.eup %5311  ;;  %v1896_v61 = vmax.f32 %v1828_v63, %v1864_v7  ;;  %v1983_v0 = vmul.f32 1.442695, %v1929_v4 }
 0x523   : > { %v4769_v25 = vpop.f32.mrb[8].mxu1  ;;  %v1930_v59 = vsub.f32 %v1794_v62, %v1898_v47  ;;  %v7350_v26 = vpop.eup %5313  ;;  %v1979_v60 = vmul.f32 1.442695, %v1927_v6 }
 0x524   : > { %v1735_v24 = vpop.f32.mrb[9].mxu1  ;;  %v1833_v11 = vmul.f32 %v4769_v25, %v7232_v17  ;;  %v1869_v19 = vmul.f32 %v4769_v25, %v7234_v40  ;;  %v7354_v41 = vpop.eup %5315  ;;  %v1928_v2 = vsub.f32 %v1792_v20, %v1896_v61  ;;  %v2010_v32 = vpack.c.bf16 %v7345_v22, %v7350_v26 }
 0x525   : > { %v4770_v44 = vpop.f32.mrb[10].mxu1  ;;  %v1831_v12 = vmul.f32 %v7232_v17, %v1735_v24  ;;  %v1985_v35 = vmul.f32 1.442695, %v1930_v59  ;;  %v1867_v1 = vmul.f32 %v7234_v40, %v1735_v24  ;;  %v2009_v38 = vpack.c.bf16 %v7347_v42, %v7354_v41 }
 0x526   : > { %v1738_v34 = vpop.f32.mrb[11].mxu1  ;;  %v1901_v23 = vmax.f32 %v1833_v11, %v1869_v19  ;;  %v1981_v45 = vmul.f32 1.442695, %v1928_v2  ;;  %v1797_v15 = vmul.f32 %v4769_v25, %v7236_v57  ;;  %v1834_v48 = vmul.f32 %v4770_v44, %v7232_v17 }
 0x527   : > { %v1870_v21 = vmul.f32 %v4770_v44, %v7234_v40  ;;  %5325 = vpow2.f32 %v1979_v60  ;;  %v1795_v27 = vmul.f32 %v7236_v57, %v1735_v24  ;;  %v1899_v13 = vmax.f32 %v1831_v12, %v1867_v1  ;;  %4803 = vmatprep.mubr.bf16.mxu1 %v2009_v38 }
 0x528   : > { %v1832_v50 = vmul.f32 %v7232_v17, %v1738_v34  ;;  %v7367_v51 = vpop.eup %5317  ;;  %5327 = vpow2.f32 %v1981_v45  ;;  %v1798_v49 = vmul.f32 %v4770_v44, %v7236_v57  ;;  %v1868_v31 = vmul.f32 %v7234_v40, %v1738_v34 }
 0x529   : > { %v1902_v54 = vmax.f32 %v1834_v48, %v1870_v21  ;;  %4804 = vmatmul.mubr.bf16.gmra.mrb[28].mxu1 %v2010_v32  ;;  %v7371_v39 = vpop.eup %5319  ;;  %5329 = vpow2.f32 %v1985_v35  ;;  %v1933_v28 = vsub.f32 %v1797_v15, %v1901_v23  ;;  %v1931_v43 = vsub.f32 %v1795_v27, %v1899_v13 }
 0x52a   : > { %v1796_v16 = vmul.f32 %v7236_v57, %v1738_v34  ;;  %v1900_v9 = vmax.f32 %v1832_v50, %v1868_v31  ;;  %v7374_v33 = vpop.eup %5321  ;;  %5331 = vpow2.f32 %v1983_v0 }
 0x52b   : > { %v4773_v58 = vpop.f32.mrb[12].mxu1  ;;  %v1934_v8 = vsub.f32 %v1798_v49, %v1902_v54  ;;  %v1987_v18 = vmul.f32 1.442695, %v1931_v43  ;;  %v7378_v6 = vpop.eup %5323  ;;  %v1991_v20 = vmul.f32 1.442695, %v1933_v28  ;;  %v2012_v60 = vpack.c.bf16 %v7367_v51, %v7374_v33 }
 0x52c   : > { %v1751_v53 = vpop.f32.mrb[13].mxu1  ;;  %v1837_v62 = vmul.f32 %v4773_v58, %v7232_v17  ;;  %v1873_v63 = vmul.f32 %v4773_v58, %v7234_v40  ;;  %v1932_v47 = vsub.f32 %v1796_v16, %v1900_v9  ;;  %v2011_v24 = vpack.c.bf16 %v7371_v39, %v7378_v6 }
 0x52d   : > { %v4774_v4 = vpop.f32.mrb[14].mxu1  ;;  %v1835_v7 = vmul.f32 %v7232_v17, %v1751_v53  ;;  %v1871_v25 = vmul.f32 %v7234_v40, %v1751_v53  ;;  %v1993_v61 = vmul.f32 1.442695, %v1934_v8  ;;  %v1799_v19 = vmul.f32 %v7236_v57, %v1751_v53 }
 0x52e   : > { %v1754_v59 = vpop.f32.mrb[15].mxu1  ;;  %v1989_v11 = vmul.f32 1.442695, %v1932_v47  ;;  %v1838_v0 = vmul.f32 %v4774_v4, %v7232_v17  ;;  %5333 = vpow2.f32 %v1987_v18  ;;  %v1905_v2 = vmax.f32 %v1837_v62, %v1873_v63  ;;  %4807 = vmatprep.mubr.bf16.mxu1 %v2011_v24  ;;  %v5206_v24 = vld [vmem:[%s6706_s4 + $0x18] sm:$0xff]  }
 0x52f   : > { %v1903_v44 = vmax.f32 %v1835_v7, %v1871_v25  ;;  %v1874_v12 = vmul.f32 %v4774_v4, %v7234_v40  ;;  %v1836_v32 = vmul.f32 %v7232_v17, %v1754_v59  ;;  %v1872_v35 = vmul.f32 %v7234_v40, %v1754_v59 }
 0x530   : > { %5335 = vpow2.f32 %v1989_v11  ;;  %v1801_v1 = vmul.f32 %v4773_v58, %v7236_v57  ;;  %v1802_v38 = vmul.f32 %v4774_v4, %v7236_v57  ;;  %v1800_v48 = vmul.f32 %v7236_v57, %v1754_v59  ;;  %v5203_v59 = vld [vmem:[%s6706_s4] sm:$0xff]   ;;  %v5208_v11 = vld [vmem:[%s6706_s4 + $0x28] sm:$0xff]  }
 0x531   : > { %v1935_v34 = vsub.f32 %v1799_v19, %v1903_v44  ;;  %4808 = vmatmul.mubr.bf16.gmra.mrb[32].mxu1 %v2012_v60  ;;  %v7391_v23 = vpop.eup %5325  ;;  %5337 = vpow2.f32 %v1993_v61  ;;  %v1906_v45 = vmax.f32 %v1838_v0, %v1874_v12  ;;  %v1904_v21 = vmax.f32 %v1836_v32, %v1872_v35  ;;  %4857 = vmatprep.subr.bf16.mxu1 %v5203_v59  ;;  %v5205_v61 = vld [vmem:[%s6706_s4 + $0x10] sm:$0xff]   ;;  %v5207_v60 = vld [vmem:[%s6706_s4 + $0x20] sm:$0xff]  }
 0x532   : > { %v7395_v15 = vpop.eup %5327  ;;  %5339 = vpow2.f32 %v1991_v20  ;;  %v1937_v27 = vsub.f32 %v1801_v1, %v1905_v2  ;;  %v5204_v20 = vld [vmem:[%s6706_s4 + $0x8] sm:$0xff]   ;;  %4858 = vmatpush3.bf16.msra.mxu1 %v5203_v59  ;;  %v5209_v19 = vld [vmem:[%s6706_s4 + $0x30] sm:$0xff]  }
 0x533   : > { %v7398_v17 = vpop.eup %5329  ;;  %v1995_v13 = vmul.f32 1.442695, %v1935_v34  ;;  %v1938_v50 = vsub.f32 %v1802_v38, %v1906_v45  ;;  %v2013_v40 = vpack.c.bf16 %v7395_v15, %v7391_v23  ;;  %v1936_v49 = vsub.f32 %v1800_v48, %v1904_v21  ;;  %4859 = vmatprep.subr.bf16.mxu1 %v5204_v20 }
 0x534   : > { %v7402_v54 = vpop.eup %5331  ;;  %v1999_v58 = vmul.f32 1.442695, %v1937_v27 }
 0x535   : > { %v2001_v31 = vmul.f32 1.442695, %v1938_v50  ;;  %4811 = vmatprep.mubr.bf16.mxu1 %v2013_v40  ;;  %v1997_v28 = vmul.f32 1.442695, %v1936_v49  ;;  %v2014_v43 = vpack.c.bf16 %v7398_v17, %v7402_v54  ;;  %5341 = vpow2.f32 %v1995_v13 }
 0x536   : > { %4860 = vmatpush3.bf16.msra.mxu1 %v5204_v20 }
 0x537   : > { %5343 = vpow2.f32 %v1997_v28  ;;  %4861 = vmatprep.subr.bf16.mxu1 %v5205_v61 }
 0x538   : > { %v7406_v57 = vpop.eup %5333  ;;  %5345 = vpow2.f32 %v2001_v31 }
 0x539   : > { %4812 = vmatmul.mubr.bf16.gmra.mrb[36].mxu1 %v2014_v43  ;;  %5347 = vpow2.f32 %v1999_v58 }
 0x53a   : > { %v7408_v8 = vpop.eup %5335  ;;  %4862 = vmatpush3.bf16.msra.mxu1 %v5205_v61 }
 0x53b   : > { %v7410_v16 = vpop.eup %5337  ;;  %v2015_v9 = vpack.c.bf16 %v7408_v8, %v7406_v57  ;;  %4863 = vmatprep.subr.bf16.mxu1 %v5206_v24 }
 0x53c   : > { %v7414_v53 = vpop.eup %5339 }
 0x53d   : > { %4815 = vmatprep.mubr.bf16.mxu1 %v2015_v9  ;;  %v2016_v18 = vpack.c.bf16 %v7410_v16, %v7414_v53 }
 0x53e   : > { %4864 = vmatpush3.bf16.msra.mxu1 %v5206_v24 }
 0x53f   : > { %v7418_v62 = vpop.eup %5341  ;;  %4865 = vmatprep.subr.bf16.mxu1 %v5207_v60 }
 0x541   : > { %4816 = vmatmul.mubr.bf16.gmra.mrb[40].mxu1 %v2016_v18  ;;  %v7420_v63 = vpop.eup %5343 }
 0x542   : > { %v7422_v4 = vpop.eup %5345  ;;  %v2017_v47 = vpack.c.bf16 %v7420_v63, %v7418_v62  ;;  %4866 = vmatpush3.bf16.msra.mxu1 %v5207_v60 }
 0x543   : > { %v7426_v7 = vpop.eup %5347  ;;  %4867 = vmatprep.subr.bf16.mxu1 %v5208_v11 }
 0x544   : > { %4819 = vmatprep.mubr.bf16.mxu1 %v2017_v47  ;;  %v2018_v25 = vpack.c.bf16 %v7422_v4, %v7426_v7 }
 0x546   : > { %4868 = vmatpush3.bf16.msra.mxu1 %v5208_v11 }
 0x547   : > { %4869 = vmatprep.subr.bf16.mxu1 %v5209_v19 }
 0x549   : > { %4820 = vmatmul.mubr.bf16.gmra.mrb[44].mxu1 %v2018_v25 }
 0x54a   : > { %4870 = vmatpush3.bf16.msra.mxu1 %v5209_v19 }
 0x5e0   : > { %v4793_v44 = vpop.f32.mrb[16].mxu1 }
 0x5e1   : > { %5349 = vrcp.f32 %v4793_v44  ;;  %v2117_v0 = vpop.f32.mrb[17].mxu1 }
 0x5e2   : > { %5351 = vrcp.f32 %v2117_v0  ;;  %v4794_v2 = vpop.f32.mrb[18].mxu1 }
 0x5e3   : > { %5353 = vrcp.f32 %v4794_v2  ;;  %v2120_v12 = vpop.f32.mrb[19].mxu1 }
 0x5e4   : > { %5355 = vrcp.f32 %v2120_v12 }
 0x5e9   : > { %v4797_v32 = vpop.f32.mrb[20].mxu1 }
 0x5ea   : > { %5357 = vrcp.f32 %v4797_v32  ;;  %v2133_v34 = vpop.f32.mrb[21].mxu1 }
 0x5eb   : > { %v5350_v35 = vpop.eup %5349  ;;  %5359 = vrcp.f32 %v2133_v34  ;;  %v4798_v1 = vpop.f32.mrb[22].mxu1 }
 0x5ec   : > { %v5352_v38 = vpop.eup %5351  ;;  %5361 = vrcp.f32 %v4798_v1  ;;  %v2136_v45 = vpop.f32.mrb[23].mxu1 }
 0x5ed   : > { %v5354_v48 = vpop.eup %5353  ;;  %5363 = vrcp.f32 %v2136_v45 }
 0x5ee   : > { %v5356_v21 = vpop.eup %5355  ;;  %v2277_v27 = vpack.c.bf16 %v5354_v48, %v5350_v35 }
 0x5ef   : > { %v2276_v13 = vpack.c.bf16 %v5356_v21, %v5352_v38 }
 0x5f1   : > { %4825 = vmatprep.mubr.msk.bf16.mxu0 %vm1552_vm2, %v2276_v13 }
 0x5f2   : > { %4826 = vmatmul.mubr.msk.bf16.vlgmr.msra.gmra.mrb[48].mxu0 %vm1552_vm2, %v2277_v27 }
 0x5f4   : > { %v5358_v50 = vpop.eup %5357  ;;  %v4801_v49 = vpop.f32.mrb[24].mxu1 }
 0x5f5   : > { %v5360_v40 = vpop.eup %5359  ;;  %5365 = vrcp.f32 %v4801_v49  ;;  %v2149_v28 = vpop.f32.mrb[25].mxu1 }
 0x5f6   : > { %v5362_v31 = vpop.eup %5361  ;;  %5367 = vrcp.f32 %v2149_v28  ;;  %v4802_v58 = vpop.f32.mrb[26].mxu1 }
 0x5f7   : > { %v5364_v43 = vpop.eup %5363  ;;  %v2279_v9 = vpack.c.bf16 %v5362_v31, %v5358_v50  ;;  %5369 = vrcp.f32 %v4802_v58  ;;  %v2152_v18 = vpop.f32.mrb[27].mxu1 }
 0x5f8   : > { %v2278_v47 = vpack.c.bf16 %v5364_v43, %v5360_v40  ;;  %5371 = vrcp.f32 %v2152_v18 }
 0x5fa   : > { %4829 = vmatprep.mubr.msk.bf16.mxu0 %vm1552_vm2, %v2278_v47 }
 0x5fb   : > { %4830 = vmatmul.mubr.msk.bf16.gmra.mrb[52].mxu0 %vm1552_vm2, %v2279_v9 }
 0x5fc   : > { %v4805_v25 = vpop.f32.mrb[28].mxu1 }
 0x5fd   : > { %5373 = vrcp.f32 %v4805_v25  ;;  %v2165_v59 = vpop.f32.mrb[29].mxu1 }
 0x5fe   : > { %5375 = vrcp.f32 %v2165_v59  ;;  %v4806_v20 = vpop.f32.mrb[30].mxu1 }
 0x5ff   : > { %v5366_v61 = vpop.eup %5365  ;;  %5377 = vrcp.f32 %v4806_v20  ;;  %v2168_v24 = vpop.f32.mrb[31].mxu1 }
 0x600   : > { %v5368_v60 = vpop.eup %5367  ;;  %5379 = vrcp.f32 %v2168_v24 }
 0x601   : > { %v5370_v11 = vpop.eup %5369 }
 0x602   : > { %v5372_v19 = vpop.eup %5371  ;;  %v2281_v44 = vpack.c.bf16 %v5370_v11, %v5366_v61 }
 0x603   : > { %v2280_v0 = vpack.c.bf16 %v5372_v19, %v5368_v60 }
 0x604   : > { %v4809_v2 = vpop.f32.mrb[32].mxu1 }
 0x605   : > { %5381 = vrcp.f32 %v4809_v2  ;;  %v2181_v12 = vpop.f32.mrb[33].mxu1  ;;  %4833 = vmatprep.mubr.msk.bf16.mxu0 %vm1552_vm2, %v2280_v0 }
 0x606   : > { %5383 = vrcp.f32 %v2181_v12  ;;  %v4810_v32 = vpop.f32.mrb[34].mxu1  ;;  %4834 = vmatmul.mubr.msk.bf16.gmra.mrb[56].mxu0 %vm1552_vm2, %v2281_v44 }
 0x607   : > { %v5374_v34 = vpop.eup %5373  ;;  %5385 = vrcp.f32 %v4810_v32  ;;  %v2184_v35 = vpop.f32.mrb[35].mxu1 }
 0x608   : > { %v5376_v1 = vpop.eup %5375  ;;  %5387 = vrcp.f32 %v2184_v35 }
 0x609   : > { %v5378_v38 = vpop.eup %5377 }
 0x60a   : > { %v5380_v45 = vpop.eup %5379  ;;  %v2283_v48 = vpack.c.bf16 %v5378_v38, %v5374_v34 }
 0x60b   : > { %v2282_v21 = vpack.c.bf16 %v5380_v45, %v5376_v1 }
 0x60c   : > { %v4813_v27 = vpop.f32.mrb[36].mxu1 }
 0x60d   : > { %5389 = vrcp.f32 %v4813_v27  ;;  %v2197_v13 = vpop.f32.mrb[37].mxu1  ;;  %4837 = vmatprep.mubr.msk.bf16.mxu0 %vm1552_vm2, %v2282_v21 }
 0x60e   : > { %5391 = vrcp.f32 %v2197_v13  ;;  %v4814_v50 = vpop.f32.mrb[38].mxu1  ;;  %4838 = vmatmul.mubr.msk.bf16.gmra.mrb[60].mxu0 %vm1552_vm2, %v2283_v48 }
 0x60f   : > { %v5382_v40 = vpop.eup %5381  ;;  %5393 = vrcp.f32 %v4814_v50  ;;  %v2200_v49 = vpop.f32.mrb[39].mxu1 }
 0x610   : > { %v5384_v31 = vpop.eup %5383  ;;  %5395 = vrcp.f32 %v2200_v49  ;;  %v5210_v49 = vld [vmem:[%s6706_s4 + $0x38] sm:$0xff]  }
 0x611   : > { %v5386_v28 = vpop.eup %5385  ;;  %4871 = vmatprep.subr.bf16.mxu1 %v5210_v49 }
 0x612   : > { %v5388_v43 = vpop.eup %5387  ;;  %v2285_v58 = vpack.c.bf16 %v5386_v28, %v5382_v40  ;;  %4872 = vmatpush3.bf16.msra.mxu1 %v5210_v49 }
 0x613   : > { %v2284_v9 = vpack.c.bf16 %v5388_v43, %v5384_v31 }
 0x614   : > { %v4817_v18 = vpop.f32.mrb[40].mxu1 }
 0x615   : > { %5397 = vrcp.f32 %v4817_v18  ;;  %v2213_v47 = vpop.f32.mrb[41].mxu1  ;;  %4841 = vmatprep.mubr.msk.bf16.mxu0 %vm1552_vm2, %v2284_v9 }
 0x616   : > { %5399 = vrcp.f32 %v2213_v47  ;;  %v4818_v25 = vpop.f32.mrb[42].mxu1  ;;  %4842 = vmatmul.mubr.msk.bf16.gmra.mrb[64].mxu0 %vm1552_vm2, %v2285_v58 }
 0x617   : > { %v5390_v59 = vpop.eup %5389  ;;  %5401 = vrcp.f32 %v4818_v25  ;;  %v2216_v20 = vpop.f32.mrb[43].mxu1 }
 0x618   : > { %v5392_v61 = vpop.eup %5391  ;;  %5403 = vrcp.f32 %v2216_v20 }
 0x619   : > { %v5394_v24 = vpop.eup %5393 }
 0x61a   : > { %v5396_v60 = vpop.eup %5395  ;;  %v2287_v11 = vpack.c.bf16 %v5394_v24, %v5390_v59 }
 0x61b   : > { %v2286_v19 = vpack.c.bf16 %v5396_v60, %v5392_v61 }
 0x61c   : > { %v4821_v44 = vpop.f32.mrb[44].mxu1 }
 0x61d   : > { %5405 = vrcp.f32 %v4821_v44  ;;  %v2229_v0 = vpop.f32.mrb[45].mxu1  ;;  %4845 = vmatprep.mubr.msk.bf16.mxu0 %vm1552_vm2, %v2286_v19 }
 0x61e   : > { %5407 = vrcp.f32 %v2229_v0  ;;  %v4822_v2 = vpop.f32.mrb[46].mxu1  ;;  %4846 = vmatmul.mubr.msk.bf16.gmra.mrb[68].mxu0 %vm1552_vm2, %v2287_v11 }
 0x61f   : > { %v5398_v12 = vpop.eup %5397  ;;  %5409 = vrcp.f32 %v4822_v2  ;;  %v2232_v32 = vpop.f32.mrb[47].mxu1 }
 0x620   : > { %v5400_v34 = vpop.eup %5399  ;;  %5411 = vrcp.f32 %v2232_v32 }
 0x621   : > { %v5402_v35 = vpop.eup %5401 }
 0x622   : > { %v5404_v1 = vpop.eup %5403  ;;  %v2289_v38 = vpack.c.bf16 %v5402_v35, %v5398_v12 }
 0x623   : > { %v2288_v45 = vpack.c.bf16 %v5404_v1, %v5400_v34 }
 0x625   : > { %4849 = vmatprep.mubr.msk.bf16.mxu0 %vm1552_vm2, %v2288_v45 }
 0x626   : > { %4850 = vmatmul.mubr.msk.bf16.gmra.mrb[72].mxu0 %vm1552_vm2, %v2289_v38 }
 0x627   : > { %v5406_v48 = vpop.eup %5405 }
 0x628   : > { %v5408_v21 = vpop.eup %5407 }
 0x629   : > { %v5410_v27 = vpop.eup %5409 }
 0x62a   : > { %v5412_v13 = vpop.eup %5411  ;;  %v2291_v50 = vpack.c.bf16 %v5410_v27, %v5406_v48 }
 0x62b   : > { %v2290_v40 = vpack.c.bf16 %v5412_v13, %v5408_v21 }
 0x62d   : > { %4853 = vmatprep.mubr.msk.bf16.mxu0 %vm1552_vm2, %v2290_v40 }
 0x62e   : > { %4854 = vmatmul.mubr.msk.bf16.gmra.mrb[76].mxu0 %vm1552_vm2, %v2291_v50 }
 0x6c5   : > { %v4827_v31 = vpop.f32.mrb[48].mxu0 }
 0x6c6   : > { %v2374_v28 = vpop.f32.mrb[49].mxu0  ;;  %v2503_v58 = vmul.f32 %v7264_v10, %v4827_v31 }
 0x6c7   : > { %v4828_v43 = vpop.f32.mrb[50].mxu0  ;;  %v2501_v47 = vmul.f32 %v7268_v56, %v2374_v28 }
 0x6c8   : > { %v2504_v9 = vmul.f32 %v7272_v29, %v4828_v43  ;;  %v2377_v18 = vpop.f32.mrb[51].mxu0 }
 0x6c9   : > { %v2502_v25 = vmul.f32 %v7275_v37, %v2377_v18 }
 0x6ca   : > { %v2534_v59 = vpack.c.bf16 %v2504_v9, %v2503_v58 }
 0x6cb   : > { %v2533_v20 = vpack.c.bf16 %v2502_v25, %v2501_v47 }
 0x6cd   : > { %4873 = vmatprep.mubr.bf16.mxu1 %v2533_v20 }
 0x6ce   : > { %v4831_v61 = vpop.f32.mrb[52].mxu0  ;;  %4874 = vmatmul.mubr.bf16.vlgmr.msra.gmra.mrb[48].mxu1 %v2534_v59 }
 0x6cf   : > { %v2390_v24 = vpop.f32.mrb[53].mxu0  ;;  %v2507_v11 = vmul.f32 %v7290_v14, %v4831_v61 }
 0x6d0   : > { %v4832_v60 = vpop.f32.mrb[54].mxu0  ;;  %v2505_v10 = vmul.f32 %v7293_v36, %v2390_v24 }
 0x6d1   : > { %v2508_v19 = vmul.f32 %v7297_v55, %v4832_v60  ;;  %v2393_v44 = vpop.f32.mrb[55].mxu0 }
 0x6d2   : > { %v2506_v29 = vmul.f32 %v7302_v52, %v2393_v44 }
 0x6d3   : > { %v2536_v0 = vpack.c.bf16 %v2508_v19, %v2507_v11 }
 0x6d4   : > { %v2535_v56 = vpack.c.bf16 %v2506_v29, %v2505_v10 }
 0x6d6   : > { %4877 = vmatprep.mubr.bf16.mxu1 %v2535_v56 }
 0x6d7   : > { %4878 = vmatmul.mubr.bf16.gmra.mrb[52].mxu1 %v2536_v0 }
 0x6d9   : > { %v4835_v37 = vpop.f32.mrb[56].mxu0 }
 0x6da   : > { %v2406_v2 = vpop.f32.mrb[57].mxu0  ;;  %v2511_v32 = vmul.f32 %v7323_v3, %v4835_v37  ;;  %v7486_v37 = vld [vmem:[#allocation16] ss:$0 sm:$0xff] }
 0x6db   : > { %v4836_v12 = vpop.f32.mrb[58].mxu0  ;;  %v2509_v14 = vmul.f32 %v7329_v46, %v2406_v2 }
 0x6dc   : > { %v2512_v34 = vmul.f32 %v7320_v30, %v4836_v12  ;;  %v2409_v35 = vpop.f32.mrb[59].mxu0 }
 0x6dd   : > { %v2510_v55 = vmul.f32 %v7326_v5, %v2409_v35 }
 0x6de   : > { %v2538_v1 = vpack.c.bf16 %v2512_v34, %v2511_v32 }
 0x6df   : > { %v2537_v36 = vpack.c.bf16 %v2510_v55, %v2509_v14  ;;  %v5542_v55 = vld [vmem:[%s6691_s17 + $0x10] sm:$0xff] }
 0x6e1   : > { %v4839_v38 = vpop.f32.mrb[60].mxu0  ;;  %4881 = vmatprep.mubr.bf16.mxu1 %v2537_v36  ;;  %v5543_v36 = vld [vmem:[%s6691_s17 + $0x8] sm:$0xff] }
 0x6e2   : > { %v2422_v52 = vpop.f32.mrb[61].mxu0  ;;  %4882 = vmatmul.mubr.bf16.gmra.mrb[56].mxu1 %v2538_v1  ;;  %v2515_v48 = vmul.f32 %v7350_v26, %v4839_v38 }
 0x6e3   : > { %v4840_v45 = vpop.f32.mrb[62].mxu0  ;;  %v2513_v3 = vmul.f32 %v7354_v41, %v2422_v52 }
 0x6e4   : > { %v2516_v21 = vmul.f32 %v7345_v22, %v4840_v45  ;;  %v2425_v27 = vpop.f32.mrb[63].mxu0  ;;  %v5544_v45 = vld [vmem:[%s6691_s17 + $0x18] sm:$0xff] }
 0x6e5   : > { %v2514_v30 = vmul.f32 %v7347_v42, %v2425_v27 }
 0x6e6   : > { %v2540_v13 = vpack.c.bf16 %v2516_v21, %v2515_v48 }
 0x6e7   : > { %v2539_v46 = vpack.c.bf16 %v2514_v30, %v2513_v3 }
 0x6e9   : > { %v4843_v50 = vpop.f32.mrb[64].mxu0  ;;  %4885 = vmatprep.mubr.bf16.mxu1 %v2539_v46 }
 0x6ea   : > { %v2438_v5 = vpop.f32.mrb[65].mxu0  ;;  %4886 = vmatmul.mubr.bf16.gmra.mrb[60].mxu1 %v2540_v13  ;;  %v2519_v49 = vmul.f32 %v7374_v33, %v4843_v50 }
 0x6eb   : > { %v4844_v40 = vpop.f32.mrb[66].mxu0  ;;  %v2517_v26 = vmul.f32 %v7378_v6, %v2438_v5 }
 0x6ec   : > { %v2520_v31 = vmul.f32 %v7367_v51, %v4844_v40  ;;  %v2441_v28 = vpop.f32.mrb[67].mxu0 }
 0x6ed   : > { %v2518_v22 = vmul.f32 %v7371_v39, %v2441_v28 }
 0x6ee   : > { %v2542_v43 = vpack.c.bf16 %v2520_v31, %v2519_v49  ;;  %v5545_v49 = vld [vmem:[%s6691_s17 + $0x20] sm:$0xff] }
 0x6ef   : > { %v2541_v41 = vpack.c.bf16 %v2518_v22, %v2517_v26  ;;  %v5546_v22 = vld [vmem:[%s6691_s17 + $0x30] sm:$0xff] }
 0x6f1   : > { %v4847_v58 = vpop.f32.mrb[68].mxu0  ;;  %4889 = vmatprep.mubr.bf16.mxu1 %v2541_v41  ;;  %v5547_v41 = vld [vmem:[%s6691_s17 + $0x28] sm:$0xff] }
 0x6f2   : > { %v2454_v42 = vpop.f32.mrb[69].mxu0  ;;  %4890 = vmatmul.mubr.bf16.gmra.mrb[64].mxu1 %v2542_v43  ;;  %v2523_v18 = vmul.f32 %v7402_v54, %v4847_v58 }
 0x6f3   : > { %v4848_v9 = vpop.f32.mrb[70].mxu0  ;;  %v2521_v33 = vmul.f32 %v7391_v23, %v2454_v42 }
 0x6f4   : > { %v2524_v47 = vmul.f32 %v7398_v17, %v4848_v9  ;;  %v2457_v25 = vpop.f32.mrb[71].mxu0  ;;  %v5548_v9 = vld [vmem:[%s6691_s17 + $0x38] sm:$0xff] }
 0x6f5   : > { %v2522_v51 = vmul.f32 %v7395_v15, %v2457_v25 }
 0x6f6   : > { %v2544_v59 = vpack.c.bf16 %v2524_v47, %v2523_v18 }
 0x6f7   : > { %v2543_v6 = vpack.c.bf16 %v2522_v51, %v2521_v33 }
 0x6f9   : > { %v4851_v20 = vpop.f32.mrb[72].mxu0  ;;  %4893 = vmatprep.mubr.bf16.mxu1 %v2543_v6 }
 0x6fa   : > { %v2470_v39 = vpop.f32.mrb[73].mxu0  ;;  %4894 = vmatmul.mubr.bf16.gmra.mrb[68].mxu1 %v2544_v59  ;;  %v2527_v24 = vmul.f32 %v7414_v53, %v4851_v20 }
 0x6fb   : > { %v4852_v61 = vpop.f32.mrb[74].mxu0  ;;  %v2525_v54 = vmul.f32 %v7406_v57, %v2470_v39 }
 0x6fc   : > { %v2528_v60 = vmul.f32 %v7410_v16, %v4852_v61  ;;  %v2473_v11 = vpop.f32.mrb[75].mxu0 }
 0x6fd   : > { %v2526_v17 = vmul.f32 %v7408_v8, %v2473_v11 }
 0x6fe   : > { %v2546_v19 = vpack.c.bf16 %v2528_v60, %v2527_v24  ;;  %v5549_v24 = vld [vmem:[%s6691_s17 + $0x40] sm:$0xff] }
 0x6ff   : > { %v2545_v23 = vpack.c.bf16 %v2526_v17, %v2525_v54  ;;  %v5550_v17 = vld [vmem:[%s6691_s17 + $0x50] sm:$0xff] }
 0x701   : > { %v4855_v44 = vpop.f32.mrb[76].mxu0  ;;  %4897 = vmatprep.mubr.bf16.mxu1 %v2545_v23  ;;  %v5551_v23 = vld [vmem:[%s6691_s17 + $0x48] sm:$0xff] }
 0x702   : > { %v2486_v15 = vpop.f32.mrb[77].mxu0  ;;  %4898 = vmatmul.mubr.bf16.gmra.mrb[72].mxu1 %v2546_v19  ;;  %v2531_v29 = vmul.f32 %v7426_v7, %v4855_v44 }
 0x703   : > { %v4856_v10 = vpop.f32.mrb[78].mxu0  ;;  %v2529_v16 = vmul.f32 %v7418_v62, %v2486_v15  ;;  %v5541_v62 = vld [vmem:[%s6691_s17] sm:$0xff] }
 0x704   : > { %v2532_v0 = vmul.f32 %v7422_v4, %v4856_v10  ;;  %v2489_v53 = vpop.f32.mrb[79].mxu0  ;;  %v5552_v10 = vld [vmem:[%s6691_s17 + $0x58] sm:$0xff] }
 0x705   : > { %v2530_v56 = vmul.f32 %v7420_v63, %v2489_v53 }
 0x706   : > { %v2548_v57 = vpack.c.bf16 %v2532_v0, %v2531_v29 }
 0x707   : > { %v2547_v8 = vpack.c.bf16 %v2530_v56, %v2529_v16 }
 0x709   : > { %4901 = vmatprep.mubr.bf16.mxu1 %v2547_v8 }
 0x70a   : > { %4902 = vmatmul.mubr.bf16.gmra.mrb[76].mxu1 %v2548_v57 }
 0x7a1   : > { %v4875_v2 = vpop.f32.mrb[48].mxu1 }
 0x7a2   : > { %v2654_v12 = vpop.f32.mrb[49].mxu1  ;;  %v2663_v7 = vadd.f32 %v4875_v2, %v7486_v37 }
 0x7a3   : > { %v2655_v4 = vadd.f32 %v7486_v37, %v2654_v12  ;;  %v4876_v32 = vpop.f32.mrb[50].mxu1 }
 0x7a4   : > { %v2657_v34 = vpop.f32.mrb[51].mxu1  ;;  %v2666_v63 = vadd.f32 %v4876_v32, %v7486_v37  ;;  %v7496_v1 = vadd.f32 %v5542_v55, %v2663_v7  ;;  %v5553_v7 = vld [vmem:[%s6691_s17 + $0x60] sm:$0xff]  ;;  %v5555_v55 = vld [vmem:[%s6691_s17 + $0x68] sm:$0xff] }
 0x7a5   : > { %v7491_v35 = vadd.f32 %v5541_v62, %v2655_v4  ;;  %v2658_v14 = vadd.f32 %v7486_v37, %v2657_v34 }
 0x7a6   : > { %v7504_v48 = vadd.f32 %v5544_v45, %v2666_v63  ;;  %v2821_v30 = vsel %vm800_vm0, %v7496_v1, 0.0  ;;  %v5554_v63 = vld [vmem:[%s6691_s17 + $0x70] sm:$0xff]  ;;  %v5556_v45 = vld [vmem:[%s6691_s17 + $0x78] sm:$0xff] }
 0x7a7   : > { %v7499_v38 = vadd.f32 %v5543_v36, %v2658_v14  ;;  %v2815_v52 = vsel %vm800_vm0, %v7491_v35, 0.0 }
 0x7a8   : > { %2816 = vadd.xlane.f32.xlu0 %v2815_v52  ;;  %v2824_v40 = vsel %vm800_vm0, %v7504_v48, 0.0 }
 0x7a9   : > { %v2818_v21 = vsel %vm800_vm0, %v7499_v38, 0.0 }
 0x7aa   : > { %v4879_v27 = vpop.f32.mrb[52].mxu1  ;;  %2819 = vadd.xlane.f32.xlu1 %v2818_v21 }
 0x7ab   : > { %v2670_v3 = vpop.f32.mrb[53].mxu1  ;;  %v2679_v13 = vadd.f32 %v4879_v27, %v7486_v37 }
 0x7ac   : > { %v2671_v46 = vadd.f32 %v7486_v37, %v2670_v3  ;;  %v4880_v50 = vpop.f32.mrb[54].mxu1  ;;  %2822 = vadd.xlane.f32.xlu0 %v2821_v30 }
 0x7ad   : > { %v2673_v5 = vpop.f32.mrb[55].mxu1  ;;  %v2682_v28 = vadd.f32 %v4880_v50, %v7486_v37  ;;  %v7520_v43 = vadd.f32 %v5546_v22, %v2679_v13 }
 0x7ae   : > { %v7515_v31 = vadd.f32 %v5545_v49, %v2671_v46  ;;  %v2674_v26 = vadd.f32 %v7486_v37, %v2673_v5  ;;  %2825 = vadd.xlane.f32.xlu1 %v2824_v40  ;;  %v5557_v49 = vld [vmem:[%s6691_s17 + $0x80] sm:$0xff] }
 0x7af   : > { %v7528_v18 = vadd.f32 %v5548_v9, %v2682_v28  ;;  %v2833_v25 = vsel %vm800_vm0, %v7520_v43, 0.0 }
 0x7b0   : > { %v7523_v58 = vadd.f32 %v5547_v41, %v2674_v26  ;;  %v2827_v42 = vsel %vm800_vm0, %v7515_v31, 0.0 }
 0x7b1   : > { %2828 = vadd.xlane.f32.xlu0 %v2827_v42  ;;  %v2836_v51 = vsel %vm800_vm0, %v7528_v18, 0.0  ;;  %v5558_v42 = vld [vmem:[%s6691_s17 + $0x90] sm:$0xff] }
 0x7b2   : > { %v2830_v47 = vsel %vm800_vm0, %v7523_v58, 0.0 }
 0x7b3   : > { %2831 = vadd.xlane.f32.xlu1 %v2830_v47  ;;  %v5559_v47 = vld [vmem:[%s6691_s17 + $0x88] sm:$0xff] }
 0x7b5   : > { %2834 = vadd.xlane.f32.xlu0 %v2833_v25  ;;  %v4883_v33 = vpop.f32.mrb[56].mxu1 }
 0x7b6   : > { %v2686_v59 = vpop.f32.mrb[57].mxu1  ;;  %v2695_v6 = vadd.f32 %v4883_v33, %v7486_v37 }
 0x7b7   : > { %2837 = vadd.xlane.f32.xlu1 %v2836_v51  ;;  %v2687_v20 = vadd.f32 %v7486_v37, %v2686_v59  ;;  %v4884_v39 = vpop.f32.mrb[58].mxu1  ;;  %v5560_v51 = vld [vmem:[%s6691_s17 + $0x98] sm:$0xff] }
 0x7b8   : > { %v2689_v61 = vpop.f32.mrb[59].mxu1  ;;  %v2698_v11 = vadd.f32 %v4884_v39, %v7486_v37  ;;  %v7544_v19 = vadd.f32 %v5550_v17, %v2695_v6 }
 0x7b9   : > { %v7539_v60 = vadd.f32 %v5549_v24, %v2687_v20  ;;  %v2690_v54 = vadd.f32 %v7486_v37, %v2689_v61 }
 0x7ba   : > { %v7552_v29 = vadd.f32 %v5552_v10, %v2698_v11  ;;  %v2845_v2 = vsel %vm800_vm0, %v7544_v19, 0.0 }
 0x7bb   : > { %v7547_v44 = vadd.f32 %v5551_v23, %v2690_v54  ;;  %v2839_v15 = vsel %vm800_vm0, %v7539_v60, 0.0  ;;  %v5561_v23 = vld [vmem:[%s6691_s17 + $0xa0] sm:$0xff] }
 0x7bc   : > { %2840 = vadd.xlane.f32.xlu0 %v2839_v15  ;;  %v2848_v62 = vsel %vm800_vm0, %v7552_v29, 0.0 }
 0x7bd   : > { %v4887_v0 = vpop.f32.mrb[60].mxu1  ;;  %v2842_v53 = vsel %vm800_vm0, %v7547_v44, 0.0 }
 0x7be   : > { %v2702_v16 = vpop.f32.mrb[61].mxu1  ;;  %2843 = vadd.xlane.f32.xlu1 %v2842_v53  ;;  %v2711_v56 = vadd.f32 %v4887_v0, %v7486_v37 }
 0x7bf   : > { %v2703_v57 = vadd.f32 %v7486_v37, %v2702_v16  ;;  %v4888_v8 = vpop.f32.mrb[62].mxu1  ;;  %v5562_v16 = vld [vmem:[%s6691_s17 + $0xb0] sm:$0xff] }
 0x7c0   : > { %v2705_v12 = vpop.f32.mrb[63].mxu1  ;;  %2846 = vadd.xlane.f32.xlu0 %v2845_v2  ;;  %v2714_v32 = vadd.f32 %v4888_v8, %v7486_v37  ;;  %v7568_v14 = vadd.f32 %v5554_v63, %v2711_v56 }
 0x7c1   : > { %v7561_v4 = vadd.f32 %v5553_v7, %v2703_v57  ;;  %v2706_v34 = vadd.f32 %v7486_v37, %v2705_v12  ;;  %v5563_v57 = vld [vmem:[%s6691_s17 + $0xa8] sm:$0xff]  ;;  %v5564_v12 = vld [vmem:[%s6691_s17 + $0xb8] sm:$0xff] }
 0x7c2   : > { %2849 = vadd.xlane.f32.xlu1 %v2848_v62  ;;  %v7576_v21 = vadd.f32 %v5556_v45, %v2714_v32  ;;  %v2857_v5 = vsel %vm800_vm0, %v7568_v14, 0.0 }
 0x7c3   : > { %v7571_v36 = vadd.f32 %v5555_v55, %v2706_v34  ;;  %v2851_v52 = vsel %vm800_vm0, %v7561_v4, 0.0 }
 0x7c4   : > { %2852 = vadd.xlane.f32.xlu0 %v2851_v52  ;;  %8569 = vst [vmem:[#allocation40_spill] sm:$0xff] %v7576_v21  ;;  %v2860_v41 = vsel %vm800_vm0, %v7576_v21, 0.0 }
 0x7c5   : > { %8568 = vst [vmem:[#allocation39_spill] sm:$0xff] %v7571_v36  ;;  %v4891_v27 = vpop.f32.mrb[64].mxu1  ;;  %v2854_v3 = vsel %vm800_vm0, %v7571_v36, 0.0 }
 0x7c6   : > { %v2718_v30 = vpop.f32.mrb[65].mxu1  ;;  %2855 = vadd.xlane.f32.xlu1 %v2854_v3  ;;  %v2727_v13 = vadd.f32 %v4891_v27, %v7486_v37  ;;  %v5565_v3 = vld [vmem:[%s6691_s17 + $0xc0] sm:$0xff] }
 0x7c7   : > { %v2719_v46 = vadd.f32 %v7486_v37, %v2718_v30  ;;  %v4892_v50 = vpop.f32.mrb[66].mxu1 }
 0x7c8   : > { %v2721_v40 = vpop.f32.mrb[67].mxu1  ;;  %2858 = vadd.xlane.f32.xlu0 %v2857_v5  ;;  %v2730_v26 = vadd.f32 %v4892_v50, %v7486_v37  ;;  %v7592_v9 = vadd.f32 %v5558_v42, %v2727_v13  ;;  %v5566_v5 = vld [vmem:[%s6691_s17 + $0xd0] sm:$0xff] }
 0x7c9   : > { %v7585_v28 = vadd.f32 %v5557_v49, %v2719_v46  ;;  %v2722_v22 = vadd.f32 %v7486_v37, %v2721_v40  ;;  %v5567_v49 = vld [vmem:[%s6691_s17 + $0xc8] sm:$0xff] }
 0x7ca   : > { %2861 = vadd.xlane.f32.xlu1 %v2860_v41  ;;  %8571 = vst [vmem:[#allocation42_spill] sm:$0xff] %v7592_v9  ;;  %v7600_v59 = vadd.f32 %v5560_v51, %v2730_v26  ;;  %v2869_v54 = vsel %vm800_vm0, %v7592_v9, 0.0  ;;  %v5568_v41 = vld [vmem:[%s6691_s17 + $0xd8] sm:$0xff] }
 0x7cb   : > { %8570 = vst [vmem:[#allocation41_spill] sm:$0xff] %v7585_v28  ;;  %v7595_v25 = vadd.f32 %v5559_v47, %v2722_v22  ;;  %v2863_v33 = vsel %vm800_vm0, %v7585_v28, 0.0 }
 0x7cc   : > { %2864 = vadd.xlane.f32.xlu0 %v2863_v33  ;;  %8573 = vst [vmem:[#allocation44_spill] sm:$0xff] %v7600_v59  ;;  %v2872_v53 = vsel %vm800_vm0, %v7600_v59, 0.0 }
 0x7cd   : > { %8572 = vst [vmem:[#allocation43_spill] sm:$0xff] %v7595_v25  ;;  %v4895_v6 = vpop.f32.mrb[68].mxu1  ;;  %v2866_v20 = vsel %vm800_vm0, %v7595_v25, 0.0 }
 0x7ce   : > { %v2734_v39 = vpop.f32.mrb[69].mxu1  ;;  %2867 = vadd.xlane.f32.xlu1 %v2866_v20  ;;  %v2743_v61 = vadd.f32 %v4895_v6, %v7486_v37 }
 0x7cf   : > { %v2735_v24 = vadd.f32 %v7486_v37, %v2734_v39  ;;  %v4896_v11 = vpop.f32.mrb[70].mxu1 }
 0x7d0   : > { %v2737_v17 = vpop.f32.mrb[71].mxu1  ;;  %2870 = vadd.xlane.f32.xlu0 %v2869_v54  ;;  %v2746_v10 = vadd.f32 %v4896_v11, %v7486_v37  ;;  %v7616_v56 = vadd.f32 %v5562_v16, %v2743_v61  ;;  %v5569_v54 = vld [vmem:[%s6691_s17 + $0xe0] sm:$0xff]  ;;  %v5571_v16 = vld [vmem:[%s6691_s17 + $0xe8] sm:$0xff] }
 0x7d1   : > { %v7609_v15 = vadd.f32 %v5561_v23, %v2735_v24  ;;  %v2738_v0 = vadd.f32 %v7486_v37, %v2737_v17 }
 0x7d2   : > { %2873 = vadd.xlane.f32.xlu1 %v2872_v53  ;;  %8575 = vst [vmem:[#allocation46_spill] sm:$0xff] %v7616_v56  ;;  %v7624_v7 = vadd.f32 %v5564_v12, %v2746_v10  ;;  %v2881_v45 = vsel %vm800_vm0, %v7616_v56, 0.0  ;;  %v5572_v12 = vld [vmem:[%s6691_s17 + $0xf8] sm:$0xff] }
 0x7d3   : > { %8574 = vst [vmem:[#allocation45_spill] sm:$0xff] %v7609_v15  ;;  %v7619_v8 = vadd.f32 %v5563_v57, %v2738_v0  ;;  %v2875_v2 = vsel %vm800_vm0, %v7609_v15, 0.0  ;;  %v5570_v0 = vld [vmem:[%s6691_s17 + $0xf0] sm:$0xff]  ;;  %s6003_s17 = sshll.u32 %s6130_s3, 4  ;;  %s6004_s17 = int_to_ptr.vmem [resolvable:$false] %s6003_s17 }
 0x7d4   : > { %2876 = vadd.xlane.f32.xlu0 %v2875_v2  ;;  %8577 = vst [vmem:[#allocation48_spill] sm:$0xff] %v7624_v7  ;;  %v2884_v50 = vsel %vm800_vm0, %v7624_v7, 0.0  ;;  %s6005_s9 = scalar_lea.vmem %s6004_s17, 8192  ;;  %p6006_p11 = scmp.lt.s32.totalorder %s8389_s11, %s6004_s17 }
 0x7d5   : > { %8576 = vst [vmem:[#allocation47_spill] sm:$0xff] %v7619_v8  ;;  %v4899_v32 = vpop.f32.mrb[72].mxu1  ;;  %v2878_v34 = vsel %vm800_vm0, %v7619_v8, 0.0  ;;  %p6007_p12 = scmp.lt.s32.totalorder %s6005_s9, %s5999_s0 }
 0x7d6   : > { %v2750_v62 = vpop.f32.mrb[73].mxu1  ;;  %2879 = vadd.xlane.f32.xlu1 %v2878_v34  ;;  %v2759_v63 = vadd.f32 %v4899_v32, %v7486_v37 }
 0x7d7   : > { %v2751_v55 = vadd.f32 %v7486_v37, %v2750_v62  ;;  %v4900_v52 = vpop.f32.mrb[74].mxu1  ;;  %p6008_p13 = por %p6007_p12, %p6006_p11 }
 0x7d8   : > { %v2753_v27 = vpop.f32.mrb[75].mxu1  ;;  %2882 = vadd.xlane.f32.xlu0 %v2881_v45  ;;  %v2762_v13 = vadd.f32 %v4900_v52, %v7486_v37  ;;  %v7640_v40 = vadd.f32 %v5566_v5, %v2759_v63  ;;  %v5211_v63 = vld [vmem:[#allocation20] sm:$0xff]  }
 0x7d9   : > { %v7633_v30 = vadd.f32 %v5565_v3, %v2751_v55  ;;  %v2754_v46 = vadd.f32 %v7486_v37, %v2753_v27  ;;  %v5212_v55 = vld [vmem:[#allocation20 + $0x8] sm:$0xff]   ;;  %4905 = vmatprep.subr.bf16.mxu0 %v5211_v63  ;;  %p6009_p8 = pnand %p6008_p13, %p6002_p3 }
 0x7da   : > { %2885 = vadd.xlane.f32.xlu1 %v2884_v50  ;;  %8579 = vst [vmem:[#allocation50_spill] sm:$0xff] %v7640_v40  ;;  %v7648_v42 = vadd.f32 %v5568_v41, %v2762_v13  ;;  %v2893_v61 = vsel %vm800_vm0, %v7640_v40, 0.0  ;;  %4906 = vmatpush3.bf16.msra.mxu0 %v5211_v63 }
 0x7db   : > { %8578 = vst [vmem:[#allocation49_spill] sm:$0xff] %v7633_v30  ;;  %v7643_v26 = vadd.f32 %v5567_v49, %v2754_v46  ;;  %v2887_v22 = vsel %vm800_vm0, %v7633_v30, 0.0  ;;  %4907 = vmatprep.subr.bf16.mxu0 %v5212_v55 }
 0x7dc   : > { %2888 = vadd.xlane.f32.xlu0 %v2887_v22  ;;  %8581 = vst [vmem:[#allocation52_spill] sm:$0xff] %v7648_v42  ;;  %v2896_v10 = vsel %vm800_vm0, %v7648_v42, 0.0 }
 0x7dd   : > { %8580 = vst [vmem:[#allocation51_spill] sm:$0xff] %v7643_v26  ;;  %v4903_v47 = vpop.f32.mrb[76].mxu1  ;;  %v2890_v33 = vsel %vm800_vm0, %v7643_v26, 0.0 }
 0x7de   : > { %v2775_v51 = vadd.f32 %v4903_v47, %v7486_v37  ;;  %2891 = vadd.xlane.f32.xlu1 %v2890_v33  ;;  %v2766_v6 = vpop.f32.mrb[77].mxu1  ;;  %4908 = vmatpush3.bf16.msra.mxu0 %v5212_v55 }
 0x7df   : > { %v2767_v20 = vadd.f32 %v7486_v37, %v2766_v6  ;;  %v4904_v39 = vpop.f32.mrb[78].mxu1 }
 0x7e0   : > { %v2778_v24 = vadd.f32 %v4904_v39, %v7486_v37  ;;  %2894 = vadd.xlane.f32.xlu0 %v2893_v61  ;;  %v2769_v11 = vpop.f32.mrb[79].mxu1  ;;  %v7664_v53 = vadd.f32 %v5570_v0, %v2775_v51 }
 0x7e1   : > { %v7658_v17 = vadd.f32 %v5569_v54, %v2767_v20  ;;  %v2770_v23 = vadd.f32 %v7486_v37, %v2769_v11 }
 0x7e2   : > { %2897 = vadd.xlane.f32.xlu1 %v2896_v10  ;;  %8583 = vst [vmem:[#allocation54_spill] sm:$0xff] %v7664_v53  ;;  %v7672_v32 = vadd.f32 %v5572_v12, %v2778_v24  ;;  %v2905_v34 = vsel %vm800_vm0, %v7664_v53, 0.0 }
 0x7e3   : > { %8582 = vst [vmem:[#allocation53_spill] sm:$0xff] %v7658_v17  ;;  %v7667_v57 = vadd.f32 %v5571_v16, %v2770_v23  ;;  %v2899_v2 = vsel %vm800_vm0, %v7658_v17, 0.0 }
 0x7e4   : > { %2900 = vadd.xlane.f32.xlu0 %v2899_v2  ;;  %8585 = vst [vmem:[#allocation56_spill] sm:$0xff] %v7672_v32  ;;  %v2908_v62 = vsel %vm800_vm0, %v7672_v32, 0.0 }
 0x7e5   : > { %8584 = vst [vmem:[#allocation55_spill] sm:$0xff] %v7667_v57  ;;  %v2902_v37 = vsel %vm800_vm0, %v7667_v57, 0.0 }
 0x7e6   : > { %2903 = vadd.xlane.f32.xlu1 %v2902_v37 }
 0x7e8   : > { %2906 = vadd.xlane.f32.xlu0 %v2905_v34 }
 0x7ea   : > { %2909 = vadd.xlane.f32.xlu1 %v2908_v62 }
 0x835   : > { %v2817_v52 = vpop.xlane.xlu0 %2816 }
 0x836   : > { %v2911_v45 = vmul.f32 0.03125, %v2817_v52 }
 0x837   : > { %v2820_v27 = vpop.xlane.xlu1 %2819 }
 0x838   : > { %v7681_v3 = vsub.f32 %v7491_v35, %v2911_v45  ;;  %v2912_v13 = vmul.f32 0.03125, %v2820_v27 }
 0x839   : > { %v2823_v46 = vpop.xlane.xlu0 %2822 }
 0x83a   : > { %v7684_v50 = vsub.f32 %v7499_v38, %v2912_v13  ;;  %v2913_v5 = vmul.f32 0.03125, %v2823_v46  ;;  %v2975_v49 = vmul.f32 %v7681_v3, %v7681_v3 }
 0x83b   : > { %v2826_v22 = vpop.xlane.xlu1 %2825 }
 0x83c   : > { %v7689_v41 = vsub.f32 %v7496_v1, %v2913_v5  ;;  %v2914_v47 = vmul.f32 0.03125, %v2826_v22  ;;  %v3007_v33 = vsel %vm800_vm0, %v2975_v49, 0.0  ;;  %v2976_v51 = vmul.f32 %v7684_v50, %v7684_v50 }
 0x83d   : > { %3008 = vadd.xlane.f32.xlu0 %v3007_v33 }
 0x83e   : > { %v7695_v6 = vsub.f32 %v7504_v48, %v2914_v47  ;;  %v2829_v20 = vpop.xlane.xlu0 %2828  ;;  %v3010_v39 = vsel %vm800_vm0, %v2976_v51, 0.0  ;;  %v2977_v61 = vmul.f32 %v7689_v41, %v7689_v41 }
 0x83f   : > { %v2915_v24 = vmul.f32 0.03125, %v2829_v20  ;;  %3011 = vadd.xlane.f32.xlu1 %v3010_v39 }
 0x840   : > { %v2832_v11 = vpop.xlane.xlu1 %2831  ;;  %v3013_v54 = vsel %vm800_vm0, %v2977_v61, 0.0  ;;  %v2978_v23 = vmul.f32 %v7695_v6, %v7695_v6 }
 0x841   : > { %v7704_v10 = vsub.f32 %v7515_v31, %v2915_v24  ;;  %v2916_v0 = vmul.f32 0.03125, %v2832_v11  ;;  %3014 = vadd.xlane.f32.xlu0 %v3013_v54 }
 0x842   : > { %v2835_v16 = vpop.xlane.xlu0 %2834  ;;  %v3016_v2 = vsel %vm800_vm0, %v2978_v23, 0.0 }
 0x843   : > { %v7708_v12 = vsub.f32 %v7523_v58, %v2916_v0  ;;  %v2917_v37 = vmul.f32 0.03125, %v2835_v16  ;;  %3017 = vadd.xlane.f32.xlu1 %v3016_v2  ;;  %v2979_v34 = vmul.f32 %v7704_v10, %v7704_v10 }
 0x844   : > { %v2838_v62 = vpop.xlane.xlu1 %2837 }
 0x845   : > { %v7713_v63 = vsub.f32 %v7520_v43, %v2917_v37  ;;  %v2918_v55 = vmul.f32 0.03125, %v2838_v62  ;;  %v3019_v52 = vsel %vm800_vm0, %v2979_v34, 0.0  ;;  %v2980_v45 = vmul.f32 %v7708_v12, %v7708_v12 }
 0x846   : > { %3020 = vadd.xlane.f32.xlu0 %v3019_v52 }
 0x847   : > { %v7719_v27 = vsub.f32 %v7528_v18, %v2918_v55  ;;  %v3022_v13 = vsel %vm800_vm0, %v2980_v45, 0.0  ;;  %v2981_v46 = vmul.f32 %v7713_v63, %v7713_v63 }
 0x848   : > { %3023 = vadd.xlane.f32.xlu1 %v3022_v13 }
 0x849   : > { %v3025_v5 = vsel %vm800_vm0, %v2981_v46, 0.0  ;;  %v2982_v49 = vmul.f32 %v7719_v27, %v7719_v27  ;;  %v2841_v22 = vpop.xlane.xlu0 %2840 }
 0x84a   : > { %3026 = vadd.xlane.f32.xlu0 %v3025_v5  ;;  %v2919_v47 = vmul.f32 0.03125, %v2841_v22 }
 0x84b   : > { %v3028_v33 = vsel %vm800_vm0, %v2982_v49, 0.0  ;;  %v2844_v51 = vpop.xlane.xlu1 %2843 }
 0x84c   : > { %3029 = vadd.xlane.f32.xlu1 %v3028_v33  ;;  %v7729_v20 = vsub.f32 %v7539_v60, %v2919_v47  ;;  %v2920_v39 = vmul.f32 0.03125, %v2844_v51 }
 0x84d   : > { %v2847_v61 = vpop.xlane.xlu0 %2846 }
 0x84e   : > { %v7732_v24 = vsub.f32 %v7547_v44, %v2920_v39  ;;  %v2921_v11 = vmul.f32 0.03125, %v2847_v61  ;;  %v2983_v54 = vmul.f32 %v7729_v20, %v7729_v20 }
 0x84f   : > { %v2850_v23 = vpop.xlane.xlu1 %2849 }
 0x850   : > { %v7737_v0 = vsub.f32 %v7544_v19, %v2921_v11  ;;  %v2922_v16 = vmul.f32 0.03125, %v2850_v23  ;;  %v3031_v2 = vsel %vm800_vm0, %v2983_v54, 0.0  ;;  %v2984_v37 = vmul.f32 %v7732_v24, %v7732_v24 }
 0x851   : > { %v2853_v34 = vpop.xlane.xlu0 %2852  ;;  %3032 = vadd.xlane.f32.xlu0 %v3031_v2 }
 0x852   : > { %v7743_v62 = vsub.f32 %v7552_v29, %v2922_v16  ;;  %v2923_v55 = vmul.f32 0.03125, %v2853_v34  ;;  %v3034_v52 = vsel %vm800_vm0, %v2984_v37, 0.0  ;;  %v2985_v45 = vmul.f32 %v7737_v0, %v7737_v0 }
 0x853   : > { %v2856_v13 = vpop.xlane.xlu1 %2855  ;;  %3035 = vadd.xlane.f32.xlu1 %v3034_v52 }
 0x854   : > { %v7749_v46 = vsub.f32 %v7561_v4, %v2923_v55  ;;  %v2924_v5 = vmul.f32 0.03125, %v2856_v13  ;;  %v3037_v49 = vsel %vm800_vm0, %v2985_v45, 0.0  ;;  %v2986_v22 = vmul.f32 %v7743_v62, %v7743_v62 }
 0x855   : > { %v2859_v47 = vpop.xlane.xlu0 %2858  ;;  %3038 = vadd.xlane.f32.xlu0 %v3037_v49 }
 0x856   : > { %v7755_v33 = vsub.f32 %v7571_v36, %v2924_v5  ;;  %v2925_v51 = vmul.f32 0.03125, %v2859_v47  ;;  %v3040_v39 = vsel %vm800_vm0, %v2986_v22, 0.0  ;;  %v2987_v61 = vmul.f32 %v7749_v46, %v7749_v46 }
 0x857   : > { %v2862_v11 = vpop.xlane.xlu1 %2861  ;;  %3041 = vadd.xlane.f32.xlu1 %v3040_v39 }
 0x858   : > { %v7761_v54 = vsub.f32 %v7568_v14, %v2925_v51  ;;  %v2926_v23 = vmul.f32 0.03125, %v2862_v11  ;;  %v3043_v16 = vsel %vm800_vm0, %v2987_v61, 0.0  ;;  %v2988_v2 = vmul.f32 %v7755_v33, %v7755_v33 }
 0x859   : > { %v2865_v37 = vpop.xlane.xlu0 %2864  ;;  %3044 = vadd.xlane.f32.xlu0 %v3043_v16 }
 0x85a   : > { %v7767_v34 = vsub.f32 %v7576_v21, %v2926_v23  ;;  %v2927_v55 = vmul.f32 0.03125, %v2865_v37  ;;  %v3046_v52 = vsel %vm800_vm0, %v2988_v2, 0.0  ;;  %v2989_v45 = vmul.f32 %v7761_v54, %v7761_v54 }
 0x85b   : > { %v2868_v13 = vpop.xlane.xlu1 %2867  ;;  %3047 = vadd.xlane.f32.xlu1 %v3046_v52 }
 0x85c   : > { %v7773_v5 = vsub.f32 %v7585_v28, %v2927_v55  ;;  %v2928_v49 = vmul.f32 0.03125, %v2868_v13  ;;  %v3049_v22 = vsel %vm800_vm0, %v2989_v45, 0.0  ;;  %v2990_v47 = vmul.f32 %v7767_v34, %v7767_v34 }
 0x85d   : > { %v2871_v51 = vpop.xlane.xlu0 %2870  ;;  %3050 = vadd.xlane.f32.xlu0 %v3049_v22 }
 0x85e   : > { %v7779_v39 = vsub.f32 %v7595_v25, %v2928_v49  ;;  %v2929_v61 = vmul.f32 0.03125, %v2871_v51  ;;  %v3052_v11 = vsel %vm800_vm0, %v2990_v47, 0.0  ;;  %v2991_v23 = vmul.f32 %v7773_v5, %v7773_v5 }
 0x85f   : > { %v2874_v16 = vpop.xlane.xlu1 %2873  ;;  %3053 = vadd.xlane.f32.xlu1 %v3052_v11 }
 0x860   : > { %v7785_v2 = vsub.f32 %v7592_v9, %v2929_v61  ;;  %v2930_v37 = vmul.f32 0.03125, %v2874_v16  ;;  %v3055_v55 = vsel %vm800_vm0, %v2991_v23, 0.0  ;;  %v2992_v52 = vmul.f32 %v7779_v39, %v7779_v39 }
 0x861   : > { %v2877_v45 = vpop.xlane.xlu0 %2876  ;;  %3056 = vadd.xlane.f32.xlu0 %v3055_v55 }
 0x862   : > { %v7791_v13 = vsub.f32 %v7600_v59, %v2930_v37  ;;  %v2931_v49 = vmul.f32 0.03125, %v2877_v45  ;;  %v3058_v22 = vsel %vm800_vm0, %v2992_v52, 0.0  ;;  %v2993_v47 = vmul.f32 %v7785_v2, %v7785_v2 }
 0x863   : > { %v2880_v51 = vpop.xlane.xlu1 %2879  ;;  %3059 = vadd.xlane.f32.xlu1 %v3058_v22 }
 0x864   : > { %v7797_v61 = vsub.f32 %v7609_v15, %v2931_v49  ;;  %v2932_v11 = vmul.f32 0.03125, %v2880_v51  ;;  %v3061_v23 = vsel %vm800_vm0, %v2993_v47, 0.0  ;;  %v2994_v16 = vmul.f32 %v7791_v13, %v7791_v13 }
 0x865   : > { %v2883_v55 = vpop.xlane.xlu0 %2882  ;;  %3062 = vadd.xlane.f32.xlu0 %v3061_v23 }
 0x866   : > { %v7803_v37 = vsub.f32 %v7619_v8, %v2932_v11  ;;  %v2933_v52 = vmul.f32 0.03125, %v2883_v55  ;;  %v3064_v45 = vsel %vm800_vm0, %v2994_v16, 0.0  ;;  %v2995_v22 = vmul.f32 %v7797_v61, %v7797_v61 }
 0x867   : > { %v2886_v25 = vpop.xlane.xlu1 %2885  ;;  %3065 = vadd.xlane.f32.xlu1 %v3064_v45 }
 0x868   : > { %v7809_v49 = vsub.f32 %v7616_v56, %v2933_v52  ;;  %v2934_v47 = vmul.f32 0.03125, %v2886_v25  ;;  %v3067_v51 = vsel %vm800_vm0, %v2995_v22, 0.0  ;;  %v2996_v23 = vmul.f32 %v7803_v37, %v7803_v37 }
 0x869   : > { %v2889_v15 = vpop.xlane.xlu0 %2888  ;;  %3068 = vadd.xlane.f32.xlu0 %v3067_v51 }
 0x86a   : > { %v7815_v11 = vsub.f32 %v7624_v7, %v2934_v47  ;;  %v2935_v16 = vmul.f32 0.03125, %v2889_v15  ;;  %v3070_v55 = vsel %vm800_vm0, %v2996_v23, 0.0  ;;  %v2997_v45 = vmul.f32 %v7809_v49, %v7809_v49 }
 0x86b   : > { %v2892_v8 = vpop.xlane.xlu1 %2891  ;;  %3071 = vadd.xlane.f32.xlu1 %v3070_v55 }
 0x86c   : > { %v7821_v25 = vsub.f32 %v7633_v30, %v2935_v16  ;;  %v2936_v52 = vmul.f32 0.03125, %v2892_v8  ;;  %v3073_v22 = vsel %vm800_vm0, %v2997_v45, 0.0  ;;  %v2998_v51 = vmul.f32 %v7815_v11, %v7815_v11 }
 0x86d   : > { %v2895_v56 = vpop.xlane.xlu0 %2894  ;;  %3074 = vadd.xlane.f32.xlu0 %v3073_v22 }
 0x86e   : > { %v7827_v15 = vsub.f32 %v7643_v26, %v2936_v52  ;;  %v2937_v47 = vmul.f32 0.03125, %v2895_v56  ;;  %v3076_v23 = vsel %vm800_vm0, %v2998_v51, 0.0  ;;  %v2999_v55 = vmul.f32 %v7821_v25, %v7821_v25 }
 0x86f   : > { %v2898_v7 = vpop.xlane.xlu1 %2897  ;;  %3077 = vadd.xlane.f32.xlu1 %v3076_v23 }
 0x870   : > { %v7833_v8 = vsub.f32 %v7640_v40, %v2937_v47  ;;  %v2938_v16 = vmul.f32 0.03125, %v2898_v7  ;;  %v3079_v45 = vsel %vm800_vm0, %v2999_v55, 0.0  ;;  %v3000_v22 = vmul.f32 %v7827_v15, %v7827_v15 }
 0x871   : > { %3080 = vadd.xlane.f32.xlu0 %v3079_v45  ;;  %v2901_v52 = vpop.xlane.xlu0 %2900 }
 0x872   : > { %v7839_v56 = vsub.f32 %v7648_v42, %v2938_v16  ;;  %v2939_v51 = vmul.f32 0.03125, %v2901_v52  ;;  %v3082_v26 = vsel %vm800_vm0, %v3000_v22, 0.0  ;;  %v3001_v23 = vmul.f32 %v7833_v8, %v7833_v8 }
 0x873   : > { %3083 = vadd.xlane.f32.xlu1 %v3082_v26  ;;  %v2904_v47 = vpop.xlane.xlu1 %2903 }
 0x874   : > { %v7845_v7 = vsub.f32 %v7658_v17, %v2939_v51  ;;  %v2940_v55 = vmul.f32 0.03125, %v2904_v47  ;;  %v3085_v30 = vsel %vm800_vm0, %v3001_v23, 0.0  ;;  %v3002_v45 = vmul.f32 %v7839_v56, %v7839_v56 }
 0x875   : > { %3086 = vadd.xlane.f32.xlu0 %v3085_v30  ;;  %v2907_v16 = vpop.xlane.xlu0 %2906 }
 0x876   : > { %v7851_v52 = vsub.f32 %v7667_v57, %v2940_v55  ;;  %v2941_v22 = vmul.f32 0.03125, %v2907_v16  ;;  %v3088_v42 = vsel %vm800_vm0, %v3002_v45, 0.0  ;;  %v3003_v26 = vmul.f32 %v7845_v7, %v7845_v7 }
 0x877   : > { %3089 = vadd.xlane.f32.xlu1 %v3088_v42  ;;  %v2910_v51 = vpop.xlane.xlu1 %2909 }
 0x878   : > { %v7857_v47 = vsub.f32 %v7664_v53, %v2941_v22  ;;  %v2942_v23 = vmul.f32 0.03125, %v2910_v51  ;;  %v3091_v17 = vsel %vm800_vm0, %v3003_v26, 0.0  ;;  %v3004_v30 = vmul.f32 %v7851_v52, %v7851_v52  ;;  %v5213_v51 = vld [vmem:[#allocation23] sm:$0xff]  }
 0x879   : > { %3092 = vadd.xlane.f32.xlu0 %v3091_v17  ;;  %v5214_v17 = vld [vmem:[#allocation23 + $0x8] sm:$0xff]   ;;  %4941 = vmatprep.subr.bf16.mxu1 %v5213_v51 }
 0x87a   : > { %v7863_v55 = vsub.f32 %v7672_v32, %v2942_v23  ;;  %v3094_v45 = vsel %vm800_vm0, %v3004_v30, 0.0  ;;  %v3005_v16 = vmul.f32 %v7857_v47, %v7857_v47  ;;  %4942 = vmatpush3.bf16.msra.mxu1 %v5213_v51  ;;  %v5215_v23 = vld [vmem:[#allocation23 + $0x10] sm:$0xff]   ;;  %v5216_v30 = vld [vmem:[#allocation23 + $0x18] sm:$0xff]  }
 0x87b   : > { %3095 = vadd.xlane.f32.xlu1 %v3094_v45  ;;  %4943 = vmatprep.subr.bf16.mxu1 %v5214_v17 }
 0x87c   : > { %v3097_v42 = vsel %vm800_vm0, %v3005_v16, 0.0  ;;  %v3006_v22 = vmul.f32 %v7863_v55, %v7863_v55 }
 0x87d   : > { %3098 = vadd.xlane.f32.xlu0 %v3097_v42 }
 0x87e   : > { %v3100_v26 = vsel %vm800_vm0, %v3006_v22, 0.0  ;;  %4944 = vmatpush3.bf16.msra.mxu1 %v5214_v17 }
 0x87f   : > { %3101 = vadd.xlane.f32.xlu1 %v3100_v26  ;;  %4945 = vmatprep.subr.bf16.mxu1 %v5215_v23 }
 0x882   : > { %4946 = vmatpush3.bf16.msra.mxu1 %v5215_v23 }
 0x883   : > { %4947 = vmatprep.subr.bf16.mxu1 %v5216_v30 }
 0x886   : > { %4948 = vmatpush3.bf16.msra.mxu1 %v5216_v30 }
 0x8ca   : > { %v3009_v45 = vpop.xlane.xlu0 %3008 }
 0x8cb   : > { %v3103_v16 = vmul.f32 0.03125, %v3009_v45 }
 0x8cc   : > { %v3012_v57 = vpop.xlane.xlu1 %3011 }
 0x8cd   : > { %v3135_v32 = vadd.f32 1e-05, %v3103_v16  ;;  %v3104_v42 = vmul.f32 0.03125, %v3012_v57 }
 0x8ce   : > { %v3015_v53 = vpop.xlane.xlu0 %3014 }
 0x8cf   : > { %5413 = vrsqrt.f32 %v3135_v32  ;;  %v3136_v22 = vadd.f32 1e-05, %v3104_v42  ;;  %v3105_v26 = vmul.f32 0.03125, %v3015_v53  ;;  %v7873_v42 = vld [vmem:[#allocation17] ss:$0 sm:$0xff] }
 0x8d0   : > { %v3018_v40 = vpop.xlane.xlu1 %3017 }
 0x8d1   : > { %5415 = vrsqrt.f32 %v3136_v22  ;;  %v3137_v51 = vadd.f32 1e-05, %v3105_v26  ;;  %v3106_v59 = vmul.f32 0.03125, %v3018_v40 }
 0x8d3   : > { %5417 = vrsqrt.f32 %v3137_v51  ;;  %v3138_v17 = vadd.f32 1e-05, %v3106_v59  ;;  %v3021_v28 = vpop.xlane.xlu0 %3020 }
 0x8d4   : > { %v3107_v9 = vmul.f32 0.03125, %v3021_v28 }
 0x8d5   : > { %5419 = vrsqrt.f32 %v3138_v17  ;;  %v3024_v23 = vpop.xlane.xlu1 %3023  ;;  %v7877_v17 = vld [vmem:[#allocation19] ss:$0 sm:$0xff] }
 0x8d6   : > { %v3139_v30 = vadd.f32 1e-05, %v3107_v9  ;;  %v3108_v36 = vmul.f32 0.03125, %v3024_v23 }
 0x8d7   : > { %v3027_v45 = vpop.xlane.xlu0 %3026 }
 0x8d8   : > { %5421 = vrsqrt.f32 %v3139_v30  ;;  %v3140_v16 = vadd.f32 1e-05, %v3108_v36  ;;  %v3109_v57 = vmul.f32 0.03125, %v3027_v45 }
 0x8d9   : > { %v5414_v21 = vpop.eup %5413  ;;  %v3030_v32 = vpop.xlane.xlu1 %3029 }
 0x8da   : > { %v3199_v53 = vmul.f32 %v5414_v21, %v7681_v3  ;;  %5423 = vrsqrt.f32 %v3140_v16  ;;  %v3141_v40 = vadd.f32 1e-05, %v3109_v57  ;;  %v3110_v22 = vmul.f32 0.03125, %v3030_v32 }
 0x8db   : > { %v5416_v59 = vpop.eup %5415 }
 0x8dc   : > { %v3200_v28 = vmul.f32 %v5416_v59, %v7684_v50  ;;  %5425 = vrsqrt.f32 %v3141_v40  ;;  %v3142_v26 = vadd.f32 1e-05, %v3110_v22  ;;  %v3237_v51 = vmul.f32 %v7873_v42, %v3199_v53 }
 0x8dd   : > { %v5418_v9 = vpop.eup %5417 }
 0x8de   : > { %v3201_v36 = vmul.f32 %v5418_v9, %v7689_v41  ;;  %5427 = vrsqrt.f32 %v3142_v26  ;;  %v3238_v21 = vmul.f32 %v7873_v42, %v3200_v28  ;;  %v3033_v23 = vpop.xlane.xlu0 %3032  ;;  %v3275_v32 = vadd.f32 %v7877_v17, %v3237_v51 }
 0x8df   : > { %v5420_v3 = vpop.eup %5419  ;;  %v3111_v16 = vmul.f32 0.03125, %v3033_v23 }
 0x8e0   : > { %v3239_v30 = vmul.f32 %v7873_v42, %v3201_v36  ;;  %v3202_v45 = vmul.f32 %v5420_v3, %v7695_v6  ;;  %v3276_v50 = vadd.f32 %v7877_v17, %v3238_v21  ;;  %v3036_v57 = vpop.xlane.xlu1 %3035 }
 0x8e1   : > { %v3143_v22 = vadd.f32 1e-05, %v3111_v16  ;;  %v3112_v41 = vmul.f32 0.03125, %v3036_v57 }
 0x8e2   : > { %v5422_v53 = vpop.eup %5421  ;;  %v3240_v40 = vmul.f32 %v7873_v42, %v3202_v45  ;;  %v3277_v59 = vadd.f32 %v7877_v17, %v3239_v30  ;;  %v3039_v26 = vpop.xlane.xlu0 %3038  ;;  %v3307_v9 = vpack.c.bf16 %v3276_v50, %v3275_v32 }
 0x8e3   : > { %v3203_v28 = vmul.f32 %v5422_v53, %v7704_v10  ;;  %5429 = vrsqrt.f32 %v3143_v22  ;;  %v3144_v3 = vadd.f32 1e-05, %v3112_v41  ;;  %v3113_v21 = vmul.f32 0.03125, %v3039_v26 }
 0x8e4   : > { %v5424_v36 = vpop.eup %5423  ;;  %v3278_v6 = vadd.f32 %v7877_v17, %v3240_v40  ;;  %v3042_v51 = vpop.xlane.xlu1 %3041  ;;  %4909 = vmatprep.mubr.msk.bf16.mxu0 %vm800_vm0, %v3307_v9 }
 0x8e5   : > { %v3204_v23 = vmul.f32 %v5424_v36, %v7708_v12  ;;  %v3241_v45 = vmul.f32 %v7873_v42, %v3203_v28  ;;  %5431 = vrsqrt.f32 %v3144_v3  ;;  %v3145_v30 = vadd.f32 1e-05, %v3113_v21 }
 0x8e6   : > { %v5426_v16 = vpop.eup %5425  ;;  %v3114_v57 = vmul.f32 0.03125, %v3042_v51  ;;  %v3308_v10 = vpack.c.bf16 %v3278_v6, %v3277_v59  ;;  %v3045_v32 = vpop.xlane.xlu0 %3044 }
 0x8e7   : > { %v3205_v50 = vmul.f32 %v5426_v16, %v7713_v63  ;;  %v3242_v53 = vmul.f32 %v7873_v42, %v3204_v23  ;;  %5433 = vrsqrt.f32 %v3145_v30  ;;  %v3115_v41 = vmul.f32 0.03125, %v3045_v32 }
 0x8e8   : > { %v5428_v40 = vpop.eup %5427  ;;  %v3146_v22 = vadd.f32 1e-05, %v3114_v57  ;;  %4910 = vmatmul.mubr.msk.bf16.vlgmr.msra.gmra.mrb[80].mxu0 %vm800_vm0, %v3308_v10  ;;  %v3048_v26 = vpop.xlane.xlu1 %3047  ;;  %v3279_v28 = vadd.f32 %v7877_v17, %v3241_v45 }
 0x8e9   : > { %v3206_v12 = vmul.f32 %v5428_v40, %v7719_v27  ;;  %v3280_v9 = vadd.f32 %v7877_v17, %v3242_v53  ;;  %v3243_v59 = vmul.f32 %v7873_v42, %v3205_v50  ;;  %v3147_v63 = vadd.f32 1e-05, %v3115_v41 }
 0x8ea   : > { %5435 = vrsqrt.f32 %v3146_v22  ;;  %v3116_v36 = vmul.f32 0.03125, %v3048_v26  ;;  %v3051_v6 = vpop.xlane.xlu0 %3050 }
 0x8eb   : > { %v3309_v3 = vpack.c.bf16 %v3280_v9, %v3279_v28  ;;  %v3244_v21 = vmul.f32 %v7873_v42, %v3206_v12  ;;  %5437 = vrsqrt.f32 %v3147_v63  ;;  %v3117_v51 = vmul.f32 0.03125, %v3051_v6 }
 0x8ec   : > { %v3148_v23 = vadd.f32 1e-05, %v3116_v36  ;;  %v3054_v16 = vpop.xlane.xlu1 %3053  ;;  %v3281_v27 = vadd.f32 %v7877_v17, %v3243_v59 }
 0x8ed   : > { %4913 = vmatprep.mubr.msk.bf16.mxu0 %vm800_vm0, %v3309_v3  ;;  %v3282_v45 = vadd.f32 %v7877_v17, %v3244_v21  ;;  %v5430_v30 = vpop.eup %5429  ;;  %v3149_v57 = vadd.f32 1e-05, %v3117_v51  ;;  %v3118_v10 = vmul.f32 0.03125, %v3054_v16 }
 0x8ee   : > { %5439 = vrsqrt.f32 %v3148_v23  ;;  %v3207_v50 = vmul.f32 %v5430_v30, %v7729_v20  ;;  %v3057_v32 = vpop.xlane.xlu0 %3056 }
 0x8ef   : > { %v3310_v53 = vpack.c.bf16 %v3282_v45, %v3281_v27  ;;  %v5432_v40 = vpop.eup %5431  ;;  %5441 = vrsqrt.f32 %v3149_v57  ;;  %v3150_v22 = vadd.f32 1e-05, %v3118_v10  ;;  %v3119_v41 = vmul.f32 0.03125, %v3057_v32 }
 0x8f0   : > { %v3208_v12 = vmul.f32 %v5432_v40, %v7732_v24  ;;  %v3060_v26 = vpop.xlane.xlu1 %3059  ;;  %v3245_v28 = vmul.f32 %v7873_v42, %v3207_v50 }
 0x8f1   : > { %4914 = vmatmul.mubr.msk.bf16.gmra.mrb[84].mxu0 %vm800_vm0, %v3310_v53  ;;  %v5434_v9 = vpop.eup %5433  ;;  %5443 = vrsqrt.f32 %v3150_v22  ;;  %v3151_v59 = vadd.f32 1e-05, %v3119_v41  ;;  %v3120_v63 = vmul.f32 0.03125, %v3060_v26 }
 0x8f2   : > { %v3209_v36 = vmul.f32 %v5434_v9, %v7737_v0  ;;  %v3063_v20 = vpop.xlane.xlu0 %3062  ;;  %v3246_v6 = vmul.f32 %v7873_v42, %v3208_v12  ;;  %v3283_v16 = vadd.f32 %v7877_v17, %v3245_v28 }
 0x8f3   : > { %5445 = vrsqrt.f32 %v3151_v59  ;;  %v3152_v21 = vadd.f32 1e-05, %v3120_v63  ;;  %v3121_v23 = vmul.f32 0.03125, %v3063_v20 }
 0x8f4   : > { %v5436_v3 = vpop.eup %5435  ;;  %v3066_v51 = vpop.xlane.xlu1 %3065  ;;  %v3284_v27 = vadd.f32 %v7877_v17, %v3246_v6  ;;  %v3247_v45 = vmul.f32 %v7873_v42, %v3209_v36 }
 0x8f5   : > { %v3210_v24 = vmul.f32 %v5436_v3, %v7743_v62  ;;  %v5438_v30 = vpop.eup %5437  ;;  %5447 = vrsqrt.f32 %v3152_v21  ;;  %v3153_v57 = vadd.f32 1e-05, %v3121_v23  ;;  %v3122_v0 = vmul.f32 0.03125, %v3066_v51 }
 0x8f6   : > { %v3211_v10 = vmul.f32 %v5438_v30, %v7749_v46  ;;  %v3069_v50 = vpop.xlane.xlu0 %3068  ;;  %v3311_v32 = vpack.c.bf16 %v3284_v27, %v3283_v16  ;;  %v3285_v26 = vadd.f32 %v7877_v17, %v3247_v45 }
 0x8f7   : > { %v3248_v53 = vmul.f32 %v7873_v42, %v3210_v24  ;;  %5449 = vrsqrt.f32 %v3153_v57  ;;  %v3154_v62 = vadd.f32 1e-05, %v3122_v0  ;;  %v3123_v22 = vmul.f32 0.03125, %v3069_v50 }
 0x8f8   : > { %v5440_v40 = vpop.eup %5439  ;;  %v3072_v12 = vpop.xlane.xlu1 %3071  ;;  %4917 = vmatprep.mubr.msk.bf16.mxu0 %vm800_vm0, %v3311_v32  ;;  %v3249_v9 = vmul.f32 %v7873_v42, %v3211_v10 }
 0x8f9   : > { %v3212_v41 = vmul.f32 %v5440_v40, %v7755_v33  ;;  %v3286_v28 = vadd.f32 %v7877_v17, %v3248_v53  ;;  %v5442_v46 = vpop.eup %5441  ;;  %5451 = vrsqrt.f32 %v3154_v62  ;;  %v3155_v59 = vadd.f32 1e-05, %v3123_v22 }
 0x8fa   : > { %v3124_v63 = vmul.f32 0.03125, %v3072_v12  ;;  %v3213_v36 = vmul.f32 %v5442_v46, %v7761_v54  ;;  %v3075_v20 = vpop.xlane.xlu0 %3074  ;;  %v3287_v16 = vadd.f32 %v7877_v17, %v3249_v9 }
 0x8fb   : > { %v3312_v6 = vpack.c.bf16 %v3286_v28, %v3285_v26  ;;  %v3250_v3 = vmul.f32 %v7873_v42, %v3212_v41  ;;  %v5444_v33 = vpop.eup %5443  ;;  %5453 = vrsqrt.f32 %v3155_v59  ;;  %v3125_v23 = vmul.f32 0.03125, %v3075_v20 }
 0x8fc   : > { %v3156_v21 = vadd.f32 1e-05, %v3124_v63  ;;  %v3214_v24 = vmul.f32 %v5444_v33, %v7767_v34  ;;  %v3078_v51 = vpop.xlane.xlu1 %3077  ;;  %v3251_v45 = vmul.f32 %v7873_v42, %v3213_v36 }
 0x8fd   : > { %4918 = vmatmul.mubr.msk.bf16.gmra.mrb[88].mxu0 %vm800_vm0, %v3312_v6  ;;  %v3288_v27 = vadd.f32 %v7877_v17, %v3250_v3  ;;  %v5446_v54 = vpop.eup %5445  ;;  %v3157_v30 = vadd.f32 1e-05, %v3125_v23  ;;  %v3126_v57 = vmul.f32 0.03125, %v3078_v51 }
 0x8fe   : > { %5455 = vrsqrt.f32 %v3156_v21  ;;  %v3215_v0 = vmul.f32 %v5446_v54, %v7773_v5  ;;  %v3081_v10 = vpop.xlane.xlu0 %3080  ;;  %v3252_v32 = vmul.f32 %v7873_v42, %v3214_v24  ;;  %v3289_v41 = vadd.f32 %v7877_v17, %v3251_v45 }
 0x8ff   : > { %v3313_v50 = vpack.c.bf16 %v3288_v27, %v3287_v16  ;;  %v5448_v34 = vpop.eup %5447  ;;  %5457 = vrsqrt.f32 %v3157_v30  ;;  %v3158_v53 = vadd.f32 1e-05, %v3126_v57  ;;  %v3127_v40 = vmul.f32 0.03125, %v3081_v10 }
 0x900   : > { %v3216_v62 = vmul.f32 %v5448_v34, %v7779_v39  ;;  %v3084_v22 = vpop.xlane.xlu1 %3083  ;;  %v3290_v12 = vadd.f32 %v7877_v17, %v3252_v32  ;;  %v3253_v26 = vmul.f32 %v7873_v42, %v3215_v0 }
 0x901   : > { %4921 = vmatprep.mubr.msk.bf16.mxu0 %vm800_vm0, %v3313_v50  ;;  %v5450_v5 = vpop.eup %5449  ;;  %5459 = vrsqrt.f32 %v3158_v53  ;;  %v3159_v28 = vadd.f32 1e-05, %v3127_v40  ;;  %v3128_v9 = vmul.f32 0.03125, %v3084_v22 }
 0x902   : > { %v3217_v46 = vmul.f32 %v5450_v5, %v7785_v2  ;;  %v3087_v59 = vpop.xlane.xlu0 %3086  ;;  %v3314_v63 = vpack.c.bf16 %v3290_v12, %v3289_v41  ;;  %v3254_v36 = vmul.f32 %v7873_v42, %v3216_v62  ;;  %v3291_v21 = vadd.f32 %v7877_v17, %v3253_v26 }
 0x903   : > { %v5452_v39 = vpop.eup %5451  ;;  %5461 = vrsqrt.f32 %v3159_v28  ;;  %v3160_v20 = vadd.f32 1e-05, %v3128_v9  ;;  %v3129_v6 = vmul.f32 0.03125, %v3087_v59 }
 0x904   : > { %v3218_v3 = vmul.f32 %v5452_v39, %v7791_v13  ;;  %v3090_v33 = vpop.xlane.xlu1 %3089  ;;  %v3292_v23 = vadd.f32 %v7877_v17, %v3254_v36  ;;  %v3255_v24 = vmul.f32 %v7873_v42, %v3217_v46 }
 0x905   : > { %4922 = vmatmul.mubr.msk.bf16.gmra.mrb[92].mxu0 %vm800_vm0, %v3314_v63  ;;  %v5454_v2 = vpop.eup %5453  ;;  %5463 = vrsqrt.f32 %v3160_v20  ;;  %v3161_v51 = vadd.f32 1e-05, %v3129_v6  ;;  %v3130_v16 = vmul.f32 0.03125, %v3090_v33 }
 0x906   : > { %v3219_v27 = vmul.f32 %v5454_v2, %v7797_v61  ;;  %v3093_v45 = vpop.xlane.xlu0 %3092  ;;  %v3315_v54 = vpack.c.bf16 %v3292_v23, %v3291_v21  ;;  %v3256_v30 = vmul.f32 %v7873_v42, %v3218_v3  ;;  %v3293_v32 = vadd.f32 %v7877_v17, %v3255_v24 }
 0x907   : > { %5465 = vrsqrt.f32 %v3161_v51  ;;  %v3162_v57 = vadd.f32 1e-05, %v3130_v16  ;;  %v3131_v0 = vmul.f32 0.03125, %v3093_v45 }
 0x908   : > { %v5456_v13 = vpop.eup %5455  ;;  %v3096_v50 = vpop.xlane.xlu1 %3095  ;;  %4925 = vmatprep.mubr.msk.bf16.mxu0 %vm800_vm0, %v3315_v54  ;;  %v3294_v34 = vadd.f32 %v7877_v17, %v3256_v30  ;;  %v3257_v53 = vmul.f32 %v7873_v42, %v3219_v27 }
 0x909   : > { %v3220_v10 = vmul.f32 %v5456_v13, %v7803_v37  ;;  %v5458_v61 = vpop.eup %5457  ;;  %5467 = vrsqrt.f32 %v3162_v57  ;;  %v3163_v40 = vadd.f32 1e-05, %v3131_v0  ;;  %v3132_v62 = vmul.f32 0.03125, %v3096_v50 }
 0x90a   : > { %v3221_v22 = vmul.f32 %v5458_v61, %v7809_v49  ;;  %v3099_v41 = vpop.xlane.xlu0 %3098  ;;  %v3316_v12 = vpack.c.bf16 %v3294_v34, %v3293_v32  ;;  %v3295_v59 = vadd.f32 %v7877_v17, %v3257_v53 }
 0x90b   : > { %v3258_v26 = vmul.f32 %v7873_v42, %v3220_v10  ;;  %v5460_v37 = vpop.eup %5459  ;;  %5469 = vrsqrt.f32 %v3163_v40  ;;  %v3164_v5 = vadd.f32 1e-05, %v3132_v62  ;;  %v3133_v28 = vmul.f32 0.03125, %v3099_v41 }
 0x90c   : > { %v3222_v9 = vmul.f32 %v5460_v37, %v7815_v11  ;;  %v3102_v46 = vpop.xlane.xlu1 %3101  ;;  %v3259_v36 = vmul.f32 %v7873_v42, %v3221_v22 }
 0x90d   : > { %4926 = vmatmul.mubr.msk.bf16.gmra.mrb[96].mxu0 %vm800_vm0, %v3316_v12  ;;  %v3296_v63 = vadd.f32 %v7877_v17, %v3258_v26  ;;  %v5462_v49 = vpop.eup %5461  ;;  %5471 = vrsqrt.f32 %v3164_v5  ;;  %v3165_v39 = vadd.f32 1e-05, %v3133_v28  ;;  %v3134_v20 = vmul.f32 0.03125, %v3102_v46 }
 0x90e   : > { %v3223_v6 = vmul.f32 %v5462_v49, %v7821_v25  ;;  %v3260_v33 = vmul.f32 %v7873_v42, %v3222_v9  ;;  %v3297_v24 = vadd.f32 %v7877_v17, %v3259_v36  ;;  %v5220_v36 = vld [vmem:[#allocation23 + $0x38] sm:$0xff]  }
 0x90f   : > { %v3317_v3 = vpack.c.bf16 %v3296_v63, %v3295_v59  ;;  %v5464_v21 = vpop.eup %5463  ;;  %5473 = vrsqrt.f32 %v3165_v39  ;;  %v3166_v11 = vadd.f32 1e-05, %v3134_v20  ;;  %v5218_v59 = vld [vmem:[#allocation23 + $0x28] sm:$0xff]   ;;  %v5219_v63 = vld [vmem:[#allocation23 + $0x30] sm:$0xff]  }
 0x910   : > { %v3224_v23 = vmul.f32 %v5464_v21, %v7827_v15  ;;  %v3298_v2 = vadd.f32 %v7877_v17, %v3260_v33  ;;  %v3261_v51 = vmul.f32 %v7873_v42, %v3223_v6 }
 0x911   : > { %4929 = vmatprep.mubr.msk.bf16.mxu0 %vm800_vm0, %v3317_v3  ;;  %v5466_v16 = vpop.eup %5465  ;;  %5475 = vrsqrt.f32 %v3166_v11 }
 0x912   : > { %v3225_v25 = vmul.f32 %v5466_v16, %v7833_v8  ;;  %v3318_v27 = vpack.c.bf16 %v3298_v2, %v3297_v24  ;;  %v3262_v45 = vmul.f32 %v7873_v42, %v3224_v23  ;;  %v3299_v15 = vadd.f32 %v7877_v17, %v3261_v51 }
 0x913   : > { %v5468_v54 = vpop.eup %5467 }
 0x914   : > { %v3226_v30 = vmul.f32 %v5468_v54, %v7839_v56  ;;  %v3300_v13 = vadd.f32 %v7877_v17, %v3262_v45  ;;  %v3263_v57 = vmul.f32 %v7873_v42, %v3225_v25 }
 0x915   : > { %4930 = vmatmul.mubr.msk.bf16.gmra.mrb[100].mxu0 %vm800_vm0, %v3318_v27  ;;  %v5470_v0 = vpop.eup %5469 }
 0x916   : > { %v3227_v10 = vmul.f32 %v5470_v0, %v7845_v7  ;;  %v3319_v50 = vpack.c.bf16 %v3300_v13, %v3299_v15  ;;  %v3264_v8 = vmul.f32 %v7873_v42, %v3226_v30  ;;  %v3301_v56 = vadd.f32 %v7877_v17, %v3263_v57 }
 0x917   : > { %v5472_v32 = vpop.eup %5471 }
 0x918   : > { %v3228_v34 = vmul.f32 %v5472_v32, %v7851_v52  ;;  %4933 = vmatprep.mubr.msk.bf16.mxu0 %vm800_vm0, %v3319_v50  ;;  %v3302_v53 = vadd.f32 %v7877_v17, %v3264_v8  ;;  %v3265_v61 = vmul.f32 %v7873_v42, %v3227_v10 }
 0x919   : > { %v5474_v40 = vpop.eup %5473 }
 0x91a   : > { %v3229_v62 = vmul.f32 %v5474_v40, %v7857_v47  ;;  %v3320_v22 = vpack.c.bf16 %v3302_v53, %v3301_v56  ;;  %v3266_v7 = vmul.f32 %v7873_v42, %v3228_v34  ;;  %v3303_v52 = vadd.f32 %v7877_v17, %v3265_v61 }
 0x91b   : > { %v5476_v41 = vpop.eup %5475 }
 0x91c   : > { %v3230_v12 = vmul.f32 %v5476_v41, %v7863_v55  ;;  %v3304_v26 = vadd.f32 %v7877_v17, %v3266_v7  ;;  %v3267_v37 = vmul.f32 %v7873_v42, %v3229_v62  ;;  %v5217_v55 = vld [vmem:[#allocation23 + $0x20] sm:$0xff]  }
 0x91d   : > { %4934 = vmatmul.mubr.msk.bf16.gmra.mrb[104].mxu0 %vm800_vm0, %v3320_v22  ;;  %4949 = vmatprep.subr.bf16.mxu1 %v5217_v55 }
 0x91e   : > { %v3321_v5 = vpack.c.bf16 %v3304_v26, %v3303_v52  ;;  %v3268_v28 = vmul.f32 %v7873_v42, %v3230_v12  ;;  %v3305_v9 = vadd.f32 %v7877_v17, %v3267_v37  ;;  %4950 = vmatpush3.bf16.msra.mxu1 %v5217_v55  ;;  %v7988_v42 = vld [vmem:[#allocation22] ss:$0 sm:$0xff] }
 0x91f   : > { %4951 = vmatprep.subr.bf16.mxu1 %v5218_v59 }
 0x920   : > { %4937 = vmatprep.mubr.msk.bf16.mxu0 %vm800_vm0, %v3321_v5  ;;  %v3306_v47 = vadd.f32 %v7877_v17, %v3268_v28 }
 0x922   : > { %v3322_v46 = vpack.c.bf16 %v3306_v47, %v3305_v9  ;;  %4952 = vmatpush3.bf16.msra.mxu1 %v5218_v59 }
 0x923   : > { %4953 = vmatprep.subr.bf16.mxu1 %v5219_v63 }
 0x925   : > { %4938 = vmatmul.mubr.msk.bf16.gmra.mrb[108].mxu0 %vm800_vm0, %v3322_v46 }
 0x926   : > { %4954 = vmatpush3.bf16.msra.mxu1 %v5219_v63 }
 0x927   : > { %4955 = vmatprep.subr.bf16.mxu1 %v5220_v36 }
 0x92a   : > { %4956 = vmatpush3.bf16.msra.mxu1 %v5220_v36 }
 0x9bb   : > { %v4911_v49 = vpop.f32.mrb[80].mxu0 }
 0x9bc   : > { %v7991_v17 = vadd.f32 %v4911_v49, %v7988_v42  ;;  %v3428_v39 = vpop.f32.mrb[81].mxu0 }
 0x9bd   : > { %v7994_v20 = vadd.f32 %v7988_v42, %v3428_v39  ;;  %v4912_v6 = vpop.f32.mrb[82].mxu0 }
 0x9be   : > { %v3589_v3 = vmul.f32 0.044715, %v7991_v17  ;;  %v7998_v33 = vadd.f32 %v4912_v6, %v7988_v42  ;;  %v3431_v21 = vpop.f32.mrb[83].mxu0 }
 0x9bf   : > { %v3587_v11 = vmul.f32 0.044715, %v7994_v20  ;;  %v8002_v23 = vadd.f32 %v7988_v42, %v3431_v21 }
 0x9c0   : > { %v3621_v24 = vmul.f32 %v3589_v3, %v7991_v17  ;;  %v3590_v2 = vmul.f32 0.044715, %v7998_v33 }
 0x9c1   : > { %v3619_v51 = vmul.f32 %v3587_v11, %v7994_v20  ;;  %v3588_v16 = vmul.f32 0.044715, %v8002_v23 }
 0x9c2   : > { %v3653_v25 = vmul.f32 %v3621_v24, %v7991_v17  ;;  %v3622_v27 = vmul.f32 %v3590_v2, %v7998_v33 }
 0x9c3   : > { %v3651_v45 = vmul.f32 %v3619_v51, %v7994_v20  ;;  %v3620_v54 = vmul.f32 %v3588_v16, %v8002_v23 }
 0x9c4   : > { %v3685_v30 = vadd.f32 %v3653_v25, %v7991_v17  ;;  %v3654_v15 = vmul.f32 %v3622_v27, %v7998_v33  ;;  %v4915_v13 = vpop.f32.mrb[84].mxu0 }
 0x9c5   : > { %v3652_v57 = vmul.f32 %v3620_v54, %v8002_v23  ;;  %v8016_v0 = vadd.f32 %v4915_v13, %v7988_v42  ;;  %v3444_v10 = vpop.f32.mrb[85].mxu0  ;;  %v3683_v50 = vadd.f32 %v3651_v45, %v7994_v20 }
 0x9c6   : > { %v3717_v8 = vmul.f32 0.7978846, %v3685_v30  ;;  %v3686_v32 = vadd.f32 %v3654_v15, %v7998_v33  ;;  %v8021_v34 = vadd.f32 %v7988_v42, %v3444_v10  ;;  %v4916_v56 = vpop.f32.mrb[86].mxu0 }
 0x9c7   : > { %v3593_v53 = vmul.f32 0.044715, %v8016_v0  ;;  %v8025_v61 = vadd.f32 %v4916_v56, %v7988_v42  ;;  %v3447_v40 = vpop.f32.mrb[87].mxu0  ;;  %v3684_v62 = vadd.f32 %v3652_v57, %v8002_v23  ;;  %v3715_v22 = vmul.f32 0.7978846, %v3683_v50 }
 0x9c8   : > { %5477 = vtanh.f32 %v3717_v8  ;;  %v3718_v7 = vmul.f32 0.7978846, %v3686_v32  ;;  %v3591_v41 = vmul.f32 0.044715, %v8021_v34  ;;  %v8030_v12 = vadd.f32 %v7988_v42, %v3447_v40 }
 0x9c9   : > { %v3625_v52 = vmul.f32 %v3593_v53, %v8016_v0  ;;  %v3594_v26 = vmul.f32 0.044715, %v8025_v61  ;;  %v3716_v37 = vmul.f32 0.7978846, %v3684_v62  ;;  %5479 = vtanh.f32 %v3715_v22 }
 0x9ca   : > { %5481 = vtanh.f32 %v3718_v7  ;;  %v3623_v5 = vmul.f32 %v3591_v41, %v8021_v34  ;;  %v3592_v28 = vmul.f32 0.044715, %v8030_v12  ;;  %v3557_v53 = vmul.f32 0.5, %v7991_v17 }
 0x9cb   : > { %v3657_v9 = vmul.f32 %v3625_v52, %v8016_v0  ;;  %v3626_v47 = vmul.f32 %v3594_v26, %v8025_v61  ;;  %5483 = vtanh.f32 %v3716_v37  ;;  %v3558_v40 = vmul.f32 0.5, %v7998_v33 }
 0x9cc   : > { %v3655_v46 = vmul.f32 %v3623_v5, %v8021_v34  ;;  %v3624_v55 = vmul.f32 %v3592_v28, %v8030_v12  ;;  %v3555_v62 = vmul.f32 0.5, %v7994_v20  ;;  %v3556_v52 = vmul.f32 0.5, %v8002_v23 }
 0x9cd   : > { %v3658_v59 = vmul.f32 %v3626_v47, %v8025_v61  ;;  %v3689_v63 = vadd.f32 %v3657_v9, %v8016_v0  ;;  %v3559_v23 = vmul.f32 0.5, %v8021_v34 }
 0x9ce   : > { %v3656_v36 = vmul.f32 %v3624_v55, %v8030_v12  ;;  %v3687_v49 = vadd.f32 %v3655_v46, %v8021_v34  ;;  %v3560_v34 = vmul.f32 0.5, %v8030_v12 }
 0x9cf   : > { %v3690_v39 = vadd.f32 %v3658_v59, %v8025_v61  ;;  %v3721_v6 = vmul.f32 0.7978846, %v3689_v63 }
 0x9d0   : > { %v4919_v3 = vpop.f32.mrb[88].mxu0  ;;  %v3688_v21 = vadd.f32 %v3656_v36, %v8030_v12  ;;  %v3719_v11 = vmul.f32 0.7978846, %v3687_v49 }
 0x9d1   : > { %v8047_v24 = vadd.f32 %v4919_v3, %v7988_v42  ;;  %v3460_v2 = vpop.f32.mrb[89].mxu0  ;;  %v3722_v51 = vmul.f32 0.7978846, %v3690_v39  ;;  %5485 = vtanh.f32 %v3721_v6 }
 0x9d2   : > { %v5478_v16 = vpop.eup %5477  ;;  %v8050_v25 = vadd.f32 %v7988_v42, %v3460_v2  ;;  %v4920_v27 = vpop.f32.mrb[90].mxu0  ;;  %v3720_v45 = vmul.f32 0.7978846, %v3688_v21  ;;  %5487 = vtanh.f32 %v3719_v11 }
 0x9d3   : > { %v5480_v54 = vpop.eup %5479  ;;  %v3597_v30 = vmul.f32 0.044715, %v8047_v24  ;;  %v8054_v15 = vadd.f32 %v4920_v27, %v7988_v42  ;;  %v3463_v13 = vpop.f32.mrb[91].mxu0  ;;  %v3781_v57 = vadd.f32 1.0, %v5478_v16  ;;  %5489 = vtanh.f32 %v3722_v51 }
 0x9d4   : > { %v5482_v10 = vpop.eup %5481  ;;  %v3595_v50 = vmul.f32 0.044715, %v8050_v25  ;;  %v8058_v8 = vadd.f32 %v7988_v42, %v3463_v13  ;;  %v3779_v32 = vadd.f32 1.0, %v5480_v54  ;;  %5491 = vtanh.f32 %v3720_v45 }
 0x9d5   : > { %v5484_v56 = vpop.eup %5483  ;;  %v3782_v22 = vadd.f32 1.0, %v5482_v10  ;;  %v3629_v37 = vmul.f32 %v3597_v30, %v8047_v24  ;;  %v3598_v5 = vmul.f32 0.044715, %v8054_v15  ;;  %v3813_v28 = vmul.f32 %v3781_v57, %v3557_v53 }
 0x9d6   : > { %v3627_v7 = vmul.f32 %v3595_v50, %v8050_v25  ;;  %v3596_v41 = vmul.f32 0.044715, %v8058_v8  ;;  %v3780_v26 = vadd.f32 1.0, %v5484_v56  ;;  %v3811_v20 = vmul.f32 %v3779_v32, %v3555_v62 }
 0x9d7   : > { %v3814_v9 = vmul.f32 %v3782_v22, %v3558_v40  ;;  %v3661_v11 = vmul.f32 %v3629_v37, %v8047_v24  ;;  %v3630_v2 = vmul.f32 %v3598_v5, %v8054_v15  ;;  %v3561_v32 = vmul.f32 0.5, %v8016_v0 }
 0x9d8   : > { %v3659_v17 = vmul.f32 %v3627_v7, %v8050_v25  ;;  %v3628_v33 = vmul.f32 %v3596_v41, %v8058_v8  ;;  %v4923_v47 = vpop.f32.mrb[92].mxu0  ;;  %v3812_v46 = vmul.f32 %v3780_v26, %v3556_v52  ;;  %v3562_v62 = vmul.f32 0.5, %v8025_v61 }
 0x9d9   : > { %v8071_v55 = vadd.f32 %v4923_v47, %v7988_v42  ;;  %v3476_v59 = vpop.f32.mrb[93].mxu0  ;;  %v3844_v63 = vpack.c.bf16 %v3814_v9, %v3813_v28  ;;  %v3662_v7 = vmul.f32 %v3630_v2, %v8054_v15  ;;  %v3693_v26 = vadd.f32 %v3661_v11, %v8047_v24 }
 0x9da   : > { %v3660_v36 = vmul.f32 %v3628_v33, %v8058_v8  ;;  %v8076_v49 = vadd.f32 %v7988_v42, %v3476_v59  ;;  %v4924_v39 = vpop.f32.mrb[94].mxu0  ;;  %v3843_v6 = vpack.c.bf16 %v3812_v46, %v3811_v20  ;;  %v3691_v3 = vadd.f32 %v3659_v17, %v8050_v25 }
 0x9db   : > { %v5486_v21 = vpop.eup %5485  ;;  %v8082_v51 = vadd.f32 %v4924_v39, %v7988_v42  ;;  %v3479_v16 = vpop.f32.mrb[95].mxu0  ;;  %v3601_v10 = vmul.f32 0.044715, %v8071_v55  ;;  %v3725_v2 = vmul.f32 0.7978846, %v3693_v26 }
 0x9dc   : > { %v5488_v27 = vpop.eup %5487  ;;  %v3599_v45 = vmul.f32 0.044715, %v8076_v49  ;;  %v8087_v54 = vadd.f32 %v7988_v42, %v3479_v16  ;;  %4957 = vmatprep.mubr.bf16.mxu1 %v3843_v6  ;;  %v3785_v30 = vadd.f32 1.0, %v5486_v21  ;;  %v3692_v13 = vadd.f32 %v3660_v36, %v8058_v8 }
 0x9dd   : > { %v5490_v57 = vpop.eup %5489  ;;  %4958 = vmatmul.mubr.bf16.vlgmr.msra.gmra.mrb[80].mxu1 %v3844_v63  ;;  %v3783_v50 = vadd.f32 1.0, %v5488_v27  ;;  %v3723_v56 = vmul.f32 0.7978846, %v3691_v3  ;;  %v3602_v41 = vmul.f32 0.044715, %v8082_v51  ;;  %v3633_v17 = vmul.f32 %v3601_v10, %v8071_v55 }
 0x9de   : > { %v5492_v53 = vpop.eup %5491  ;;  %v3631_v12 = vmul.f32 %v3599_v45, %v8076_v49  ;;  %v3600_v40 = vmul.f32 0.044715, %v8087_v54  ;;  %v3786_v22 = vadd.f32 1.0, %v5490_v57  ;;  %v3817_v0 = vmul.f32 %v3785_v30, %v3561_v32 }
 0x9df   : > { %v3784_v52 = vadd.f32 1.0, %v5492_v53  ;;  %v3724_v9 = vmul.f32 0.7978846, %v3692_v13  ;;  %v3815_v47 = vmul.f32 %v3783_v50, %v3559_v23  ;;  %5493 = vtanh.f32 %v3723_v56 }
 0x9e0   : > { %v3632_v37 = vmul.f32 %v3600_v40, %v8087_v54  ;;  %v4927_v5 = vpop.f32.mrb[96].mxu0  ;;  %v3818_v28 = vmul.f32 %v3786_v22, %v3562_v62  ;;  %v3663_v61 = vmul.f32 %v3631_v12, %v8076_v49  ;;  %v3634_v36 = vmul.f32 %v3602_v41, %v8082_v51 }
 0x9e1   : > { %v3492_v33 = vpop.f32.mrb[97].mxu0  ;;  %v3816_v20 = vmul.f32 %v3784_v52, %v3560_v34  ;;  %5495 = vtanh.f32 %v3724_v9  ;;  %v3694_v21 = vadd.f32 %v3662_v7, %v8054_v15  ;;  %v8108_v23 = vadd.f32 %v4927_v5, %v7988_v42 }
 0x9e2   : > { %v8102_v46 = vadd.f32 %v7988_v42, %v3492_v33  ;;  %v4928_v59 = vpop.f32.mrb[98].mxu0  ;;  %v3846_v63 = vpack.c.bf16 %v3818_v28, %v3817_v0  ;;  %v3664_v39 = vmul.f32 %v3632_v37, %v8087_v54  ;;  %v3563_v27 = vmul.f32 0.5, %v8050_v25 }
 0x9e3   : > { %v3495_v6 = vpop.f32.mrb[99].mxu0  ;;  %v3845_v3 = vpack.c.bf16 %v3816_v20, %v3815_v47  ;;  %v8115_v34 = vadd.f32 %v4928_v59, %v7988_v42  ;;  %v3726_v45 = vmul.f32 0.7978846, %v3694_v21  ;;  %v3665_v30 = vmul.f32 %v3633_v17, %v8071_v55 }
 0x9e4   : > { %v8111_v11 = vadd.f32 %v7988_v42, %v3495_v6  ;;  %v3603_v16 = vmul.f32 0.044715, %v8102_v46  ;;  %5497 = vtanh.f32 %v3725_v2  ;;  %v3695_v57 = vadd.f32 %v3663_v61, %v8076_v49 }
 0x9e5   : > { %4961 = vmatprep.mubr.bf16.mxu1 %v3845_v3  ;;  %v3666_v10 = vmul.f32 %v3634_v36, %v8082_v51  ;;  %v3564_v50 = vmul.f32 0.5, %v8058_v8  ;;  %5499 = vtanh.f32 %v3726_v45  ;;  %v3696_v32 = vadd.f32 %v3664_v39, %v8087_v54 }
 0x9e6   : > { %v3604_v13 = vmul.f32 0.044715, %v8111_v11  ;;  %4962 = vmatmul.mubr.bf16.gmra.mrb[84].mxu1 %v3846_v63  ;;  %v3605_v56 = vmul.f32 0.044715, %v8108_v23  ;;  %v3565_v25 = vmul.f32 0.5, %v8047_v24  ;;  %v3635_v40 = vmul.f32 %v3603_v16, %v8102_v46 }
 0x9e7   : > { %v3727_v12 = vmul.f32 0.7978846, %v3695_v57  ;;  %v3606_v62 = vmul.f32 0.044715, %v8115_v34  ;;  %v3728_v41 = vmul.f32 0.7978846, %v3696_v32  ;;  %v3697_v37 = vadd.f32 %v3665_v30, %v8071_v55 }
 0x9e8   : > { %v4931_v53 = vpop.f32.mrb[100].mxu0  ;;  %v3636_v8 = vmul.f32 %v3604_v13, %v8111_v11  ;;  %v3566_v0 = vmul.f32 0.5, %v8054_v15  ;;  %v8138_v28 = vmul.f32 0.5, %v8076_v49  ;;  %v3698_v9 = vadd.f32 %v3666_v10, %v8082_v51 }
 0x9e9   : > { %v8129_v22 = vadd.f32 %v4931_v53, %v7988_v42  ;;  %v3508_v7 = vpop.f32.mrb[101].mxu0  ;;  %5501 = vtanh.f32 %v3727_v12  ;;  %v5494_v24 = vpop.eup %5493  ;;  %v3637_v33 = vmul.f32 %v3605_v56, %v8108_v23  ;;  %v3729_v61 = vmul.f32 0.7978846, %v3697_v37 }
 0x9ea   : > { %v8133_v52 = vadd.f32 %v7988_v42, %v3508_v7  ;;  %v4932_v26 = vpop.f32.mrb[102].mxu0  ;;  %5503 = vtanh.f32 %v3728_v41  ;;  %v3787_v20 = vadd.f32 1.0, %v5494_v24  ;;  %v3638_v59 = vmul.f32 %v3606_v62, %v8115_v34 }
 0x9eb   : > { %v3511_v5 = vpop.f32.mrb[103].mxu0  ;;  %v5496_v17 = vpop.eup %5495  ;;  %v3609_v47 = vmul.f32 0.044715, %v8129_v22  ;;  %v8145_v63 = vadd.f32 %v4932_v26, %v7988_v42  ;;  %v3730_v15 = vmul.f32 0.7978846, %v3698_v9  ;;  %v3667_v49 = vmul.f32 %v3635_v40, %v8102_v46 }
 0x9ec   : > { %v3788_v36 = vadd.f32 1.0, %v5496_v17  ;;  %v3668_v39 = vmul.f32 %v3636_v8, %v8111_v11  ;;  %v3607_v6 = vmul.f32 0.044715, %v8133_v52  ;;  %5505 = vtanh.f32 %v3729_v61 }
 0x9ed   : > { %v8151_v3 = vadd.f32 %v7988_v42, %v3511_v5  ;;  %v3819_v21 = vmul.f32 %v3787_v20, %v3563_v27  ;;  %5507 = vtanh.f32 %v3730_v15  ;;  %v8154_v45 = vmul.f32 %v3637_v33, %v8108_v23 }
 0x9ee   : > { %v3820_v2 = vmul.f32 %v3788_v36, %v3564_v50  ;;  %v5498_v16 = vpop.eup %5497  ;;  %v3641_v30 = vmul.f32 %v3609_v47, %v8129_v22  ;;  %v3568_v57 = vmul.f32 0.5, %v8087_v54  ;;  %v3569_v10 = vmul.f32 0.5, %v8071_v55 }
 0x9ef   : > { %v5500_v32 = vpop.eup %5499  ;;  %v3610_v56 = vmul.f32 0.044715, %v8145_v63  ;;  %v3789_v12 = vadd.f32 1.0, %v5498_v16  ;;  %v3639_v40 = vmul.f32 %v3607_v6, %v8133_v52  ;;  %v3699_v54 = vadd.f32 %v3667_v49, %v8102_v46 }
 0x9f0   : > { %v4935_v13 = vpop.f32.mrb[104].mxu0  ;;  %v3847_v50 = vpack.c.bf16 %v3820_v2, %v3819_v21  ;;  %v3790_v41 = vadd.f32 1.0, %v5500_v32  ;;  %v3670_v55 = vmul.f32 %v3638_v59, %v8115_v34  ;;  %v3608_v8 = vmul.f32 0.044715, %v8151_v3 }
 0x9f1   : > { %v8161_v53 = vadd.f32 %v4935_v13, %v7988_v42  ;;  %v3524_v27 = vpop.f32.mrb[105].mxu0  ;;  %v3700_v24 = vadd.f32 %v3668_v39, %v8111_v11  ;;  %v3821_v9 = vmul.f32 %v3789_v12, %v3565_v25  ;;  %v3731_v47 = vmul.f32 0.7978846, %v3699_v54 }
 0x9f2   : > { %v8165_v62 = vadd.f32 %v7988_v42, %v3524_v27  ;;  %v4936_v7 = vpop.f32.mrb[106].mxu0  ;;  %4965 = vmatprep.mubr.bf16.mxu1 %v3847_v50  ;;  %v3822_v17 = vmul.f32 %v3790_v41, %v3566_v0  ;;  %v8178_v61 = vmul.f32 %v3641_v30, %v8129_v22  ;;  %v3570_v36 = vmul.f32 0.5, %v8082_v51 }
 0x9f3   : > { %v8171_v26 = vadd.f32 %v4936_v7, %v7988_v42  ;;  %v3527_v37 = vpop.f32.mrb[107].mxu0  ;;  %v5502_v5 = vpop.eup %5501  ;;  %v3732_v15 = vmul.f32 0.7978846, %v3700_v24  ;;  %v3671_v49 = vmul.f32 %v3639_v40, %v8133_v52  ;;  %v3642_v6 = vmul.f32 %v3610_v56, %v8145_v63 }
 0x9f4   : > { %v8175_v33 = vadd.f32 %v7988_v42, %v3527_v37  ;;  %v5504_v20 = vpop.eup %5503  ;;  %v3791_v59 = vadd.f32 1.0, %v5502_v5  ;;  %v3848_v39 = vpack.c.bf16 %v3822_v17, %v3821_v9  ;;  %v3640_v25 = vmul.f32 %v3608_v8, %v8151_v3 }
 0x9f5   : > { %v3792_v21 = vadd.f32 1.0, %v5504_v20  ;;  %v3613_v0 = vmul.f32 0.044715, %v8161_v53  ;;  %v3611_v2 = vmul.f32 0.044715, %v8165_v62  ;;  %5509 = vtanh.f32 %v3731_v47 }
 0x9f6   : > { %v5506_v16 = vpop.eup %5505  ;;  %4966 = vmatmul.mubr.bf16.gmra.mrb[88].mxu1 %v3848_v39  ;;  %v3823_v13 = vmul.f32 %v3791_v59, %v8138_v28  ;;  %v3571_v32 = vmul.f32 0.5, %v8102_v46  ;;  %5511 = vtanh.f32 %v3732_v15  ;;  %v3614_v56 = vmul.f32 0.044715, %v8171_v26 }
 0x9f7   : > { %v3824_v51 = vmul.f32 %v3792_v21, %v3568_v57  ;;  %v5508_v27 = vpop.eup %5507  ;;  %v3612_v50 = vmul.f32 0.044715, %v8175_v33  ;;  %v3793_v7 = vadd.f32 1.0, %v5506_v16  ;;  %v3572_v57 = vmul.f32 0.5, %v8111_v11 }
 0x9f8   : > { %v4939_v30 = vpop.f32.mrb[108].mxu0  ;;  %v3794_v28 = vadd.f32 1.0, %v5508_v27  ;;  %v3645_v46 = vmul.f32 %v3613_v0, %v8161_v53  ;;  %v3643_v37 = vmul.f32 %v3611_v2, %v8165_v62  ;;  %v3701_v59 = vadd.f32 %v8154_v45, %v8108_v23 }
 0x9f9   : > { %v8191_v12 = vadd.f32 %v4939_v30, %v7988_v42  ;;  %v3540_v40 = vpop.f32.mrb[109].mxu0  ;;  %v3849_v54 = vpack.c.bf16 %v3824_v51, %v3823_v13  ;;  %v3825_v5 = vmul.f32 %v3793_v7, %v3569_v10  ;;  %v3672_v11 = vmul.f32 %v3640_v25, %v8151_v3 }
 0x9fa   : > { %v8194_v41 = vadd.f32 %v7988_v42, %v3540_v40  ;;  %v4940_v8 = vpop.f32.mrb[110].mxu0  ;;  %v3826_v47 = vmul.f32 %v3794_v28, %v3570_v36  ;;  %v3646_v15 = vmul.f32 %v3614_v56, %v8171_v26  ;;  %v3644_v39 = vmul.f32 %v3612_v50, %v8175_v33 }
 0x9fb   : > { %v8200_v24 = vadd.f32 %v4940_v8, %v7988_v42  ;;  %v3543_v9 = vpop.f32.mrb[111].mxu0  ;;  %4969 = vmatprep.mubr.bf16.mxu1 %v3849_v54  ;;  %v3702_v21 = vadd.f32 %v3670_v55, %v8115_v34  ;;  %v3617_v10 = vmul.f32 0.044715, %v8191_v12  ;;  %v3733_v36 = vmul.f32 0.7978846, %v3701_v59 }
 0x9fc   : > { %v3615_v17 = vmul.f32 0.044715, %v8194_v41  ;;  %v8204_v20 = vadd.f32 %v7988_v42, %v3543_v9  ;;  %v3850_v0 = vpack.c.bf16 %v3826_v47, %v3825_v5  ;;  %v3674_v42 = vmul.f32 %v3642_v6, %v8145_v63 }
 0x9fd   : > { %v3677_v16 = vmul.f32 %v3645_v46, %v8161_v53  ;;  %v3675_v45 = vmul.f32 %v3643_v37, %v8165_v62  ;;  %v3734_v30 = vmul.f32 0.7978846, %v3702_v21  ;;  %v3618_v13 = vmul.f32 0.044715, %v8200_v24 }
 0x9fe   : > { %v3616_v2 = vmul.f32 0.044715, %v8204_v20  ;;  %v3647_v25 = vmul.f32 %v3615_v17, %v8194_v41  ;;  %4970 = vmatmul.mubr.bf16.gmra.mrb[92].mxu1 %v3850_v0  ;;  %5513 = vtanh.f32 %v3733_v36  ;;  %v3703_v55 = vadd.f32 %v3671_v49, %v8133_v52 }
 0x9ff   : > { %v5510_v51 = vpop.eup %5509  ;;  %v3678_v27 = vmul.f32 %v3646_v15, %v8171_v26  ;;  %v3676_v56 = vmul.f32 %v3644_v39, %v8175_v33  ;;  %5515 = vtanh.f32 %v3734_v30  ;;  %v3704_v6 = vadd.f32 %v3672_v11, %v8151_v3 }
 0xa00   : > { %v5512_v50 = vpop.eup %5511  ;;  %v3649_v40 = vmul.f32 %v3617_v10, %v8191_v12  ;;  %v3648_v7 = vmul.f32 %v3616_v2, %v8204_v20  ;;  %v3795_v54 = vadd.f32 1.0, %v5510_v51  ;;  %v3735_v8 = vmul.f32 0.7978846, %v3703_v55 }
 0xa01   : > { %v3796_v28 = vadd.f32 1.0, %v5512_v50  ;;  %v3736_v46 = vmul.f32 0.7978846, %v3704_v6  ;;  %v3705_v49 = vadd.f32 %v8178_v61, %v8129_v22  ;;  %v3706_v37 = vadd.f32 %v3674_v42, %v8145_v63 }
 0xa02   : > { %v3679_v5 = vmul.f32 %v3647_v25, %v8194_v41  ;;  %v3650_v9 = vmul.f32 %v3618_v13, %v8200_v24  ;;  %v3827_v17 = vmul.f32 %v3795_v54, %v3571_v32  ;;  %5517 = vtanh.f32 %v3735_v8 }
 0xa03   : > { %v3828_v47 = vmul.f32 %v3796_v28, %v3572_v57  ;;  %5519 = vtanh.f32 %v3736_v46  ;;  %v3737_v59 = vmul.f32 0.7978846, %v3705_v49  ;;  %v3738_v11 = vmul.f32 0.7978846, %v3706_v37 }
 0xa04   : > { %v3681_v15 = vmul.f32 %v3649_v40, %v8191_v12  ;;  %v3680_v39 = vmul.f32 %v3648_v7, %v8204_v20  ;;  %v3707_v21 = vadd.f32 %v3675_v45, %v8165_v62  ;;  %v3708_v61 = vadd.f32 %v3676_v56, %v8175_v33 }
 0xa05   : > { %v3851_v10 = vpack.c.bf16 %v3828_v47, %v3827_v17  ;;  %5521 = vtanh.f32 %v3737_v59  ;;  %v3709_v0 = vadd.f32 %v3677_v16, %v8161_v53  ;;  %v3710_v2 = vadd.f32 %v3678_v27, %v8171_v26 }
 0xa06   : > { %v3682_v32 = vmul.f32 %v3650_v9, %v8200_v24  ;;  %5523 = vtanh.f32 %v3738_v11  ;;  %v3739_v57 = vmul.f32 0.7978846, %v3707_v21  ;;  %v3740_v36 = vmul.f32 0.7978846, %v3708_v61 }
 0xa07   : > { %4973 = vmatprep.mubr.bf16.mxu1 %v3851_v10  ;;  %v3741_v42 = vmul.f32 0.7978846, %v3709_v0  ;;  %v3742_v30 = vmul.f32 0.7978846, %v3710_v2  ;;  %v3711_v25 = vadd.f32 %v3679_v5, %v8194_v41  ;;  %v3573_v45 = vmul.f32 0.5, %v8108_v23 }
 0xa08   : > { %v5514_v13 = vpop.eup %5513  ;;  %v3574_v55 = vmul.f32 0.5, %v8115_v34  ;;  %5525 = vtanh.f32 %v3739_v57  ;;  %v3712_v16 = vadd.f32 %v3680_v39, %v8204_v20  ;;  %v3713_v6 = vadd.f32 %v3681_v15, %v8191_v12 }
 0xa09   : > { %v5516_v51 = vpop.eup %5515  ;;  %v3797_v27 = vadd.f32 1.0, %v5514_v13  ;;  %5527 = vtanh.f32 %v3740_v36  ;;  %v3743_v56 = vmul.f32 0.7978846, %v3711_v25  ;;  %v3714_v7 = vadd.f32 %v3682_v32, %v8200_v24 }
 0xa0a   : > { %v3798_v50 = vadd.f32 1.0, %v5516_v51  ;;  %5529 = vtanh.f32 %v3741_v42  ;;  %v3744_v40 = vmul.f32 0.7978846, %v3712_v16  ;;  %v3745_v54 = vmul.f32 0.7978846, %v3713_v6 }
 0xa0b   : > { %5531 = vtanh.f32 %v3742_v30  ;;  %v3829_v23 = vmul.f32 %v3797_v27, %v3573_v45  ;;  %v3746_v34 = vmul.f32 0.7978846, %v3714_v7  ;;  %v3575_v49 = vmul.f32 0.5, %v8133_v52 }
 0xa0c   : > { %v5518_v8 = vpop.eup %5517  ;;  %v3830_v28 = vmul.f32 %v3798_v50, %v3574_v55  ;;  %5533 = vtanh.f32 %v3743_v56  ;;  %v3576_v9 = vmul.f32 0.5, %v8151_v3  ;;  %v3577_v21 = vmul.f32 0.5, %v8129_v22 }
 0xa0d   : > { %v5520_v46 = vpop.eup %5519  ;;  %v3799_v37 = vadd.f32 1.0, %v5518_v8  ;;  %5535 = vtanh.f32 %v3744_v40  ;;  %v3578_v61 = vmul.f32 0.5, %v8145_v63  ;;  %v3579_v42 = vmul.f32 0.5, %v8165_v62 }
 0xa0e   : > { %v3852_v5 = vpack.c.bf16 %v3830_v28, %v3829_v23  ;;  %v3800_v17 = vadd.f32 1.0, %v5520_v46  ;;  %5537 = vtanh.f32 %v3745_v54  ;;  %v3580_v30 = vmul.f32 0.5, %v8175_v33 }
 0xa0f   : > { %v5522_v47 = vpop.eup %5521  ;;  %5539 = vtanh.f32 %v3746_v34  ;;  %v3831_v11 = vmul.f32 %v3799_v37, %v3575_v49  ;;  %v3581_v22 = vmul.f32 0.5, %v8161_v53  ;;  %v3582_v27 = vmul.f32 0.5, %v8171_v26 }
 0xa10   : > { %v5524_v59 = vpop.eup %5523  ;;  %4974 = vmatmul.mubr.bf16.gmra.mrb[96].mxu1 %v3852_v5  ;;  %v3832_v15 = vmul.f32 %v3800_v17, %v3576_v9  ;;  %v3801_v39 = vadd.f32 1.0, %v5522_v47  ;;  %v3583_v50 = vmul.f32 0.5, %v8194_v41  ;;  %v3584_v40 = vmul.f32 0.5, %v8204_v20  ;;  %v8255_v47 = vld [vmem:[#allocation25] ss:$0 sm:$0xff] }
 0xa11   : > { %v3802_v10 = vadd.f32 1.0, %v5524_v59  ;;  %v3585_v28 = vmul.f32 0.5, %v8191_v12  ;;  %v3586_v34 = vmul.f32 0.5, %v8200_v24 }
 0xa12   : > { %v5526_v52 = vpop.eup %5525  ;;  %v3853_v0 = vpack.c.bf16 %v3832_v15, %v3831_v11  ;;  %v3833_v32 = vmul.f32 %v3801_v39, %v3577_v21 }
 0xa13   : > { %v5528_v2 = vpop.eup %5527  ;;  %v3834_v57 = vmul.f32 %v3802_v10, %v3578_v61  ;;  %v3803_v3 = vadd.f32 1.0, %v5526_v52 }
 0xa14   : > { %v5530_v36 = vpop.eup %5529  ;;  %4977 = vmatprep.mubr.bf16.mxu1 %v3853_v0  ;;  %v3804_v25 = vadd.f32 1.0, %v5528_v2 }
 0xa15   : > { %v5532_v13 = vpop.eup %5531  ;;  %v3854_v45 = vpack.c.bf16 %v3834_v57, %v3833_v32  ;;  %v3805_v55 = vadd.f32 1.0, %v5530_v36  ;;  %v3835_v16 = vmul.f32 %v3803_v3, %v3579_v42 }
 0xa16   : > { %v5534_v63 = vpop.eup %5533  ;;  %v3836_v51 = vmul.f32 %v3804_v25, %v3580_v30  ;;  %v3806_v56 = vadd.f32 1.0, %v5532_v13 }
 0xa17   : > { %v5536_v6 = vpop.eup %5535  ;;  %v3807_v62 = vadd.f32 1.0, %v5534_v63  ;;  %v3837_v54 = vmul.f32 %v3805_v55, %v3581_v22 }
 0xa18   : > { %v5538_v7 = vpop.eup %5537  ;;  %4978 = vmatmul.mubr.bf16.gmra.mrb[100].mxu1 %v3854_v45  ;;  %v3855_v33 = vpack.c.bf16 %v3836_v51, %v3835_v16  ;;  %v3838_v8 = vmul.f32 %v3806_v56, %v3582_v27  ;;  %v3808_v23 = vadd.f32 1.0, %v5536_v6 }
 0xa19   : > { %v5540_v53 = vpop.eup %5539  ;;  %v3809_v46 = vadd.f32 1.0, %v5538_v7  ;;  %v3839_v49 = vmul.f32 %v3807_v62, %v3583_v50 }
 0xa1a   : > { %4981 = vmatprep.mubr.bf16.mxu1 %v3855_v33  ;;  %v3856_v26 = vpack.c.bf16 %v3838_v8, %v3837_v54  ;;  %v3840_v37 = vmul.f32 %v3808_v23, %v3584_v40  ;;  %v3810_v41 = vadd.f32 1.0, %v5540_v53  ;;  %v8586_v54 = vld [vmem:[#allocation40_spill] sm:$0xff]  ;;  %v8587_v23 = vld [vmem:[#allocation39_spill] sm:$0xff] }
 0xa1b   : > { %v3841_v20 = vmul.f32 %v3809_v46, %v3585_v28 }
 0xa1c   : > { %v3857_v5 = vpack.c.bf16 %v3840_v37, %v3839_v49  ;;  %v3842_v9 = vmul.f32 %v3810_v41, %v3586_v34 }
 0xa1e   : > { %v3858_v17 = vpack.c.bf16 %v3842_v9, %v3841_v20 }
 0xa20   : > { %4982 = vmatmul.mubr.bf16.gmra.mrb[104].mxu1 %v3856_v26  ;;  %v8588_v26 = vld [vmem:[#allocation42_spill] sm:$0xff] }
 0xa21   : > { %4985 = vmatprep.mubr.bf16.mxu1 %v3857_v5  ;;  %v8589_v5 = vld [vmem:[#allocation41_spill] sm:$0xff] }
 0xa28   : > { %4986 = vmatmul.mubr.bf16.gmra.mrb[108].mxu1 %v3858_v17  ;;  %v8590_v17 = vld [vmem:[#allocation44_spill] sm:$0xff] }
 0xab0   : > { %v4959_v59 = vpop.f32.mrb[80].mxu1 }
 0xab1   : > { %v3973_v12 = vadd.f32 %v4959_v59, %v8255_v47  ;;  %v3964_v24 = vpop.f32.mrb[81].mxu1 }
 0xab2   : > { %v3965_v11 = vadd.f32 %v8255_v47, %v3964_v24  ;;  %v4960_v15 = vpop.f32.mrb[82].mxu1 }
 0xab3   : > { %v4093_v39 = vadd.f32 %v3973_v12, %v7496_v1  ;;  %v3976_v21 = vadd.f32 %v4960_v15, %v8255_v47  ;;  %v3967_v61 = vpop.f32.mrb[83].mxu1  ;;  %v8591_v12 = vld [vmem:[#allocation43_spill] sm:$0xff] }
 0xab4   : > { %v4091_v10 = vadd.f32 %v3965_v11, %v7491_v35  ;;  %v3968_v52 = vadd.f32 %v8255_v47, %v3967_v61 }
 0xab5   : > { %4125 = vst.msk [vmem:[%s8265_s24 + $0x10] sm:$0xff] %vm800_vm0, %v4093_v39  ;;  %v4094_v0 = vadd.f32 %v3976_v21, %v7504_v48 }
 0xab6   : > { %4123 = vst.msk [vmem:[%s8265_s24] sm:$0xff] %vm800_vm0, %v4091_v10  ;;  %v4092_v1 = vadd.f32 %v3968_v52, %v7499_v38  ;;  %v8592_v10 = vld [vmem:[#allocation46_spill] sm:$0xff] }
 0xab7   : > { %4126 = vst.msk [vmem:[%s8265_s24 + $0x18] sm:$0xff] %vm800_vm0, %v4094_v0 }
 0xab8   : > { %4124 = vst.msk [vmem:[%s8265_s24 + $0x8] sm:$0xff] %vm800_vm0, %v4092_v1 }
 0xab9   : > { %v4963_v35 = vpop.f32.mrb[84].mxu1 }
 0xaba   : > { %v3989_v2 = vadd.f32 %v4963_v35, %v8255_v47  ;;  %v3980_v32 = vpop.f32.mrb[85].mxu1  ;;  %v8593_v35 = vld [vmem:[#allocation45_spill] sm:$0xff] }
 0xabb   : > { %v3981_v57 = vadd.f32 %v8255_v47, %v3980_v32  ;;  %v4964_v3 = vpop.f32.mrb[86].mxu1 }
 0xabc   : > { %v4097_v48 = vadd.f32 %v3989_v2, %v7520_v43  ;;  %v3992_v36 = vadd.f32 %v4964_v3, %v8255_v47  ;;  %v3983_v42 = vpop.f32.mrb[87].mxu1 }
 0xabd   : > { %v4095_v38 = vadd.f32 %v3981_v57, %v7515_v31  ;;  %v3984_v30 = vadd.f32 %v8255_v47, %v3983_v42  ;;  %v8594_v57 = vld [vmem:[#allocation48_spill] sm:$0xff] }
 0xabe   : > { %4129 = vst.msk [vmem:[%s8265_s24 + $0x30] sm:$0xff] %vm800_vm0, %v4097_v48  ;;  %v4098_v25 = vadd.f32 %v3992_v36, %v7528_v18  ;;  %v8595_v48 = vld [vmem:[#allocation47_spill] sm:$0xff] }
 0xabf   : > { %4127 = vst.msk [vmem:[%s8265_s24 + $0x20] sm:$0xff] %vm800_vm0, %v4095_v38  ;;  %v4096_v13 = vadd.f32 %v3984_v30, %v7523_v58 }
 0xac0   : > { %4130 = vst.msk [vmem:[%s8265_s24 + $0x38] sm:$0xff] %vm800_vm0, %v4098_v25 }
 0xac1   : > { %4128 = vst.msk [vmem:[%s8265_s24 + $0x28] sm:$0xff] %vm800_vm0, %v4096_v13 }
 0xac9   : > { %v4967_v43 = vpop.f32.mrb[88].mxu1 }
 0xaca   : > { %v4005_v31 = vadd.f32 %v4967_v43, %v8255_v47  ;;  %v3996_v45 = vpop.f32.mrb[89].mxu1  ;;  %v8596_v43 = vld [vmem:[#allocation50_spill] sm:$0xff] }
 0xacb   : > { %v3997_v22 = vadd.f32 %v8255_v47, %v3996_v45  ;;  %v4968_v55 = vpop.f32.mrb[90].mxu1 }
 0xacc   : > { %v4101_v18 = vadd.f32 %v4005_v31, %v7544_v19  ;;  %v4008_v63 = vadd.f32 %v4968_v55, %v8255_v47  ;;  %v3999_v16 = vpop.f32.mrb[91].mxu1  ;;  %v8598_v55 = vld [vmem:[#allocation49_spill] sm:$0xff] }
 0xacd   : > { %v4099_v58 = vadd.f32 %v3997_v22, %v7539_v60  ;;  %v4000_v51 = vadd.f32 %v8255_v47, %v3999_v16  ;;  %v8599_v16 = vld [vmem:[#allocation52_spill] sm:$0xff] }
 0xace   : > { %4133 = vst.msk [vmem:[%s8265_s24 + $0x50] sm:$0xff] %vm800_vm0, %v4101_v18  ;;  %v4102_v27 = vadd.f32 %v4008_v63, %v7552_v29 }
 0xacf   : > { %4131 = vst.msk [vmem:[%s8265_s24 + $0x40] sm:$0xff] %vm800_vm0, %v4099_v58  ;;  %v4100_v56 = vadd.f32 %v4000_v51, %v7547_v44  ;;  %v8600_v51 = vld [vmem:[#allocation51_spill] sm:$0xff] }
 0xad0   : > { %4134 = vst.msk [vmem:[%s8265_s24 + $0x58] sm:$0xff] %vm800_vm0, %v4102_v27 }
 0xad1   : > { %4132 = vst.msk [vmem:[%s8265_s24 + $0x48] sm:$0xff] %vm800_vm0, %v4100_v56  ;;  %v4971_v19 = vpop.f32.mrb[92].mxu1 }
 0xad2   : > { %v4021_v60 = vadd.f32 %v4971_v19, %v8255_v47  ;;  %v4012_v6 = vpop.f32.mrb[93].mxu1 }
 0xad3   : > { %v4013_v50 = vadd.f32 %v8255_v47, %v4012_v6  ;;  %v4972_v40 = vpop.f32.mrb[94].mxu1 }
 0xad4   : > { %v4105_v29 = vadd.f32 %v4021_v60, %v7568_v14  ;;  %v4024_v62 = vadd.f32 %v4972_v40, %v8255_v47  ;;  %v4015_v7 = vpop.f32.mrb[95].mxu1  ;;  %v8601_v40 = vld [vmem:[#allocation54_spill] sm:$0xff] }
 0xad5   : > { %v4103_v44 = vadd.f32 %v4013_v50, %v7561_v4  ;;  %v4016_v33 = vadd.f32 %v8255_v47, %v4015_v7 }
 0xad6   : > { %4137 = vst.msk [vmem:[%s8265_s24 + $0x70] sm:$0xff] %vm800_vm0, %v4105_v29  ;;  %v4106_v8 = vadd.f32 %v4024_v62, %v8586_v54 }
 0xad7   : > { %4135 = vst.msk [vmem:[%s8265_s24 + $0x60] sm:$0xff] %vm800_vm0, %v4103_v44  ;;  %v4104_v53 = vadd.f32 %v4016_v33, %v8587_v23  ;;  %v8602_v44 = vld [vmem:[#allocation53_spill] sm:$0xff] }
 0xad8   : > { %4138 = vst.msk [vmem:[%s8265_s24 + $0x78] sm:$0xff] %vm800_vm0, %v4106_v8  ;;  %v8603_v8 = vld [vmem:[#allocation56_spill] sm:$0xff] }
 0xad9   : > { %4136 = vst.msk [vmem:[%s8265_s24 + $0x68] sm:$0xff] %vm800_vm0, %v4104_v53  ;;  %v8605_v53 = vld [vmem:[#allocation55_spill] sm:$0xff] }
 0xae3   : > { %v4975_v14 = vpop.f32.mrb[96].mxu1 }
 0xae4   : > { %v4037_v4 = vadd.f32 %v4975_v14, %v8255_v47  ;;  %v4028_v28 = vpop.f32.mrb[97].mxu1 }
 0xae5   : > { %v4029_v34 = vadd.f32 %v8255_v47, %v4028_v28  ;;  %v4976_v46 = vpop.f32.mrb[98].mxu1 }
 0xae6   : > { %v4109_v49 = vadd.f32 %v4037_v4, %v8588_v26  ;;  %v4040_v37 = vadd.f32 %v4976_v46, %v8255_v47  ;;  %v4031_v41 = vpop.f32.mrb[99].mxu1 }
 0xae7   : > { %v4107_v20 = vadd.f32 %v4029_v34, %v8589_v5  ;;  %v4032_v9 = vadd.f32 %v8255_v47, %v4031_v41 }
 0xae8   : > { %4141 = vst.msk [vmem:[%s8265_s24 + $0x90] sm:$0xff] %vm800_vm0, %v4109_v49  ;;  %v4110_v59 = vadd.f32 %v4040_v37, %v8590_v17 }
 0xae9   : > { %4139 = vst.msk [vmem:[%s8265_s24 + $0x80] sm:$0xff] %vm800_vm0, %v4107_v20  ;;  %v4108_v24 = vadd.f32 %v4032_v9, %v8591_v12 }
 0xaea   : > { %4142 = vst.msk [vmem:[%s8265_s24 + $0x98] sm:$0xff] %vm800_vm0, %v4110_v59 }
 0xaeb   : > { %4140 = vst.msk [vmem:[%s8265_s24 + $0x88] sm:$0xff] %vm800_vm0, %v4108_v24  ;;  %v4979_v11 = vpop.f32.mrb[100].mxu1 }
 0xaec   : > { %v4053_v15 = vadd.f32 %v4979_v11, %v8255_v47  ;;  %v4044_v39 = vpop.f32.mrb[101].mxu1 }
 0xaed   : > { %v4045_v21 = vadd.f32 %v8255_v47, %v4044_v39  ;;  %v4980_v61 = vpop.f32.mrb[102].mxu1 }
 0xaee   : > { %v4113_v52 = vadd.f32 %v4053_v15, %v8592_v10  ;;  %v4056_v0 = vadd.f32 %v4980_v61, %v8255_v47  ;;  %v4047_v1 = vpop.f32.mrb[103].mxu1 }
 0xaef   : > { %v4111_v2 = vadd.f32 %v4045_v21, %v8593_v35  ;;  %v4048_v32 = vadd.f32 %v8255_v47, %v4047_v1 }
 0xaf0   : > { %4145 = vst.msk [vmem:[%s8265_s24 + $0xb0] sm:$0xff] %vm800_vm0, %v4113_v52  ;;  %v4114_v3 = vadd.f32 %v4056_v0, %v8594_v57 }
 0xaf1   : > { %4143 = vst.msk [vmem:[%s8265_s24 + $0xa0] sm:$0xff] %vm800_vm0, %v4111_v2  ;;  %v4112_v36 = vadd.f32 %v4048_v32, %v8595_v48 }
 0xaf2   : > { %4146 = vst.msk [vmem:[%s8265_s24 + $0xb8] sm:$0xff] %vm800_vm0, %v4114_v3 }
 0xaf3   : > { %4144 = vst.msk [vmem:[%s8265_s24 + $0xa8] sm:$0xff] %vm800_vm0, %v4112_v36  ;;  %v4983_v42 = vpop.f32.mrb[104].mxu1 }
 0xaf4   : > { %v4069_v38 = vadd.f32 %v4983_v42, %v8255_v47  ;;  %v4060_v30 = vpop.f32.mrb[105].mxu1 }
 0xaf5   : > { %v4061_v25 = vadd.f32 %v8255_v47, %v4060_v30  ;;  %v4984_v13 = vpop.f32.mrb[106].mxu1 }
 0xaf6   : > { %v4117_v31 = vadd.f32 %v4069_v38, %v8596_v43  ;;  %v4072_v45 = vadd.f32 %v4984_v13, %v8255_v47  ;;  %v4063_v22 = vpop.f32.mrb[107].mxu1 }
 0xaf7   : > { %v4115_v18 = vadd.f32 %v4061_v25, %v8598_v55  ;;  %v4064_v63 = vadd.f32 %v8255_v47, %v4063_v22 }
 0xaf8   : > { %4149 = vst.msk [vmem:[%s8265_s24 + $0xd0] sm:$0xff] %vm800_vm0, %v4117_v31  ;;  %v4118_v58 = vadd.f32 %v4072_v45, %v8599_v16 }
 0xaf9   : > { %4147 = vst.msk [vmem:[%s8265_s24 + $0xc0] sm:$0xff] %vm800_vm0, %v4115_v18  ;;  %v4116_v27 = vadd.f32 %v4064_v63, %v8600_v51 }
 0xafa   : > { %4150 = vst.msk [vmem:[%s8265_s24 + $0xd8] sm:$0xff] %vm800_vm0, %v4118_v58 }
 0xafb   : > { %4148 = vst.msk [vmem:[%s8265_s24 + $0xc8] sm:$0xff] %vm800_vm0, %v4116_v27  ;;  %v4987_v56 = vpop.f32.mrb[108].mxu1 }
 0xafc   : > { %v4085_v19 = vadd.f32 %v4987_v56, %v8255_v47  ;;  %v4076_v60 = vpop.f32.mrb[109].mxu1 }
 0xafd   : > { %v4077_v6 = vadd.f32 %v8255_v47, %v4076_v60  ;;  %v4988_v50 = vpop.f32.mrb[110].mxu1 }
 0xafe   : > { %v4121_v29 = vadd.f32 %v4085_v19, %v8601_v40  ;;  %v4088_v62 = vadd.f32 %v4988_v50, %v8255_v47  ;;  %v4079_v7 = vpop.f32.mrb[111].mxu1 }
 0xaff   : > { %v4119_v33 = vadd.f32 %v4077_v6, %v8602_v44  ;;  %v4080_v54 = vadd.f32 %v8255_v47, %v4079_v7 }
 0xb00   : > { %4153 = vst.msk [vmem:[%s8265_s24 + $0xf0] sm:$0xff] %vm800_vm0, %v4121_v29  ;;  %v4122_v23 = vadd.f32 %v4088_v62, %v8603_v8 }
 0xb01   : > { %4151 = vst.msk [vmem:[%s8265_s24 + $0xe0] sm:$0xff] %vm800_vm0, %v4119_v33  ;;  %v4120_v14 = vadd.f32 %v4080_v54, %v8605_v53 }
 0xb02   : > { %4154 = vst.msk [vmem:[%s8265_s24 + $0xf8] sm:$0xff] %vm800_vm0, %v4122_v23 }
 0xb03   : > { %4152 = vst.msk [vmem:[%s8265_s24 + $0xe8] sm:$0xff] %vm800_vm0, %v4120_v14 }
 0xb04   : > { %6012 = shalt.err (!%p6009_p8)
}
 0xb05   : > { %s6013_s5 = scalar_lea.hbm %s8387_s28, 4096  ;;  %s6017_s14 = scalar_lea.hbm %s8604_s8, 8192 }
 0xb06   : > { %p6014_p6 = scmp.ne.s32.totalorder %s8387_s28, %s6013_s5  ;;  %p6018_p10 = scmp.lt.u32.totalorder %s8387_s28, %s8604_s8 }
 0xb07   : > { %p6019_p7 = scmp.lt.u32.totalorder %s6017_s14, %s6013_s5  ;;  %p6021_p0 = scmp.lt.u32.totalorder %s6013_s5, %s8387_s28 }
 0xb08   : > { %p6015_p4 = pnand %p6014_p6, %p8606_p2 }
 0xb09   : > { %p6020_p9 = por %p6019_p7, %p6018_p10 }
 0xb0a   : > { %p6016_p1 = pneg %p6015_p4 }
 0xb0b   : > { %p6022_p5 = por %p6021_p0, %p6020_p9 }
 0xb0d   : > { %p6023_p3 = pnand %p6022_p5, %p6016_p1 }
 0xb0f   : > { %6026 = shalt.err (!%p6023_p3)
}
 0xb10   : > { %s6131_s15 = smov 128   ;;  %s6132_s6 = smov 8  }
 0xb11   : > { %5048 = dma.vmem_to_hbm [thread:$0]  (%p8606_p2), %s8389_s11, 4096, %s8387_s28, %s4156_s13, %s6131_s15, %s6131_s15, %s6132_s6  }
 0xb12 PF: > { %s4186_s1 = sand.u32 1, %s6089_s18   ;;  %p8607_p11 = scmp.ne.s32.totalorder %s8534_s21, 0 }
 0xb13   : > { %p8608_p12 = scmp.ge.s32.totalorder %s6109_s23, 2  ;;  %s4187_s29 = scalar_lea.sflag [#allocation4], %s4186_s1 }
 0xb15   : > { %p5098_p13 = pnand %p8608_p12, %p8607_p11 }
 0xb17   : > { %6084 = dma.done.wait (!%p5098_p13), %s4187_s29, 4096  }
 0xb18   : > { %6086 = vsyncadd (!%p5098_p13), %s4187_s29, 4294963200  ;;  %s40_s23 = sadd.s32 1, %s6109_s23   ;;  %s8609_s2 = sld [smem:[#allocation38_spill]] }
 0xb19   : > { %p37_p8 = scmp.ge.s32.totalorder %s40_s23, 4   ;;  %s8610_s18 = smov %s6093_s19 }
 0xb1a   : > { %s8611_s19 = smov %s6097_s20  ;;  %s8612_s20 = smov %s6426_s27 }
 0xb1b   : > { %s8613_s21 = smov %s6105_s22  ;;  %39 = sbr.rel (!%p37_p8) target bundleno = 31 (0x1f), region = 197 }
 0xb1e   : > { %s8614_s22 = smov %s8609_s2 }
 0xb22   :  { %4192 = vsyncpa [#allocation3], 1 }
 0xb23   :  { %4194 = vsyncpa [#allocation3 + $0x1], 1 }
 0xb24   :  { %4195 = vsyncpa [#allocation6], 1 }
 0xb25   :  { %4197 = vsyncpa [#allocation6 + $0x1], 1 }
 0xb26   :  { %4198 = vsyncpa [#allocation9], 1 }
 0xb27   :  { %4199 = vsyncpa [#allocation12], 1 }
 0xb28   :  { %4200 = vsyncpa [#allocation15], 1 }
 0xb29   :  { %4201 = vsyncpa [#allocation18], 1 }
 0xb2a   :  { %4202 = vsyncpa [#allocation21], 1 }
 0xb2b   :  { %4203 = vsyncpa [#allocation24], 1 }
 0xb2c   :  { %4204 = vsyncpa [#allocation4], 1 }
 0xb2d   :  { %4206 = vsyncpa [#allocation4 + $0x1], 1 }

</bundles_post_ra>
